<compile_context>
chip_gen: v7x
topology: tpu7x:2x2x1
jax: 0.10.0
libtpu: 0.0.40
codegen_flags: <defaults>
</compile_context>

<pallas_src>
import itertools
import numpy as np
import jax
import jax.numpy as jnp
from jax.experimental import pallas as pl
from jax.experimental.pallas import tpu as pltpu

NUM_POINTS = 1024          # 32*32 folding grid points (self.m in the PyTorch module)
CODE_DIM = 512
OUT_DIM = 4
OUT_ROWS = 8               # last layers padded 4 -> 8 sublane rows (tile aligned)
LANE_BLOCK = 512           # points (lanes) processed per grid step

# Row offsets of each layer's bias inside the packed (464, 1) f32 bias blob.
_BOFF = dict(m1l2=0, m1l3=128, m1l4=192, m1l5=224,
             m2l2=232, m2l3=360, m2l4=424, m2l5=456)
_BIAS_ROWS = 464


# ----------------------------------------------------------------------------
# Fused Pallas kernel: both folding MLPs, transposed (points along lanes).
# Shapes per grid step: activations are (Din, LANE_BLOCK).
# ----------------------------------------------------------------------------
def decoder_kernel(gf1t, c1, c2, w2ft, wb256, wb128, wb64, w5a, w5b, bias, o_ref):
    f32, bf16 = jnp.float32, jnp.bfloat16

    def dense(w, h, b0, rows, relu=True):
        # bf16 MXU operands, f32 accumulation; bias add (+ReLU) in f32, then bf16.
        y = jnp.dot(w, h, preferred_element_type=f32) + bias[b0:b0 + rows, :]
        return jnp.maximum(y, 0.0).astype(bf16) if relu else y

    # ---- folding 1 (mlp1) ----------------------------------------------------
    # layer 1 = (grid part, precomputed & shared) + (codeword part, per batch)
    h = jnp.maximum(gf1t[...].astype(f32) + c1[...], 0.0).astype(bf16)   # (256, N)
    h = dense(wb256[0:128, :], h, _BOFF["m1l2"], 128)                    # (128, N)
    h = dense(wb128[0:64, :],  h, _BOFF["m1l3"], 64)                     # (64, N)
    h = dense(wb64[0:32, :],   h, _BOFF["m1l4"], 32)                     # (32, N)
    fold1 = dense(w5a[...],    h, _BOFF["m1l5"], OUT_ROWS, relu=False)   # (8, N) f32

    # ---- folding 2 (mlp2) ----------------------------------------------------
    # layer 1 = (codeword part incl. bias, per batch) + W_fold^T @ fold1 (f32, K=8)
    h = jnp.maximum(
        c2[...] + jnp.dot(w2ft[...], fold1, preferred_element_type=f32),
        0.0).astype(bf16)                                                # (256, N)
    h = dense(wb256[128:256, :], h, _BOFF["m2l2"], 128)                  # (128, N)
    h = dense(wb128[64:128, :],  h, _BOFF["m2l3"], 64)                   # (64, N)
    h = dense(wb64[32:64, :],    h, _BOFF["m2l4"], 32)                   # (32, N)
    out = dense(w5b[...],        h, _BOFF["m2l5"], OUT_ROWS, relu=False) # (8, N) f32
    o_ref[...] = out.astype(o_ref.dtype)


# ----------------------------------------------------------------------------
# pallas_call wrapper
# ----------------------------------------------------------------------------
def _fused_decoder_call(code1, code2, prep):
    B = code1.shape[0]
    P = NUM_POINTS // LANE_BLOCK
    const = lambda b, p: (0, 0)               # resident (never re-DMA'd) blocks

    in_specs = [
        pl.BlockSpec((256, LANE_BLOCK), lambda b, p: (0, p)),   # gf1t: lane-block slices
        pl.BlockSpec((None, 256, 1), lambda b, p: (b, 0, 0)),   # code1 (per batch column)
        pl.BlockSpec((None, 256, 1), lambda b, p: (b, 0, 0)),   # code2
        pl.BlockSpec(prep["w2ft"].shape, const),                # (256, 8)  f32
        pl.BlockSpec(prep["wb256"].shape, const),               # (256, 256) bf16
        pl.BlockSpec(prep["wb128"].shape, const),               # (128, 128) bf16
        pl.BlockSpec(prep["wb64"].shape, const),                # (64, 64)   bf16
        pl.BlockSpec(prep["w5a"].shape, const),                 # (8, 32)    bf16
        pl.BlockSpec(prep["w5b"].shape, const),                 # (8, 32)    bf16
        pl.BlockSpec(prep["bias"].shape, const),                # (464, 1)   f32
    ]

    return pl.pallas_call(
        decoder_kernel,
        out_shape=jax.ShapeDtypeStruct((B, OUT_ROWS, NUM_POINTS), jnp.float32),
        grid_spec=pltpu.PrefetchScalarGridSpec(
            num_scalar_prefetch=0,
            grid=(B, P),                      # >= 2 parallel steps even at B=1
            in_specs=in_specs,
            out_specs=pl.BlockSpec((None, OUT_ROWS, LANE_BLOCK),
                                   lambda b, p: (b, 0, p)),
        ),
        compiler_params=pltpu.CompilerParams(
            dimension_semantics=("parallel", "parallel")),
    )(prep["gf1t"], code1, code2, prep["w2ft"],
      prep["wb256"], prep["wb128"], prep["wb64"],
      prep["w5a"], prep["w5b"], prep["bias"])


# ----------------------------------------------------------------------------
# Parameter init (PyTorch nn.Linear default: U(-1/sqrt(fan_in), +)); weights (Din,Dout)
# ----------------------------------------------------------------------------
def init_mlp(key, dims):
    params = []
    for i in range(len(dims) - 1):
        key, kw, kb = jax.random.split(key, 3)
        bound = 1.0 / float(np.sqrt(dims[i]))
        w = jax.random.uniform(kw, (dims[i], dims[i + 1]), jnp.float32, -bound, bound)
        b = jax.random.uniform(kb, (1, dims[i + 1]), jnp.float32, -bound, bound)
        params.append((w, b))
    return params


def build_grid_points():
    x = np.linspace(-0.3, 0.3, 32)
    y = np.linspace(-0.3, 0.3, 32)
    g = np.array(list(itertools.product(x, y)), dtype=np.float32)   # (1024, 2)
    return jnp.asarray(g)


def prepare_decoder(mlp1_params, mlp2_params):
    """One-time setup (hoisted out of the hot path): split / transpose / pack weights."""
    f32, bf16 = jnp.float32, jnp.bfloat16
    grid_pts = build_grid_points()                        # (1024, 2)

    w1, b1 = mlp1_params[0]                               # (514, 256), (1, 256)
    w1p, b1p = mlp2_params[0]                             # (516, 256), (1, 256)

    prep = dict(
        # codeword column blocks of the two first layers (used in the wrapper, K=512)
        w1_code=w1[:CODE_DIM],                            # (512, 256)
        w2_code=w1p[:CODE_DIM],                           # (512, 256)
        b2_1=b1p,                                         # folded into code2
        # constant grid contribution of mlp1 layer 1, transposed (points -> lanes), bf16
        gf1t=(grid_pts @ w1[CODE_DIM:] + b1).T.astype(bf16),             # (256, 1024)
        # fold-coordinate part of mlp2 layer 1, transposed + padded 4 -> 8 cols, f32
        w2ft=jnp.zeros((256, OUT_ROWS), f32).at[:, :OUT_DIM].set(w1p[CODE_DIM:].T),
    )

    def wt(layer):        # (Din, Dout) -> (Dout, Din) bf16
        return layer[0].T.astype(bf16)

    def bt(layer):        # (1, Dout) -> (Dout, 1) f32
        return layer[1].T.astype(f32)

    def w5_pad(layer):    # (32, 4) -> (8, 32) bf16, rows 4..7 zero
        return (jnp.zeros((OUT_ROWS, layer[0].shape[0]), f32)
                .at[:OUT_DIM].set(layer[0].T).astype(bf16))

    def b5_pad(layer):    # (1, 4) -> (8, 1) f32
        return jnp.zeros((OUT_ROWS, 1), f32).at[:OUT_DIM].set(layer[1].T)

    m1, m2 = mlp1_params[1:], mlp2_params[1:]             # layers 2..5 of each MLP
    prep["wb256"] = jnp.concatenate([wt(m1[0]), wt(m2[0])], axis=0)      # (256, 256)
    prep["wb128"] = jnp.concatenate([wt(m1[1]), wt(m2[1])], axis=0)      # (128, 128)
    prep["wb64"]  = jnp.concatenate([wt(m1[2]), wt(m2[2])], axis=0)      # (64, 64)
    prep["w5a"]   = w5_pad(m1[3])                                        # (8, 32)
    prep["w5b"]   = w5_pad(m2[3])                                        # (8, 32)
    prep["bias"]  = jnp.concatenate(
        [bt(m1[0]), bt(m1[1]), bt(m1[2]), b5_pad(m1[3]),
         bt(m2[0]), bt(m2[1]), bt(m2[2]), b5_pad(m2[3])], axis=0)        # (464, 1)
    assert prep["bias"].shape == (_BIAS_ROWS, 1)
    return prep


@jax.jit
def decoder_forward(codeword, prep):
    """codeword: (B, 1, 512) f32  ->  (B, 1024, 4) f32."""
    cw = codeword[:, 0, :]                                               # (B, 512)
    # per-batch codeword contribution to each MLP's first layer (K=512, aligned, tiny)
    code1 = (cw @ prep["w1_code"])[:, :, None]                           # (B, 256, 1)
    code2 = (cw @ prep["w2_code"] + prep["b2_1"])[:, :, None]            # (B, 256, 1)
    out = _fused_decoder_call(code1, code2, prep)                        # (B, 8, 1024)
    return jnp.transpose(out[:, :OUT_DIM, :], (0, 2, 1))                 # (B, 1024, 4)


# ----------------------------------------------------------------------------
# Pure-JAX reference (original unsplit f32 formulation) for a sanity check.
# ----------------------------------------------------------------------------
def decoder_reference(codeword, mlp1_params, mlp2_params):
    B = codeword.shape[0]
    grid_pts = build_grid_points()
    inp = jnp.tile(codeword, (1, NUM_POINTS, 1))                          # (B, 1024, 512)
    grid = jnp.broadcast_to(grid_pts[None], (B, NUM_POINTS, 2))

    def mlp(x, params):
        for i, (w, b) in enumerate(params):
            x = x @ w + b
            if i < len(params) - 1:
                x = jnp.maximum(x, 0.0)
        return x

    f1 = mlp(jnp.concatenate([inp, grid], -1), mlp1_params)
    f2 = mlp(jnp.concatenate([inp, f1], -1), mlp2_params)
    return f2


if __name__ == "__main__":
    key = jax.random.PRNGKey(0)
    k_in, k_m1, k_m2 = jax.random.split(key, 3)

    B = 2
    codeword = jax.random.normal(k_in, (B, 1, CODE_DIM), dtype=jnp.float32)

    mlp1_params = init_mlp(k_m1, [514, 256, 128, 64, 32, 4])
    mlp2_params = init_mlp(k_m2, [516, 256, 128, 64, 32, 4])

    prep = prepare_decoder(mlp1_params, mlp2_params)
    out = decoder_forward(codeword, prep)
    out = jax.block_until_ready(out)

    assert out.shape == (B, NUM_POINTS, OUT_DIM), out.shape
    assert bool(jnp.all(jnp.isfinite(out)))

    # loose tolerance: kernel uses bf16 matmul operands / bf16 gf1 (f32 accumulate)
    ref = decoder_reference(codeword, mlp1_params, mlp2_params)
    err = float(jnp.max(jnp.abs(out - ref)))
    assert err < 5e-2, err

    print("KERNEL_OK")
</pallas_src>

<mosaic_0001>
module attributes {stable_mosaic.version = 11 : i64} {
  func.func @decoder_kernel(%arg0: i32, %arg1: i32, %arg2: memref<256x512xbf16, #tpu.memory_space<vmem>>, %arg3: memref<1x256x1xf32, #tpu.memory_space<vmem>>, %arg4: memref<1x256x1xf32, #tpu.memory_space<vmem>>, %arg5: memref<256x8xf32, #tpu.memory_space<vmem>>, %arg6: memref<256x256xbf16, #tpu.memory_space<vmem>>, %arg7: memref<128x128xbf16, #tpu.memory_space<vmem>>, %arg8: memref<64x64xbf16, #tpu.memory_space<vmem>>, %arg9: memref<8x32xbf16, #tpu.memory_space<vmem>>, %arg10: memref<8x32xbf16, #tpu.memory_space<vmem>>, %arg11: memref<464x1xf32, #tpu.memory_space<vmem>>, %arg12: memref<1x8x512xf32, #tpu.memory_space<vmem>>) attributes {dimension_semantics = [#tpu.dimension_semantics<parallel>, #tpu.dimension_semantics<parallel>], iteration_bounds = array<i64: 2, 2>, scalar_prefetch = 0 : i64, scratch_operands = 0 : i64, tpu.core_type = #tpu.core_type<tc>, window_params = [{transform_indices = @transform_0, window_bounds = array<i64: 256, 512>}, {transform_indices = @transform_1, window_bounds = array<i64: 1, 256, 1>}, {transform_indices = @transform_2, window_bounds = array<i64: 1, 256, 1>}, {pipeline_mode = #tpu.pipeline_mode<synchronous>, transform_indices = @transform_3, window_bounds = array<i64: 256, 8>}, {pipeline_mode = #tpu.pipeline_mode<synchronous>, transform_indices = @transform_4, window_bounds = array<i64: 256, 256>}, {pipeline_mode = #tpu.pipeline_mode<synchronous>, transform_indices = @transform_5, window_bounds = array<i64: 128, 128>}, {pipeline_mode = #tpu.pipeline_mode<synchronous>, transform_indices = @transform_6, window_bounds = array<i64: 64, 64>}, {pipeline_mode = #tpu.pipeline_mode<synchronous>, transform_indices = @transform_7, window_bounds = array<i64: 8, 32>}, {pipeline_mode = #tpu.pipeline_mode<synchronous>, transform_indices = @transform_8, window_bounds = array<i64: 8, 32>}, {pipeline_mode = #tpu.pipeline_mode<synchronous>, transform_indices = @transform_9, window_bounds = array<i64: 464, 1>}, {transform_indices = @transform_10, window_bounds = array<i64: 1, 8, 512>}]} {
    %c0 = arith.constant 0 : index
    %c0_0 = arith.constant 0 : index
    %0 = vector.load %arg2[%c0, %c0_0] : memref<256x512xbf16, #tpu.memory_space<vmem>>, vector<256x512xbf16>
    %1 = arith.extf %0 : vector<256x512xbf16> to vector<256x512xf32>
    %c0_1 = arith.constant 0 : index
    %c0_2 = arith.constant 0 : index
    %c0_3 = arith.constant 0 : index
    %2 = vector.load %arg3[%c0_1, %c0_2, %c0_3] : memref<1x256x1xf32, #tpu.memory_space<vmem>>, vector<1x256x1xf32>
    %3 = vector.shape_cast %2 : vector<1x256x1xf32> to vector<256x1xf32>
    %4 = vector.broadcast %3 : vector<256x1xf32> to vector<256x512xf32>
    %5 = arith.addf %1, %4 : vector<256x512xf32>
    %cst = arith.constant 0.000000e+00 : f32
    %6 = vector.broadcast %cst : f32 to vector<256x512xf32>
    %7 = arith.maximumf %5, %6 : vector<256x512xf32>
    %8 = arith.truncf %7 : vector<256x512xf32> to vector<256x512xbf16>
    %c0_4 = arith.constant 0 : index
    %c0_5 = arith.constant 0 : index
    %9 = vector.load %arg6[%c0_4, %c0_5] : memref<256x256xbf16, #tpu.memory_space<vmem>>, vector<128x256xbf16>
    %cst_6 = arith.constant dense<0.000000e+00> : vector<128x512xf32>
    %10 = tpu.matmul %9, %8, %cst_6 {dimension_numbers = #tpu.dot_dimension_numbers<[1], [0], [0], [1], [0, 0, 1, 1], [], []>} : vector<128x256xbf16>, vector<256x512xbf16>, vector<128x512xf32> -> vector<128x512xf32>
    %c0_7 = arith.constant 0 : index
    %c0_8 = arith.constant 0 : index
    %11 = vector.load %arg11[%c0_7, %c0_8] : memref<464x1xf32, #tpu.memory_space<vmem>>, vector<128x1xf32>
    %12 = vector.broadcast %11 : vector<128x1xf32> to vector<128x512xf32>
    %13 = arith.addf %10, %12 : vector<128x512xf32>
    %cst_9 = arith.constant 0.000000e+00 : f32
    %14 = vector.broadcast %cst_9 : f32 to vector<128x512xf32>
    %15 = arith.maximumf %13, %14 : vector<128x512xf32>
    %16 = arith.truncf %15 : vector<128x512xf32> to vector<128x512xbf16>
    %c0_10 = arith.constant 0 : index
    %c0_11 = arith.constant 0 : index
    %17 = vector.load %arg7[%c0_10, %c0_11] : memref<128x128xbf16, #tpu.memory_space<vmem>>, vector<64x128xbf16>
    %cst_12 = arith.constant dense<0.000000e+00> : vector<64x512xf32>
    %18 = tpu.matmul %17, %16, %cst_12 {dimension_numbers = #tpu.dot_dimension_numbers<[1], [0], [0], [1], [0, 0, 1, 1], [], []>} : vector<64x128xbf16>, vector<128x512xbf16>, vector<64x512xf32> -> vector<64x512xf32>
    %c128 = arith.constant 128 : index
    %c0_13 = arith.constant 0 : index
    %19 = vector.load %arg11[%c128, %c0_13] : memref<464x1xf32, #tpu.memory_space<vmem>>, vector<64x1xf32>
    %20 = vector.broadcast %19 : vector<64x1xf32> to vector<64x512xf32>
    %21 = arith.addf %18, %20 : vector<64x512xf32>
    %cst_14 = arith.constant 0.000000e+00 : f32
    %22 = vector.broadcast %cst_14 : f32 to vector<64x512xf32>
    %23 = arith.maximumf %21, %22 : vector<64x512xf32>
    %24 = arith.truncf %23 : vector<64x512xf32> to vector<64x512xbf16>
    %c0_15 = arith.constant 0 : index
    %c0_16 = arith.constant 0 : index
    %25 = vector.load %arg8[%c0_15, %c0_16] : memref<64x64xbf16, #tpu.memory_space<vmem>>, vector<32x64xbf16>
    %cst_17 = arith.constant dense<0.000000e+00> : vector<32x512xf32>
    %26 = tpu.matmul %25, %24, %cst_17 {dimension_numbers = #tpu.dot_dimension_numbers<[1], [0], [0], [1], [0, 0, 1, 1], [], []>} : vector<32x64xbf16>, vector<64x512xbf16>, vector<32x512xf32> -> vector<32x512xf32>
    %c192 = arith.constant 192 : index
    %c0_18 = arith.constant 0 : index
    %27 = vector.load %arg11[%c192, %c0_18] : memref<464x1xf32, #tpu.memory_space<vmem>>, vector<32x1xf32>
    %28 = vector.broadcast %27 : vector<32x1xf32> to vector<32x512xf32>
    %29 = arith.addf %26, %28 : vector<32x512xf32>
    %cst_19 = arith.constant 0.000000e+00 : f32
    %30 = vector.broadcast %cst_19 : f32 to vector<32x512xf32>
    %31 = arith.maximumf %29, %30 : vector<32x512xf32>
    %32 = arith.truncf %31 : vector<32x512xf32> to vector<32x512xbf16>
    %c0_20 = arith.constant 0 : index
    %c0_21 = arith.constant 0 : index
    %33 = vector.load %arg9[%c0_20, %c0_21] : memref<8x32xbf16, #tpu.memory_space<vmem>>, vector<8x32xbf16>
    %cst_22 = arith.constant dense<0.000000e+00> : vector<8x512xf32>
    %34 = tpu.matmul %33, %32, %cst_22 {dimension_numbers = #tpu.dot_dimension_numbers<[1], [0], [0], [1], [0, 0, 1, 1], [], []>} : vector<8x32xbf16>, vector<32x512xbf16>, vector<8x512xf32> -> vector<8x512xf32>
    %c224 = arith.constant 224 : index
    %c0_23 = arith.constant 0 : index
    %35 = vector.load %arg11[%c224, %c0_23] : memref<464x1xf32, #tpu.memory_space<vmem>>, vector<8x1xf32>
    %36 = vector.broadcast %35 : vector<8x1xf32> to vector<8x512xf32>
    %37 = arith.addf %34, %36 : vector<8x512xf32>
    %c0_24 = arith.constant 0 : index
    %c0_25 = arith.constant 0 : index
    %c0_26 = arith.constant 0 : index
    %38 = vector.load %arg4[%c0_24, %c0_25, %c0_26] : memref<1x256x1xf32, #tpu.memory_space<vmem>>, vector<1x256x1xf32>
    %39 = vector.shape_cast %38 : vector<1x256x1xf32> to vector<256x1xf32>
    %c0_27 = arith.constant 0 : index
    %c0_28 = arith.constant 0 : index
    %40 = vector.load %arg5[%c0_27, %c0_28] : memref<256x8xf32, #tpu.memory_space<vmem>>, vector<256x8xf32>
    %cst_29 = arith.constant dense<0.000000e+00> : vector<256x512xf32>
    %41 = tpu.matmul %40, %37, %cst_29 {dimension_numbers = #tpu.dot_dimension_numbers<[1], [0], [0], [1], [0, 0, 1, 1], [], []>} : vector<256x8xf32>, vector<8x512xf32>, vector<256x512xf32> -> vector<256x512xf32>
    %42 = vector.broadcast %39 : vector<256x1xf32> to vector<256x512xf32>
    %43 = arith.addf %42, %41 : vector<256x512xf32>
    %cst_30 = arith.constant 0.000000e+00 : f32
    %44 = vector.broadcast %cst_30 : f32 to vector<256x512xf32>
    %45 = arith.maximumf %43, %44 : vector<256x512xf32>
    %46 = arith.truncf %45 : vector<256x512xf32> to vector<256x512xbf16>
    %c128_31 = arith.constant 128 : index
    %c0_32 = arith.constant 0 : index
    %47 = vector.load %arg6[%c128_31, %c0_32] : memref<256x256xbf16, #tpu.memory_space<vmem>>, vector<128x256xbf16>
    %cst_33 = arith.constant dense<0.000000e+00> : vector<128x512xf32>
    %48 = tpu.matmul %47, %46, %cst_33 {dimension_numbers = #tpu.dot_dimension_numbers<[1], [0], [0], [1], [0, 0, 1, 1], [], []>} : vector<128x256xbf16>, vector<256x512xbf16>, vector<128x512xf32> -> vector<128x512xf32>
    %c232 = arith.constant 232 : index
    %c0_34 = arith.constant 0 : index
    %49 = vector.load %arg11[%c232, %c0_34] : memref<464x1xf32, #tpu.memory_space<vmem>>, vector<128x1xf32>
    %50 = vector.broadcast %49 : vector<128x1xf32> to vector<128x512xf32>
    %51 = arith.addf %48, %50 : vector<128x512xf32>
    %cst_35 = arith.constant 0.000000e+00 : f32
    %52 = vector.broadcast %cst_35 : f32 to vector<128x512xf32>
    %53 = arith.maximumf %51, %52 : vector<128x512xf32>
    %54 = arith.truncf %53 : vector<128x512xf32> to vector<128x512xbf16>
    %c64 = arith.constant 64 : index
    %c0_36 = arith.constant 0 : index
    %55 = vector.load %arg7[%c64, %c0_36] : memref<128x128xbf16, #tpu.memory_space<vmem>>, vector<64x128xbf16>
    %cst_37 = arith.constant dense<0.000000e+00> : vector<64x512xf32>
    %56 = tpu.matmul %55, %54, %cst_37 {dimension_numbers = #tpu.dot_dimension_numbers<[1], [0], [0], [1], [0, 0, 1, 1], [], []>} : vector<64x128xbf16>, vector<128x512xbf16>, vector<64x512xf32> -> vector<64x512xf32>
    %c360 = arith.constant 360 : index
    %c0_38 = arith.constant 0 : index
    %57 = vector.load %arg11[%c360, %c0_38] : memref<464x1xf32, #tpu.memory_space<vmem>>, vector<64x1xf32>
    %58 = vector.broadcast %57 : vector<64x1xf32> to vector<64x512xf32>
    %59 = arith.addf %56, %58 : vector<64x512xf32>
    %cst_39 = arith.constant 0.000000e+00 : f32
    %60 = vector.broadcast %cst_39 : f32 to vector<64x512xf32>
    %61 = arith.maximumf %59, %60 : vector<64x512xf32>
    %62 = arith.truncf %61 : vector<64x512xf32> to vector<64x512xbf16>
    %c32 = arith.constant 32 : index
    %c0_40 = arith.constant 0 : index
    %63 = vector.load %arg8[%c32, %c0_40] : memref<64x64xbf16, #tpu.memory_space<vmem>>, vector<32x64xbf16>
    %cst_41 = arith.constant dense<0.000000e+00> : vector<32x512xf32>
    %64 = tpu.matmul %63, %62, %cst_41 {dimension_numbers = #tpu.dot_dimension_numbers<[1], [0], [0], [1], [0, 0, 1, 1], [], []>} : vector<32x64xbf16>, vector<64x512xbf16>, vector<32x512xf32> -> vector<32x512xf32>
    %c424 = arith.constant 424 : index
    %c0_42 = arith.constant 0 : index
    %65 = vector.load %arg11[%c424, %c0_42] : memref<464x1xf32, #tpu.memory_space<vmem>>, vector<32x1xf32>
    %66 = vector.broadcast %65 : vector<32x1xf32> to vector<32x512xf32>
    %67 = arith.addf %64, %66 : vector<32x512xf32>
    %cst_43 = arith.constant 0.000000e+00 : f32
    %68 = vector.broadcast %cst_43 : f32 to vector<32x512xf32>
    %69 = arith.maximumf %67, %68 : vector<32x512xf32>
    %70 = arith.truncf %69 : vector<32x512xf32> to vector<32x512xbf16>
    %c0_44 = arith.constant 0 : index
    %c0_45 = arith.constant 0 : index
    %71 = vector.load %arg10[%c0_44, %c0_45] : memref<8x32xbf16, #tpu.memory_space<vmem>>, vector<8x32xbf16>
    %cst_46 = arith.constant dense<0.000000e+00> : vector<8x512xf32>
    %72 = tpu.matmul %71, %70, %cst_46 {dimension_numbers = #tpu.dot_dimension_numbers<[1], [0], [0], [1], [0, 0, 1, 1], [], []>} : vector<8x32xbf16>, vector<32x512xbf16>, vector<8x512xf32> -> vector<8x512xf32>
    %c456 = arith.constant 456 : index
    %c0_47 = arith.constant 0 : index
    %73 = vector.load %arg11[%c456, %c0_47] : memref<464x1xf32, #tpu.memory_space<vmem>>, vector<8x1xf32>
    %74 = vector.broadcast %73 : vector<8x1xf32> to vector<8x512xf32>
    %75 = arith.addf %72, %74 : vector<8x512xf32>
    %c0_48 = arith.constant 0 : index
    %c0_49 = arith.constant 0 : index
    %c0_50 = arith.constant 0 : index
    %76 = vector.load %arg12[%c0_48, %c0_49, %c0_50] : memref<1x8x512xf32, #tpu.memory_space<vmem>>, vector<1x8x512xf32>
    %77 = vector.shape_cast %76 : vector<1x8x512xf32> to vector<8x512xf32>
    %78 = vector.shape_cast %75 : vector<8x512xf32> to vector<1x8x512xf32>
    tpu.vector_store %arg12[%c0_48, %c0_49, %c0_50], %78 {strides = array<i32>} : memref<1x8x512xf32, #tpu.memory_space<vmem>>, vector<1x8x512xf32>,
    return
  }
  func.func @transform_0(%arg0: i32, %arg1: i32) -> (i32, i32) {
    %c0_i32 = arith.constant 0 : i32
    %c0_i32_0 = arith.constant 0 : i32
    return %c0_i32, %arg1 : i32, i32
  }
  func.func @transform_1(%arg0: i32, %arg1: i32) -> (i32, i32, i32) {
    %c0_i32 = arith.constant 0 : i32
    %c0_i32_0 = arith.constant 0 : i32
    %c0_i32_1 = arith.constant 0 : i32
    return %arg0, %c0_i32, %c0_i32_0 : i32, i32, i32
  }
  func.func @transform_2(%arg0: i32, %arg1: i32) -> (i32, i32, i32) {
    %c0_i32 = arith.constant 0 : i32
    %c0_i32_0 = arith.constant 0 : i32
    %c0_i32_1 = arith.constant 0 : i32
    return %arg0, %c0_i32, %c0_i32_0 : i32, i32, i32
  }
  func.func @transform_3(%arg0: i32, %arg1: i32) -> (i32, i32) {
    %c0_i32 = arith.constant 0 : i32
    %c0_i32_0 = arith.constant 0 : i32
    %c0_i32_1 = arith.constant 0 : i32
    return %c0_i32, %c0_i32_0 : i32, i32
  }
  func.func @transform_4(%arg0: i32, %arg1: i32) -> (i32, i32) {
    %c0_i32 = arith.constant 0 : i32
    %c0_i32_0 = arith.constant 0 : i32
    %c0_i32_1 = arith.constant 0 : i32
    return %c0_i32, %c0_i32_0 : i32, i32
  }
  func.func @transform_5(%arg0: i32, %arg1: i32) -> (i32, i32) {
    %c0_i32 = arith.constant 0 : i32
    %c0_i32_0 = arith.constant 0 : i32
    %c0_i32_1 = arith.constant 0 : i32
    return %c0_i32, %c0_i32_0 : i32, i32
  }
  func.func @transform_6(%arg0: i32, %arg1: i32) -> (i32, i32) {
    %c0_i32 = arith.constant 0 : i32
    %c0_i32_0 = arith.constant 0 : i32
    %c0_i32_1 = arith.constant 0 : i32
    return %c0_i32, %c0_i32_0 : i32, i32
  }
  func.func @transform_7(%arg0: i32, %arg1: i32) -> (i32, i32) {
    %c0_i32 = arith.constant 0 : i32
    %c0_i32_0 = arith.constant 0 : i32
    %c0_i32_1 = arith.constant 0 : i32
    return %c0_i32, %c0_i32_0 : i32, i32
  }
  func.func @transform_8(%arg0: i32, %arg1: i32) -> (i32, i32) {
    %c0_i32 = arith.constant 0 : i32
    %c0_i32_0 = arith.constant 0 : i32
    %c0_i32_1 = arith.constant 0 : i32
    return %c0_i32, %c0_i32_0 : i32, i32
  }
  func.func @transform_9(%arg0: i32, %arg1: i32) -> (i32, i32) {
    %c0_i32 = arith.constant 0 : i32
    %c0_i32_0 = arith.constant 0 : i32
    %c0_i32_1 = arith.constant 0 : i32
    return %c0_i32, %c0_i32_0 : i32, i32
  }
  func.func @transform_10(%arg0: i32, %arg1: i32) -> (i32, i32, i32) {
    %c0_i32 = arith.constant 0 : i32
    %c0_i32_0 = arith.constant 0 : i32
    return %arg0, %c0_i32, %arg1 : i32, i32, i32
  }
}

</mosaic_0001>

<bundles_post_ra>
// kernel: decoder_forward.1
= control target key start
LH: loop header
LB: loop body
LE: loop exit
PB: predicated region body
PF: predicated region fallthrough
CT: control target
= control target key end

     0   :  { %s6651_s0 = inlined_call_operand.vmem [shape: bf16[256,1024], index: 0, kind: input, shape index: {}]   ;;  %s6652_s1 = inlined_call_operand.vmem [shape: f32[2,256,1], index: 1, kind: input, shape index: {}]   ;;  %s6653_s2 = inlined_call_operand.vmem [shape: f32[2,256,1], index: 2, kind: input, shape index: {}]   ;;  %s6654_s3 = inlined_call_operand.vmem [shape: f32[256,8], index: 3, kind: input, shape index: {}]   ;;  %s6655_s4 = inlined_call_operand.vmem [shape: bf16[256,256], index: 4, kind: input, shape index: {}]   ;;  %s6656_s5 = inlined_call_operand.vmem [shape: bf16[128,128], index: 5, kind: input, shape index: {}]   ;;  %s6657_s6 = inlined_call_operand.vmem [shape: bf16[64,64], index: 6, kind: input, shape index: {}]   ;;  %s6658_s7 = inlined_call_operand.vmem [shape: bf16[8,32], index: 7, kind: input, shape index: {}]   ;;  %s6659_s8 = inlined_call_operand.vmem [shape: bf16[8,32], index: 8, kind: input, shape index: {}]   ;;  %s6660_s9 = inlined_call_operand.vmem [shape: f32[464,1], index: 9, kind: input, shape index: {}]   ;;  %s6661_s10 = inlined_call_operand.vmem [shape: f32[2,8,1024], index: 10, kind: output, shape index: {}]  }
   0x1   :  { %6715 = sst [smem:[#allocation28_spill]] %s6651_s0 }
   0x2   :  { %6716 = sst [smem:[#allocation29_spill]] %s6652_s1 }
   0x3   :  { %s5032_s13 = smov 0   ;;  %s5034_s14 = smov 0  }
   0x4   :  { %s5036_s15 = smov 0   ;;  %s5038_s16 = smov 0  }
   0x5   :  { %s5040_s17 = smov 0   ;;  %s5042_s18 = smov 0  }
   0x6   :  { %s5044_s19 = smov 0  }
   0x7 LB: > { %s29_s20 = sadd.s32 1, %s4965_s17  ;;  %s32_s21 = sadd.s32 1, %s4969_s18  ;;  %s4973_s19 = sphi %s5044_s19, %s20_s19   ;;  %s4969_s18 = sphi %s5042_s18, %s6899_s18   ;;  %s4965_s17 = sphi %s5040_s17, %s6898_s17   ;;  %s4961_s16 = sphi %s5038_s16, %s6897_s16   ;;  %s4957_s15 = sphi %s5036_s15, %s6896_s15   ;;  %s4953_s14 = sphi %s5034_s14, %s6895_s14   ;;  %s4949_s13 = sphi %s5032_s13, %s6894_s13  }
   0x8   : > { %p30_p0 = scmp.ge.s32.totalorder %s29_s20, 2  ;;  %s39_s22 = sadd.s32 1, %s4953_s14 }
   0x9   : > { %p46_p1 = scmp.ne.s32.totalorder %s4953_s14, %s4949_s13  ;;  %p47_p2 = scmp.eq.s32.totalorder %s4973_s19, 0 }
   0xa   : > { %s6901_s20 = smov (%p30_p0, %s29_s20), 0  ;;  %s6903_s21 = smov (!%p30_p0, %s32_s21), %s4969_s18 }
   0xb   : > { %s36_s23 = ssub.s32 %s4965_s17, %s6901_s20  ;;  %p48_p3 = por %p47_p2, %p46_p1 }
   0xc   : > { %p34_p4 = scmp.ge.s32.totalorder %s6903_s21, 2  ;;  %p37_p5 = scmp.eq.s32.totalorder %s36_s23, 0 }
   0xd   : > { %p4661_p6 = scmp.ge.s32.totalorder %s4973_s19, 4 }
   0xe   : > { %s6905_s21 = smov (%p34_p4, %s6903_s21), 0 }
   0xf   : > { %s5081_s24 = scalar_select %p37_p5, %s4953_s14, %s39_s22  }
  0x10   : > { %320 = sbr.rel (%p4661_p6) target bundleno = 65 (0x41), region = 44 }
  0x17   : > { %323 = sbr.rel (!%p48_p3) target bundleno = 65 (0x41), region = 48  ;;  %s325_s25 = sand.u32 (%p48_p3), 1, %s4953_s14  }
  0x18   : > { %s4796_s26 = sshll.u32 (%p48_p3), %s4965_s17, 4  ;;  %s4662_s27 = sshll.u32 (%p48_p3), %s325_s25, 9 }
  0x19   : > { %s6717_s0 = sld [smem:[#allocation28_spill]] (%p48_p3)  ;;  %s5094_s11 = scalar_lea.vmem (%p48_p3), [#allocation2], %s4662_s27 }
  0x1f   : > { %s5089_s30 = scalar_lea.vmem %s6717_s0, %s4796_s26 }
  0x20   : > { %v343_v0 = vld [vmem:[%s5089_s30] sm:$0xff]  ;;  %v345_v1 = vld [vmem:[%s5089_s30 + $0x8] sm:$0xff] }
  0x21   : > { %v347_v2 = vld [vmem:[%s5089_s30 + $0x20] sm:$0xff]  ;;  %344 = vst [vmem:[%s5094_s11] sm:$0xff] %v343_v0  ;;  %346 = vst [vmem:[%s5094_s11 + $0x8] sm:$0xff] %v345_v1  ;;  %v349_v3 = vld [vmem:[%s5089_s30 + $0x28] sm:$0xff] }
  0x22   : > { %348 = vst [vmem:[%s5094_s11 + $0x10] sm:$0xff] %v347_v2  ;;  %v351_v4 = vld [vmem:[%s5089_s30 + $0x40] sm:$0xff]  ;;  %v353_v5 = vld [vmem:[%s5089_s30 + $0x48] sm:$0xff]  ;;  %350 = vst [vmem:[%s5094_s11 + $0x18] sm:$0xff] %v349_v3 }
  0x23   : > { %352 = vst [vmem:[%s5094_s11 + $0x20] sm:$0xff] %v351_v4  ;;  %354 = vst [vmem:[%s5094_s11 + $0x28] sm:$0xff] %v353_v5  ;;  %v355_v6 = vld [vmem:[%s5089_s30 + $0x60] sm:$0xff]  ;;  %v357_v7 = vld [vmem:[%s5089_s30 + $0x68] sm:$0xff] }
  0x24   : > { %v359_v8 = vld [vmem:[%s5089_s30 + $0x80] sm:$0xff]  ;;  %356 = vst [vmem:[%s5094_s11 + $0x30] sm:$0xff] %v355_v6  ;;  %358 = vst [vmem:[%s5094_s11 + $0x38] sm:$0xff] %v357_v7  ;;  %v361_v9 = vld [vmem:[%s5089_s30 + $0x88] sm:$0xff] }
  0x25   : > { %360 = vst [vmem:[%s5094_s11 + $0x40] sm:$0xff] %v359_v8  ;;  %v363_v10 = vld [vmem:[%s5089_s30 + $0xa0] sm:$0xff]  ;;  %v365_v11 = vld [vmem:[%s5089_s30 + $0xa8] sm:$0xff]  ;;  %362 = vst [vmem:[%s5094_s11 + $0x48] sm:$0xff] %v361_v9 }
  0x26   : > { %364 = vst [vmem:[%s5094_s11 + $0x50] sm:$0xff] %v363_v10  ;;  %366 = vst [vmem:[%s5094_s11 + $0x58] sm:$0xff] %v365_v11  ;;  %v367_v12 = vld [vmem:[%s5089_s30 + $0xc0] sm:$0xff]  ;;  %v369_v13 = vld [vmem:[%s5089_s30 + $0xc8] sm:$0xff] }
  0x27   : > { %v371_v14 = vld [vmem:[%s5089_s30 + $0xe0] sm:$0xff]  ;;  %368 = vst [vmem:[%s5094_s11 + $0x60] sm:$0xff] %v367_v12  ;;  %370 = vst [vmem:[%s5094_s11 + $0x68] sm:$0xff] %v369_v13  ;;  %v373_v15 = vld [vmem:[%s5089_s30 + $0xe8] sm:$0xff] }
  0x28   : > { %372 = vst [vmem:[%s5094_s11 + $0x70] sm:$0xff] %v371_v14  ;;  %v375_v16 = vld [vmem:[%s5089_s30 + $0x100] sm:$0xff]  ;;  %v377_v17 = vld [vmem:[%s5089_s30 + $0x108] sm:$0xff]  ;;  %374 = vst [vmem:[%s5094_s11 + $0x78] sm:$0xff] %v373_v15 }
  0x29   : > { %376 = vst [vmem:[%s5094_s11 + $0x80] sm:$0xff] %v375_v16  ;;  %378 = vst [vmem:[%s5094_s11 + $0x88] sm:$0xff] %v377_v17  ;;  %v379_v18 = vld [vmem:[%s5089_s30 + $0x120] sm:$0xff]  ;;  %v381_v19 = vld [vmem:[%s5089_s30 + $0x128] sm:$0xff] }
  0x2a   : > { %v383_v20 = vld [vmem:[%s5089_s30 + $0x140] sm:$0xff]  ;;  %380 = vst [vmem:[%s5094_s11 + $0x90] sm:$0xff] %v379_v18  ;;  %382 = vst [vmem:[%s5094_s11 + $0x98] sm:$0xff] %v381_v19  ;;  %v385_v21 = vld [vmem:[%s5089_s30 + $0x148] sm:$0xff] }
  0x2b   : > { %384 = vst [vmem:[%s5094_s11 + $0xa0] sm:$0xff] %v383_v20  ;;  %v387_v22 = vld [vmem:[%s5089_s30 + $0x160] sm:$0xff]  ;;  %v389_v23 = vld [vmem:[%s5089_s30 + $0x168] sm:$0xff]  ;;  %386 = vst [vmem:[%s5094_s11 + $0xa8] sm:$0xff] %v385_v21 }
  0x2c   : > { %388 = vst [vmem:[%s5094_s11 + $0xb0] sm:$0xff] %v387_v22  ;;  %390 = vst [vmem:[%s5094_s11 + $0xb8] sm:$0xff] %v389_v23  ;;  %v391_v24 = vld [vmem:[%s5089_s30 + $0x180] sm:$0xff]  ;;  %v393_v25 = vld [vmem:[%s5089_s30 + $0x188] sm:$0xff] }
  0x2d   : > { %v395_v26 = vld [vmem:[%s5089_s30 + $0x1a0] sm:$0xff]  ;;  %392 = vst [vmem:[%s5094_s11 + $0xc0] sm:$0xff] %v391_v24  ;;  %394 = vst [vmem:[%s5094_s11 + $0xc8] sm:$0xff] %v393_v25  ;;  %v397_v27 = vld [vmem:[%s5089_s30 + $0x1a8] sm:$0xff] }
  0x2e   : > { %396 = vst [vmem:[%s5094_s11 + $0xd0] sm:$0xff] %v395_v26  ;;  %v399_v28 = vld [vmem:[%s5089_s30 + $0x1c0] sm:$0xff]  ;;  %v401_v29 = vld [vmem:[%s5089_s30 + $0x1c8] sm:$0xff]  ;;  %398 = vst [vmem:[%s5094_s11 + $0xd8] sm:$0xff] %v397_v27 }
  0x2f   : > { %400 = vst [vmem:[%s5094_s11 + $0xe0] sm:$0xff] %v399_v28  ;;  %402 = vst [vmem:[%s5094_s11 + $0xe8] sm:$0xff] %v401_v29  ;;  %v403_v30 = vld [vmem:[%s5089_s30 + $0x1e0] sm:$0xff]  ;;  %v405_v31 = vld [vmem:[%s5089_s30 + $0x1e8] sm:$0xff] }
  0x30   : > { %v407_v32 = vld [vmem:[%s5089_s30 + $0x200] sm:$0xff]  ;;  %404 = vst [vmem:[%s5094_s11 + $0xf0] sm:$0xff] %v403_v30  ;;  %406 = vst [vmem:[%s5094_s11 + $0xf8] sm:$0xff] %v405_v31  ;;  %v409_v33 = vld [vmem:[%s5089_s30 + $0x208] sm:$0xff] }
  0x31   : > { %408 = vst [vmem:[%s5094_s11 + $0x100] sm:$0xff] %v407_v32  ;;  %v411_v34 = vld [vmem:[%s5089_s30 + $0x220] sm:$0xff]  ;;  %v413_v35 = vld [vmem:[%s5089_s30 + $0x228] sm:$0xff]  ;;  %410 = vst [vmem:[%s5094_s11 + $0x108] sm:$0xff] %v409_v33 }
  0x32   : > { %412 = vst [vmem:[%s5094_s11 + $0x110] sm:$0xff] %v411_v34  ;;  %414 = vst [vmem:[%s5094_s11 + $0x118] sm:$0xff] %v413_v35  ;;  %v415_v36 = vld [vmem:[%s5089_s30 + $0x240] sm:$0xff]  ;;  %v417_v37 = vld [vmem:[%s5089_s30 + $0x248] sm:$0xff] }
  0x33   : > { %v419_v38 = vld [vmem:[%s5089_s30 + $0x260] sm:$0xff]  ;;  %416 = vst [vmem:[%s5094_s11 + $0x120] sm:$0xff] %v415_v36  ;;  %418 = vst [vmem:[%s5094_s11 + $0x128] sm:$0xff] %v417_v37  ;;  %v421_v39 = vld [vmem:[%s5089_s30 + $0x268] sm:$0xff] }
  0x34   : > { %420 = vst [vmem:[%s5094_s11 + $0x130] sm:$0xff] %v419_v38  ;;  %v423_v40 = vld [vmem:[%s5089_s30 + $0x280] sm:$0xff]  ;;  %v425_v41 = vld [vmem:[%s5089_s30 + $0x288] sm:$0xff]  ;;  %422 = vst [vmem:[%s5094_s11 + $0x138] sm:$0xff] %v421_v39 }
  0x35   : > { %424 = vst [vmem:[%s5094_s11 + $0x140] sm:$0xff] %v423_v40  ;;  %426 = vst [vmem:[%s5094_s11 + $0x148] sm:$0xff] %v425_v41  ;;  %v427_v42 = vld [vmem:[%s5089_s30 + $0x2a0] sm:$0xff]  ;;  %v429_v43 = vld [vmem:[%s5089_s30 + $0x2a8] sm:$0xff] }
  0x36   : > { %v431_v44 = vld [vmem:[%s5089_s30 + $0x2c0] sm:$0xff]  ;;  %428 = vst [vmem:[%s5094_s11 + $0x150] sm:$0xff] %v427_v42  ;;  %430 = vst [vmem:[%s5094_s11 + $0x158] sm:$0xff] %v429_v43  ;;  %v433_v45 = vld [vmem:[%s5089_s30 + $0x2c8] sm:$0xff] }
  0x37   : > { %432 = vst [vmem:[%s5094_s11 + $0x160] sm:$0xff] %v431_v44  ;;  %v435_v46 = vld [vmem:[%s5089_s30 + $0x2e0] sm:$0xff]  ;;  %v437_v47 = vld [vmem:[%s5089_s30 + $0x2e8] sm:$0xff]  ;;  %434 = vst [vmem:[%s5094_s11 + $0x168] sm:$0xff] %v433_v45 }
  0x38   : > { %436 = vst [vmem:[%s5094_s11 + $0x170] sm:$0xff] %v435_v46  ;;  %438 = vst [vmem:[%s5094_s11 + $0x178] sm:$0xff] %v437_v47  ;;  %v439_v48 = vld [vmem:[%s5089_s30 + $0x300] sm:$0xff]  ;;  %v441_v49 = vld [vmem:[%s5089_s30 + $0x308] sm:$0xff] }
  0x39   : > { %v443_v50 = vld [vmem:[%s5089_s30 + $0x320] sm:$0xff]  ;;  %440 = vst [vmem:[%s5094_s11 + $0x180] sm:$0xff] %v439_v48  ;;  %442 = vst [vmem:[%s5094_s11 + $0x188] sm:$0xff] %v441_v49  ;;  %v445_v51 = vld [vmem:[%s5089_s30 + $0x328] sm:$0xff] }
  0x3a   : > { %444 = vst [vmem:[%s5094_s11 + $0x190] sm:$0xff] %v443_v50  ;;  %v447_v52 = vld [vmem:[%s5089_s30 + $0x340] sm:$0xff]  ;;  %v449_v53 = vld [vmem:[%s5089_s30 + $0x348] sm:$0xff]  ;;  %446 = vst [vmem:[%s5094_s11 + $0x198] sm:$0xff] %v445_v51 }
  0x3b   : > { %448 = vst [vmem:[%s5094_s11 + $0x1a0] sm:$0xff] %v447_v52  ;;  %450 = vst [vmem:[%s5094_s11 + $0x1a8] sm:$0xff] %v449_v53  ;;  %v451_v54 = vld [vmem:[%s5089_s30 + $0x360] sm:$0xff]  ;;  %v453_v55 = vld [vmem:[%s5089_s30 + $0x368] sm:$0xff] }
  0x3c   : > { %v455_v56 = vld [vmem:[%s5089_s30 + $0x380] sm:$0xff]  ;;  %452 = vst [vmem:[%s5094_s11 + $0x1b0] sm:$0xff] %v451_v54  ;;  %454 = vst [vmem:[%s5094_s11 + $0x1b8] sm:$0xff] %v453_v55  ;;  %v457_v57 = vld [vmem:[%s5089_s30 + $0x388] sm:$0xff] }
  0x3d   : > { %456 = vst [vmem:[%s5094_s11 + $0x1c0] sm:$0xff] %v455_v56  ;;  %v459_v58 = vld [vmem:[%s5089_s30 + $0x3a0] sm:$0xff]  ;;  %v461_v59 = vld [vmem:[%s5089_s30 + $0x3a8] sm:$0xff]  ;;  %458 = vst [vmem:[%s5094_s11 + $0x1c8] sm:$0xff] %v457_v57 }
  0x3e   : > { %460 = vst [vmem:[%s5094_s11 + $0x1d0] sm:$0xff] %v459_v58  ;;  %462 = vst [vmem:[%s5094_s11 + $0x1d8] sm:$0xff] %v461_v59  ;;  %v463_v60 = vld [vmem:[%s5089_s30 + $0x3c0] sm:$0xff]  ;;  %v465_v61 = vld [vmem:[%s5089_s30 + $0x3c8] sm:$0xff] }
  0x3f   : > { %v467_v62 = vld [vmem:[%s5089_s30 + $0x3e0] sm:$0xff]  ;;  %464 = vst [vmem:[%s5094_s11 + $0x1e0] sm:$0xff] %v463_v60  ;;  %466 = vst [vmem:[%s5094_s11 + $0x1e8] sm:$0xff] %v465_v61  ;;  %v469_v63 = vld [vmem:[%s5089_s30 + $0x3e8] sm:$0xff] }
  0x40   : > { %468 = vst [vmem:[%s5094_s11 + $0x1f0] sm:$0xff] %v467_v62  ;;  %470 = vst [vmem:[%s5094_s11 + $0x1f8] sm:$0xff] %v469_v63 }
  0x41 PF: > { %p4665_p7 = scmp.ge.s32.totalorder %s4973_s19, 1  ;;  %p491_p8 = scmp.lt.s32.totalorder %s4973_s19, 5 }
  0x43   : > { %p492_p9 = pnand %p4665_p7, %p491_p8 }
  0x45   : > { %495 = sbr.rel (%p492_p9) target bundleno = 2637 (0xa4d), region = 79 }
  0x4c   : > { %p550_p10 = scmp.lt.s32.totalorder %s4961_s16, 1  ;;  %v6663_v0 = vmov 0   ;;  %s6718_s1 = sld [smem:[#allocation29_spill]]  ;;  %v1292_v33 = vld [vmem:[%s6660_s9 + $0x8] sm:$0xff]  ;;  %v1291_v34 = vld [vmem:[%s6660_s9] sm:$0xff]  ;;  %v1294_v35 = vld [vmem:[%s6660_s9 + $0x18] sm:$0xff] }
  0x4d   : > { %4858 = vset.pattern.permute.xlu1 %v6663_v0  ;;  %4857 = vset.pattern.permute.xlu0 %v6663_v0  ;;  %v1293_v36 = vld [vmem:[%s6660_s9 + $0x10] sm:$0xff]  ;;  %v1296_v37 = vld [vmem:[%s6660_s9 + $0x28] sm:$0xff]  ;;  %v1295_v38 = vld [vmem:[%s6660_s9 + $0x20] sm:$0xff]  ;;  %s498_s23 = sand.u32 1, %s4949_s13   ;;  %vm2101_vm0 = vcmask 523264   ;;  %vm2245_vm1 = vcmask 261120  }
  0x4e   : > { %s6907_s16 = smov (!%p550_p10, %s4961_s16), 1  ;;  %v1298_v39 = vld [vmem:[%s6660_s9 + $0x38] sm:$0xff]  ;;  %v1297_v40 = vld [vmem:[%s6660_s9 + $0x30] sm:$0xff]  ;;  %v1300_v41 = vld [vmem:[%s6660_s9 + $0x48] sm:$0xff]  ;;  %vm2395_vm2 = vcmask 64512   ;;  %s4671_s27 = sshll.u32 %s4957_s15, 2 }
  0x4f   : > { %s6662_s12 = sshll.u32 %s6907_s16, 8  ;;  %v1299_v42 = vld [vmem:[%s6660_s9 + $0x40] sm:$0xff]  ;;  %v1302_v43 = vld [vmem:[%s6660_s9 + $0x58] sm:$0xff]  ;;  %v1301_v44 = vld [vmem:[%s6660_s9 + $0x50] sm:$0xff]  ;;  %s6719_s13 = sshll.u32 %s6907_s16, 8 }
  0x50   : > { %v1304_v45 = vld [vmem:[%s6660_s9 + $0x68] sm:$0xff]  ;;  %v1303_v46 = vld [vmem:[%s6660_s9 + $0x60] sm:$0xff]  ;;  %v1306_v48 = vld [vmem:[%s6660_s9 + $0x78] sm:$0xff]  ;;  %s5530_s22 = scalar_lea.vmem %s6653_s2, %s6719_s13  ;;  %p563_p11 = scmp.lt.s32.totalorder %s4671_s27, 7 }
  0x51   : > { %v4861_v47 = vld [vmem:[%s6655_s4 + $0x4] ss:$8 sps:$4 sm:$0xff]   ;;  %v1305_v49 = vld [vmem:[%s6660_s9 + $0x70] sm:$0xff]  ;;  %v1800_v56 = vld [vmem:[%s6660_s9 + $0x98] sm:$0xff]  ;;  %s4672_s28 = sshll.u32 %s6907_s16, 3 }
  0x52   : > { %s5235_s25 = scalar_lea.vmem %s6718_s1, %s6662_s12  ;;  %1499 = vmatprep.mubr.bf16.mxu0 %v4861_v47  ;;  %1612 = vmatprep.mubr.bf16.mxu1 %v4861_v47  ;;  %v1798_v50 = vld [vmem:[%s6660_s9 + $0x88] sm:$0xff]  ;;  %v1797_v51 = vld [vmem:[%s6660_s9 + $0x80] sm:$0xff]  ;;  %v1799_v59 = vld [vmem:[%s6660_s9 + $0x90] sm:$0xff]  ;;  %s6909_s27 = smov (!%p563_p11, %s4671_s27), 7 }
  0x53   : > { %v765_v1 = vld [vmem:[%s5235_s25 + $0x10] sm:$0xff]  ;;  %v763_v2 = vld [vmem:[%s5235_s25] sm:$0xff]  ;;  %v766_v3 = vld [vmem:[%s5235_s25 + $0x18] sm:$0xff]  ;;  %s566_s29 = sadd.s32 %s4672_s28, %s6909_s27 }
  0x54   : > { %807 = vperm.xlu1 %4858, %v765_v1   ;;  %797 = vperm.xlu0 %4857, %v763_v2   ;;  %v764_v4 = vld [vmem:[%s5235_s25 + $0x8] sm:$0xff]  ;;  %v767_v6 = vld [vmem:[%s5235_s25 + $0x20] sm:$0xff]  ;;  %v770_v7 = vld [vmem:[%s5235_s25 + $0x38] sm:$0xff]  ;;  %s4673_s13 = sshll.u32 %s566_s29, 3 }
  0x55   : > { %v768_v5 = vld [vmem:[%s5235_s25 + $0x28] sm:$0xff]  ;;  %v769_v8 = vld [vmem:[%s5235_s25 + $0x30] sm:$0xff]  ;;  %v771_v10 = vld [vmem:[%s5235_s25 + $0x40] sm:$0xff] }
  0x56   : > { %v772_v9 = vld [vmem:[%s5235_s25 + $0x48] sm:$0xff]  ;;  %v774_v11 = vld [vmem:[%s5235_s25 + $0x58] sm:$0xff]  ;;  %v773_v12 = vld [vmem:[%s5235_s25 + $0x50] sm:$0xff] }
  0x57   : > { %v776_v13 = vld [vmem:[%s5235_s25 + $0x68] sm:$0xff]  ;;  %v775_v14 = vld [vmem:[%s5235_s25 + $0x60] sm:$0xff]  ;;  %v778_v15 = vld [vmem:[%s5235_s25 + $0x78] sm:$0xff] }
  0x58   : > { %812 = vperm.xlu1 %4858, %v766_v3   ;;  %802 = vperm.xlu0 %4857, %v764_v4   ;;  %v777_v16 = vld [vmem:[%s5235_s25 + $0x70] sm:$0xff]  ;;  %v780_v17 = vld [vmem:[%s5235_s25 + $0x88] sm:$0xff]  ;;  %v779_v18 = vld [vmem:[%s5235_s25 + $0x80] sm:$0xff] }
  0x59   : > { %v782_v19 = vld [vmem:[%s5235_s25 + $0x98] sm:$0xff]  ;;  %v781_v20 = vld [vmem:[%s5235_s25 + $0x90] sm:$0xff]  ;;  %v784_v21 = vld [vmem:[%s5235_s25 + $0xa8] sm:$0xff] }
  0x5a   : > { %v783_v22 = vld [vmem:[%s5235_s25 + $0xa0] sm:$0xff]  ;;  %v786_v23 = vld [vmem:[%s5235_s25 + $0xb8] sm:$0xff]  ;;  %v785_v24 = vld [vmem:[%s5235_s25 + $0xb0] sm:$0xff] }
  0x5b   : > { %v788_v25 = vld [vmem:[%s5235_s25 + $0xc8] sm:$0xff]  ;;  %v787_v26 = vld [vmem:[%s5235_s25 + $0xc0] sm:$0xff]  ;;  %v790_v27 = vld [vmem:[%s5235_s25 + $0xd8] sm:$0xff] }
  0x5c   : > { %822 = vperm.xlu1 %4858, %v768_v5   ;;  %817 = vperm.xlu0 %4857, %v767_v6   ;;  %v789_v28 = vld [vmem:[%s5235_s25 + $0xd0] sm:$0xff]  ;;  %v792_v29 = vld [vmem:[%s5235_s25 + $0xe8] sm:$0xff]  ;;  %v791_v30 = vld [vmem:[%s5235_s25 + $0xe0] sm:$0xff] }
  0x5d   : > { %v794_v31 = vld [vmem:[%s5235_s25 + $0xf8] sm:$0xff]  ;;  %v793_v32 = vld [vmem:[%s5235_s25 + $0xf0] sm:$0xff]  ;;  %s4666_s25 = sshll.u32 %s498_s23, 9  ;;  %v2332_v3 = vld [vmem:[%s5530_s22 + $0x8] sm:$0xff] }
  0x5e   : > { %s5327_s12 = scalar_lea.vmem [#allocation2], %s4666_s25 }
  0x5f   : > { %v5330_v52 = vld [vmem:[%s5327_s12] sm:$0xff]  ;;  %v5333_v53 = vld [vmem:[%s5327_s12 + $0x10] sm:$0xff]  ;;  %v5336_v54 = vld [vmem:[%s5327_s12 + $0x8] sm:$0xff] }
  0x60   : > { %832 = vperm.xlu1 %4858, %v770_v7   ;;  %827 = vperm.xlu0 %4857, %v769_v8   ;;  %v5339_v55 = vld [vmem:[%s5327_s12 + $0x18] sm:$0xff]  ;;  %v5345_v57 = vld [vmem:[%s5327_s12 + $0x20] sm:$0xff]  ;;  %v5348_v58 = vld [vmem:[%s5327_s12 + $0x30] sm:$0xff] }
  0x61   : > { %v5356_v62 = vld [vmem:[%s5327_s12 + $0x28] sm:$0xff]  ;;  %v5359_v63 = vld [vmem:[%s5327_s12 + $0x38] sm:$0xff]  ;;  %v5366_v5 = vld [vmem:[%s5327_s12 + $0x40] sm:$0xff] }
  0x62   : > { %v5369_v6 = vld [vmem:[%s5327_s12 + $0x50] sm:$0xff]  ;;  %v5458_v47 = vld [vmem:[%s5327_s12 + $0xc0] sm:$0xff]  ;;  %v5497_v0 = vld [vmem:[%s5327_s12 + $0xf8] sm:$0xff] }
  0x63   : > { %v5578_v8 = vld [vmem:[%s5327_s12 + $0x140] sm:$0xff]  ;;  %v5581_v4 = vld [vmem:[%s5327_s12 + $0x150] sm:$0xff]  ;;  %v5617_v7 = vld [vmem:[%s5327_s12 + $0x1a8] sm:$0xff] }
  0x64   : > { %842 = vperm.xlu1 %4858, %v772_v9   ;;  %837 = vperm.xlu0 %4857, %v771_v10   ;;  %v5564_v10 = vld [vmem:[%s5327_s12 + $0x198] sm:$0xff]  ;;  %6728 = vst [vmem:[#allocation11_spill] sm:$0xff] %v5578_v8  ;;  %6729 = vst [vmem:[#allocation12_spill] sm:$0xff] %v5581_v4  ;;  %v5622_v2 = vld [vmem:[%s5327_s12 + $0x160] sm:$0xff]  ;;  %v6745_v4 = vunpack.c.h.bf16 %v5330_v52 }
  0x65   : > { %6725 = vst [vmem:[#allocation8_spill] sm:$0xff] %v5564_v10  ;;  %v5609_v9 = vld [vmem:[%s5327_s12 + $0x1b8] sm:$0xff]  ;;  %6735 = vst [vmem:[#allocation18_spill] sm:$0xff] %v5617_v7  ;;  %v5633_v1 = vld [vmem:[%s5327_s12 + $0x168] sm:$0xff] }
  0x66   : > { %6733 = vst [vmem:[#allocation16_spill] sm:$0xff] %v5609_v9  ;;  %6736 = vst [vmem:[#allocation19_spill] sm:$0xff] %v5622_v2  ;;  %v5653_v60 = vld [vmem:[%s5327_s12 + $0x1c0] sm:$0xff]  ;;  %v2334_v7 = vld [vmem:[%s5530_s22 + $0x18] sm:$0xff] }
  0x67   : > { %6738 = vst [vmem:[#allocation21_spill] sm:$0xff] %v5633_v1  ;;  %6742 = vst [vmem:[#allocation25_spill] sm:$0xff] %v5653_v60  ;;  %v2336_v1 = vld [vmem:[%s5530_s22 + $0x28] sm:$0xff] }
  0x68   : > { %852 = vperm.xlu1 %4858, %v774_v11   ;;  %847 = vperm.xlu0 %4857, %v773_v12   ;;  %v5376_v11 = vld [vmem:[%s5327_s12 + $0x48] sm:$0xff]  ;;  %v5379_v12 = vld [vmem:[%s5327_s12 + $0x58] sm:$0xff] }
  0x6c   : > { %862 = vperm.xlu1 %4858, %v776_v13   ;;  %857 = vperm.xlu0 %4857, %v775_v14   ;;  %v1802_v13 = vld [vmem:[%s6660_s9 + $0xa8] sm:$0xff]  ;;  %v5625_v14 = vld [vmem:[%s5327_s12 + $0x170] sm:$0xff] }
  0x6d   : > { %6737 = vst [vmem:[#allocation20_spill] sm:$0xff] %v5625_v14  ;;  %v6747_v14 = vunpack.c.l.bf16 %v5330_v52 }
  0x70   : > { %872 = vperm.xlu1 %4858, %v778_v15   ;;  %867 = vperm.xlu0 %4857, %v777_v16   ;;  %v5594_v15 = vld [vmem:[%s5327_s12 + $0x158] sm:$0xff] }
  0x71   : > { %6731 = vst [vmem:[#allocation14_spill] sm:$0xff] %v5594_v15  ;;  %v5636_v16 = vld [vmem:[%s5327_s12 + $0x178] sm:$0xff]  ;;  %v2335_v15 = vld [vmem:[%s5530_s22 + $0x20] sm:$0xff] }
  0x72   : > { %6739 = vst [vmem:[#allocation22_spill] sm:$0xff] %v5636_v16  ;;  %v6752_v16 = vunpack.c.l.bf16 %v5356_v62 }
  0x74   : > { %882 = vperm.xlu1 %4858, %v780_v17   ;;  %877 = vperm.xlu0 %4857, %v779_v18   ;;  %v5389_v18 = vld [vmem:[%s5327_s12 + $0x60] sm:$0xff]  ;;  %v5574_v17 = vld [vmem:[%s5327_s12 + $0x188] sm:$0xff] }
  0x75   : > { %6727 = vst [vmem:[#allocation10_spill] sm:$0xff] %v5574_v17 }
  0x78   : > { %892 = vperm.xlu1 %4858, %v782_v19   ;;  %887 = vperm.xlu0 %4857, %v781_v20   ;;  %v5392_v19 = vld [vmem:[%s5327_s12 + $0x70] sm:$0xff]  ;;  %v1801_v20 = vld [vmem:[%s6660_s9 + $0xa0] sm:$0xff] }
  0x7c   : > { %902 = vperm.xlu1 %4858, %v784_v21   ;;  %897 = vperm.xlu0 %4857, %v783_v22   ;;  %v5557_v22 = vld [vmem:[%s5327_s12 + $0x190] sm:$0xff]  ;;  %v5612_v21 = vld [vmem:[%s5327_s12 + $0x1a0] sm:$0xff] }
  0x7d   : > { %6724 = vst [vmem:[#allocation7_spill] sm:$0xff] %v5557_v22  ;;  %6734 = vst [vmem:[#allocation17_spill] sm:$0xff] %v5612_v21  ;;  %v5658_v21 = vld [vmem:[%s5327_s12 + $0x1c8] sm:$0xff] }
  0x7e   : > { %6743 = vst [vmem:[#allocation26_spill] sm:$0xff] %v5658_v21 }
  0x80   : > { %912 = vperm.xlu1 %4858, %v786_v23   ;;  %907 = vperm.xlu0 %4857, %v785_v24   ;;  %v5544_v24 = vld [vmem:[%s5327_s12 + $0x130] sm:$0xff]  ;;  %v5550_v23 = vld [vmem:[%s5327_s12 + $0x138] sm:$0xff] }
  0x81   : > { %6721 = vst [vmem:[#allocation4_spill] sm:$0xff] %v5544_v24  ;;  %6723 = vst [vmem:[#allocation6_spill] sm:$0xff] %v5550_v23  ;;  %v5720_v24 = vld [vmem:[%s5327_s12 + $0x1e0] sm:$0xff] }
  0x84   : > { %922 = vperm.xlu1 %4858, %v788_v25   ;;  %917 = vperm.xlu0 %4857, %v787_v26   ;;  %v5402_v25 = vld [vmem:[%s5327_s12 + $0x68] sm:$0xff]  ;;  %v5405_v26 = vld [vmem:[%s5327_s12 + $0x78] sm:$0xff] }
  0x88   : > { %932 = vperm.xlu1 %4858, %v790_v27   ;;  %927 = vperm.xlu0 %4857, %v789_v28   ;;  %v5591_v28 = vld [vmem:[%s5327_s12 + $0x148] sm:$0xff]  ;;  %v2333_v27 = vld [vmem:[%s5530_s22 + $0x10] sm:$0xff] }
  0x89   : > { %6730 = vst [vmem:[#allocation13_spill] sm:$0xff] %v5591_v28  ;;  %v2337_v28 = vld [vmem:[%s5530_s22 + $0x30] sm:$0xff] }
  0x8c   : > { %942 = vperm.xlu1 %4858, %v792_v29   ;;  %937 = vperm.xlu0 %4857, %v791_v30   ;;  %v5511_v29 = vld [vmem:[%s5327_s12 + $0x110] sm:$0xff]  ;;  %v2331_v30 = vld [vmem:[%s5530_s22] sm:$0xff] }
  0x90   : > { %952 = vperm.xlu1 %4858, %v794_v31   ;;  %947 = vperm.xlu0 %4857, %v793_v32   ;;  %v5412_v31 = vld [vmem:[%s5327_s12 + $0x80] sm:$0xff]  ;;  %v5415_v32 = vld [vmem:[%s5327_s12 + $0x90] sm:$0xff] }
  0x94   : > { %1314 = vperm.xlu1 %4858, %v1292_v33   ;;  %1309 = vperm.xlu0 %4857, %v1291_v34   ;;  %v5504_v34 = vld [vmem:[%s5327_s12 + $0x100] sm:$0xff]  ;;  %v2069_v33 = vld [vmem:[%s6660_s9 + $0xd0] sm:$0xff] }
  0x98   : > { %1324 = vperm.xlu1 %4858, %v1294_v35   ;;  %1319 = vperm.xlu0 %4857, %v1293_v36   ;;  %v5491_v36 = vld [vmem:[%s5327_s12 + $0xf0] sm:$0xff] }
  0x99   : > { %v5601_v35 = vld [vmem:[%s5327_s12 + $0x1b0] sm:$0xff] }
  0x9a   : > { %6732 = vst [vmem:[#allocation15_spill] sm:$0xff] %v5601_v35  ;;  %v5663_v35 = vld [vmem:[%s5327_s12 + $0x1f0] sm:$0xff] }
  0x9b   : > { %6744 = vst [vmem:[#allocation27_spill] sm:$0xff] %v5663_v35 }
  0x9c   : > { %1334 = vperm.xlu1 %4858, %v1296_v37   ;;  %1329 = vperm.xlu0 %4857, %v1295_v38   ;;  %v5422_v37 = vld [vmem:[%s5327_s12 + $0x88] sm:$0xff]  ;;  %v5425_v38 = vld [vmem:[%s5327_s12 + $0x98] sm:$0xff] }
  0xa0   : > { %1344 = vperm.xlu1 %4858, %v1298_v39   ;;  %1339 = vperm.xlu0 %4857, %v1297_v40   ;;  %v1804_v39 = vld [vmem:[%s6660_s9 + $0xb8] sm:$0xff] }
  0xa1   : > { %v2070_v40 = vld [vmem:[%s6660_s9 + $0xd8] sm:$0xff] }
  0xa4   : > { %1354 = vperm.xlu1 %4858, %v1300_v41   ;;  %1349 = vperm.xlu0 %4857, %v1299_v42   ;;  %v5465_v42 = vld [vmem:[%s5327_s12 + $0xd0] sm:$0xff]  ;;  %v5484_v41 = vld [vmem:[%s5327_s12 + $0xe0] sm:$0xff] }
  0xa8   : > { %1364 = vperm.xlu1 %4858, %v1302_v43   ;;  %1359 = vperm.xlu0 %4857, %v1301_v44   ;;  %v5435_v44 = vld [vmem:[%s5327_s12 + $0xa0] sm:$0xff] }
  0xa9   : > { %v5567_v43 = vld [vmem:[%s5327_s12 + $0x180] sm:$0xff] }
  0xaa   : > { %6726 = vst [vmem:[#allocation9_spill] sm:$0xff] %v5567_v43 }
  0xac   : > { %1374 = vperm.xlu1 %4858, %v1304_v45   ;;  %1369 = vperm.xlu0 %4857, %v1303_v46   ;;  %v5438_v45 = vld [vmem:[%s5327_s12 + $0xb0] sm:$0xff] }
  0xad   : > { %v1803_v46 = vld [vmem:[%s6660_s9 + $0xb0] sm:$0xff] }
  0xb0   : > { %1384 = vperm.xlu1 %4858, %v1306_v48   ;;  %1379 = vperm.xlu0 %4857, %v1305_v49   ;;  %v2068_v48 = vld [vmem:[%s6660_s9 + $0xc8] sm:$0xff] }
  0xb1   : > { %v5494_v49 = vld [vmem:[%s5327_s12 + $0xe8] sm:$0xff] }
  0xb4   : > { %1812 = vperm.xlu1 %4858, %v1798_v50   ;;  %1807 = vperm.xlu0 %4857, %v1797_v51   ;;  %v5448_v51 = vld [vmem:[%s5327_s12 + $0xa8] sm:$0xff]  ;;  %v2067_v50 = vld [vmem:[%s6660_s9 + $0xc0] sm:$0xff] }
  0xb8   : > { %1822 = vperm.xlu1 %4858, %v1800_v56   ;;  %1817 = vperm.xlu0 %4857, %v1799_v59   ;;  %v5451_v56 = vld [vmem:[%s5327_s12 + $0xb8] sm:$0xff]  ;;  %v5468_v59 = vld [vmem:[%s5327_s12 + $0xc8] sm:$0xff] }
  0xbc   : > { %1832 = vperm.xlu1 %4858, %v1802_v13   ;;  %1827 = vperm.xlu0 %4857, %v1801_v20   ;;  %v5471_v20 = vld [vmem:[%s5327_s12 + $0xd8] sm:$0xff]  ;;  %v5514_v13 = vld [vmem:[%s5327_s12 + $0x108] sm:$0xff] }
  0xc0   : > { %1842 = vperm.xlu1 %4858, %v1804_v39   ;;  %1837 = vperm.xlu0 %4857, %v1803_v46   ;;  %v5517_v39 = vld [vmem:[%s5327_s12 + $0x118] sm:$0xff]  ;;  %v5537_v46 = vld [vmem:[%s5327_s12 + $0x120] sm:$0xff] }
  0xc1   : > { %6720 = vst [vmem:[#allocation3_spill] sm:$0xff] %v5537_v46 }
  0xc4   : > { %2078 = vperm.xlu1 %4858, %v2068_v48   ;;  %2073 = vperm.xlu0 %4857, %v2067_v50   ;;  %v5547_v48 = vld [vmem:[%s5327_s12 + $0x128] sm:$0xff]  ;;  %v5650_v50 = vld [vmem:[%s5327_s12 + $0x1d8] sm:$0xff] }
  0xc5   : > { %6722 = vst [vmem:[#allocation5_spill] sm:$0xff] %v5547_v48  ;;  %6741 = vst [vmem:[#allocation24_spill] sm:$0xff] %v5650_v50  ;;  %v6746_v50 = vunpack.c.h.bf16 %v5336_v54 }
  0xc8   : > { %2088 = vperm.xlu1 %4858, %v2070_v40   ;;  %2083 = vperm.xlu0 %4857, %v2069_v33   ;;  %v2239_v33 = vld [vmem:[%s6660_s9 + $0xe0] sm:$0xff] }
  0xcc   : > { %3008 = vperm.xlu1 %4858, %v2331_v30   ;;  %2242 = vperm.xlu0 %4857, %v2239_v33   ;;  %v5643_v33 = vld [vmem:[%s5327_s12 + $0x1d0] sm:$0xff]  ;;  %v5672_v30 = vld [vmem:[%s5327_s12 + $0x1f8] sm:$0xff] }
  0xcd   : > { %6740 = vst [vmem:[#allocation23_spill] sm:$0xff] %v5643_v33  ;;  %v6749_v33 = vunpack.c.h.bf16 %v5345_v57 }
  0xd0   : > { %3018 = vperm.xlu1 %4858, %v2333_v27   ;;  %3013 = vperm.xlu0 %4857, %v2332_v3   ;;  %v6748_v3 = vunpack.c.l.bf16 %v5336_v54 }
  0xd3   : > { %v808_v2 = vpop.permute.xlu1 %807  ;;  %v798_v9 = vpop.permute.xlu0 %797 }
  0xd4   : > { %3028 = vperm.xlu1 %4858, %v2335_v15   ;;  %3023 = vperm.xlu0 %4857, %v2334_v7   ;;  %v956_v40 = vadd.f32 %v798_v9, %v6745_v4  ;;  %v958_v61 = vadd.f32 %v798_v9, %v6746_v50  ;;  %v955_v60 = vadd.f32 %v798_v9, %v6747_v14  ;;  %v6750_v7 = vunpack.c.h.bf16 %v5356_v62  ;;  %v2339_v62 = vld [vmem:[%s5530_s22 + $0x40] sm:$0xff] }
  0xd5   : > { %v957_v27 = vadd.f32 %v798_v9, %v6748_v3  ;;  %v964_v15 = vadd.f32 %v808_v2, %v6749_v33  ;;  %v6751_v4 = vunpack.c.l.bf16 %v5345_v57  ;;  %v965_v17 = vadd.f32 %v808_v2, %v6752_v16 }
  0xd6   : > { %v966_v35 = vadd.f32 %v808_v2, %v6750_v7  ;;  %v1084_v50 = vmax.f32 %v956_v40, 0.0  ;;  %v1086_v52 = vmax.f32 %v958_v61, 0.0  ;;  %v1083_v14 = vmax.f32 %v955_v60, 0.0 }
  0xd7   : > { %v963_v21 = vadd.f32 %v808_v2, %v6751_v4  ;;  %v813_v8 = vpop.permute.xlu1 %812  ;;  %v803_v54 = vpop.permute.xlu0 %802  ;;  %v1085_v9 = vmax.f32 %v957_v27, 0.0  ;;  %v1092_v3 = vmax.f32 %v964_v15, 0.0  ;;  %v6753_v7 = vunpack.c.h.bf16 %v5333_v53  ;;  %v2338_v2 = vld [vmem:[%s5530_s22 + $0x38] sm:$0xff] }
  0xd8   : > { %v1094_v43 = vmax.f32 %v966_v35, 0.0  ;;  %3038 = vperm.xlu1 %4858, %v2337_v28   ;;  %3033 = vperm.xlu0 %4857, %v2336_v1   ;;  %v6754_v40 = vunpack.c.h.bf16 %v5339_v55  ;;  %v6755_v61 = vunpack.c.l.bf16 %v5333_v53  ;;  %v1093_v10 = vmax.f32 %v965_v17, 0.0 }
  0xd9   : > { %v1091_v33 = vmax.f32 %v963_v21, 0.0  ;;  %v960_v57 = vadd.f32 %v803_v54, %v6753_v7  ;;  %v6756_v16 = vunpack.c.l.bf16 %v5339_v55  ;;  %v6757_v35 = vunpack.c.h.bf16 %v5348_v58 }
  0xda   : > { %v962_v4 = vadd.f32 %v803_v54, %v6754_v40  ;;  %v959_v60 = vadd.f32 %v803_v54, %v6755_v61  ;;  %v6758_v1 = vunpack.c.h.bf16 %v5359_v63  ;;  %v6759_v15 = vunpack.c.l.bf16 %v5348_v58 }
  0xdb   : > { %v961_v27 = vadd.f32 %v803_v54, %v6756_v16  ;;  %v968_v21 = vadd.f32 %v813_v8, %v6757_v35  ;;  %v1088_v22 = vmax.f32 %v960_v57, 0.0  ;;  %v6760_v17 = vunpack.c.l.bf16 %v5359_v63  ;;  %v823_v55 = vpop.permute.xlu1 %822  ;;  %v818_v54 = vpop.permute.xlu0 %817  ;;  %v2340_v63 = vld [vmem:[%s5530_s22 + $0x48] sm:$0xff] }
  0xdc   : > { %v970_v28 = vadd.f32 %v813_v8, %v6758_v1  ;;  %v967_v7 = vadd.f32 %v813_v8, %v6759_v15  ;;  %v1090_v40 = vmax.f32 %v962_v4, 0.0  ;;  %v1087_v53 = vmax.f32 %v959_v60, 0.0  ;;  %3048 = vperm.xlu1 %4858, %v2339_v62   ;;  %3043 = vperm.xlu0 %4857, %v2338_v2   ;;  %v2341_v60 = vld [vmem:[%s5530_s22 + $0x50] sm:$0xff] }
  0xdd   : > { %v969_v61 = vadd.f32 %v813_v8, %v6760_v17  ;;  %v1089_v16 = vmax.f32 %v961_v27, 0.0  ;;  %v1096_v23 = vmax.f32 %v968_v21, 0.0  ;;  %v1212_v1 = vpack.c.bf16 %v1088_v22, %v1084_v50 }
  0xde   : > { %v1098_v35 = vmax.f32 %v970_v28, 0.0  ;;  %v1095_v48 = vmax.f32 %v967_v7, 0.0  ;;  %v1214_v58 = vpack.c.bf16 %v1090_v40, %v1086_v52  ;;  %v1211_v15 = vpack.c.bf16 %v1087_v53, %v1083_v14 }
  0xdf   : > { %v1097_v57 = vmax.f32 %v969_v61, 0.0  ;;  %v1213_v4 = vpack.c.bf16 %v1089_v16, %v1085_v9  ;;  %v1216_v46 = vpack.c.bf16 %v1096_v23, %v1092_v3  ;;  %1467 = vmatprep.subr.bf16.mxu0 %v1212_v1  ;;  %v6761_v21 = vunpack.c.h.bf16 %v5366_v5  ;;  %v833_v52 = vpop.permute.xlu1 %832  ;;  %v828_v14 = vpop.permute.xlu0 %827  ;;  %v2342_v1 = vld [vmem:[%s5530_s22 + $0x58] sm:$0xff] }
  0xe0   : > { %v1218_v8 = vpack.c.bf16 %v1098_v35, %v1094_v43  ;;  %v1215_v17 = vpack.c.bf16 %v1095_v48, %v1091_v33  ;;  %1580 = vmatprep.subr.bf16.mxu1 %v1214_v58  ;;  %v6762_v62 = vunpack.c.h.bf16 %v5369_v6  ;;  %v762_v50 = vunpack.c.h.bf16 %v5672_v30  ;;  %1468 = vmatpush1.bf16.msra.mxu0 %v1211_v15  ;;  %v2343_v35 = vld [vmem:[%s5530_s22 + $0x60] sm:$0xff] }
  0xe1   : > { %v1217_v27 = vpack.c.bf16 %v1097_v57, %v1093_v10  ;;  %v972_v28 = vadd.f32 %v818_v54, %v6761_v21  ;;  %1581 = vmatpush1.bf16.msra.mxu1 %v1213_v4  ;;  %v6763_v23 = vunpack.c.h.bf16 %v5376_v11  ;;  %v6764_v48 = vunpack.c.h.bf16 %v5379_v12  ;;  %3058 = vperm.xlu1 %4858, %v2341_v60  }
  0xe2   : > { %v976_v22 = vadd.f32 %v823_v55, %v6762_v62  ;;  %v6765_v9 = vunpack.c.l.bf16 %v5366_v5  ;;  %v755_v33 = vunpack.c.l.bf16 %v5720_v24  ;;  %3053 = vperm.xlu0 %4857, %v2340_v63   ;;  %v6766_v40 = vunpack.c.l.bf16 %v5369_v6  ;;  %1469 = vmatprep.subr.bf16.mxu0 %v1216_v46 }
  0xe3   : > { %v974_v43 = vadd.f32 %v818_v54, %v6763_v23  ;;  %v978_v10 = vadd.f32 %v823_v55, %v6764_v48  ;;  %v1100_v2 = vmax.f32 %v972_v28, 0.0  ;;  %v6767_v61 = vunpack.c.l.bf16 %v5376_v11  ;;  %1582 = vmatprep.subr.bf16.mxu1 %v1218_v8  ;;  %v843_v62 = vpop.permute.xlu1 %842 }
  0xe4   : > { %v971_v3 = vadd.f32 %v818_v54, %v6765_v9  ;;  %v1104_v7 = vmax.f32 %v976_v22, 0.0  ;;  %v975_v53 = vadd.f32 %v823_v55, %v6766_v40  ;;  %v6768_v57 = vunpack.c.l.bf16 %v5379_v12  ;;  %v838_v22 = vpop.permute.xlu0 %837  ;;  %1470 = vmatpush1.bf16.msra.mxu0 %v1215_v17 }
  0xe5   : > { %v973_v16 = vadd.f32 %v818_v54, %v6767_v61  ;;  %v1102_v58 = vmax.f32 %v974_v43, 0.0  ;;  %v1106_v15 = vmax.f32 %v978_v10, 0.0  ;;  %v6769_v28 = vunpack.c.h.bf16 %v5389_v18  ;;  %1583 = vmatpush1.bf16.msra.mxu1 %v1217_v27  ;;  %3068 = vperm.xlu1 %4858, %v2343_v35  }
  0xe6   : > { %v1099_v5 = vmax.f32 %v971_v3, 0.0  ;;  %v977_v4 = vadd.f32 %v823_v55, %v6768_v57  ;;  %v1220_v60 = vpack.c.bf16 %v1104_v7, %v1100_v2  ;;  %v1103_v63 = vmax.f32 %v975_v53, 0.0  ;;  %3063 = vperm.xlu0 %4857, %v2342_v1   ;;  %v2345_v3 = vld [vmem:[%s5530_s22 + $0x70] sm:$0xff]  ;;  %v2344_v2 = vld [vmem:[%s5530_s22 + $0x68] sm:$0xff] }
  0xe7   : > { %v1101_v21 = vmax.f32 %v973_v16, 0.0  ;;  %v980_v6 = vadd.f32 %v828_v14, %v6769_v28  ;;  %v1222_v11 = vpack.c.bf16 %v1106_v15, %v1102_v58  ;;  %v6770_v54 = vunpack.c.h.bf16 %v5392_v19 }
  0xe8   : > { %v1105_v46 = vmax.f32 %v977_v4, 0.0  ;;  %v6771_v12 = vunpack.c.h.bf16 %v5402_v25  ;;  %v1219_v23 = vpack.c.bf16 %v1103_v63, %v1099_v5  ;;  %v6772_v48 = vunpack.c.h.bf16 %v5405_v26  ;;  %1471 = vmatprep.subr.bf16.mxu0 %v1220_v60  ;;  %v848_v57 = vpop.permute.xlu0 %847 }
  0xe9   : > { %v984_v8 = vadd.f32 %v833_v52, %v6770_v54  ;;  %v1108_v43 = vmax.f32 %v980_v6, 0.0  ;;  %v6773_v9 = vunpack.c.l.bf16 %v5389_v18  ;;  %1584 = vmatprep.subr.bf16.mxu1 %v1222_v11  ;;  %v6774_v53 = vunpack.c.l.bf16 %v5392_v19  ;;  %v5762_v18 = vpop.permute.xlu1 %852  ;;  %3078 = vperm.xlu1 %4858, %v2345_v3  }
  0xea   : > { %v982_v55 = vadd.f32 %v828_v14, %v6771_v12  ;;  %v986_v10 = vadd.f32 %v833_v52, %v6772_v48  ;;  %v1221_v27 = vpack.c.bf16 %v1105_v46, %v1101_v21  ;;  %v6775_v1 = vunpack.c.l.bf16 %v5402_v25  ;;  %1472 = vmatpush1.bf16.msra.mxu0 %v1219_v23  ;;  %3073 = vperm.xlu0 %4857, %v2344_v2   ;;  %v2347_v46 = vld [vmem:[%s5530_s22 + $0x80] sm:$0xff] }
  0xeb   : > { %v979_v17 = vadd.f32 %v828_v14, %v6773_v9  ;;  %v1112_v7 = vmax.f32 %v984_v8, 0.0  ;;  %v983_v61 = vadd.f32 %v833_v52, %v6774_v53  ;;  %v6776_v15 = vunpack.c.l.bf16 %v5405_v26 }
  0xec   : > { %v1110_v40 = vmax.f32 %v982_v55, 0.0  ;;  %v1114_v16 = vmax.f32 %v986_v10, 0.0  ;;  %v981_v58 = vadd.f32 %v828_v14, %v6775_v1  ;;  %1585 = vmatpush1.bf16.msra.mxu1 %v1221_v27  ;;  %v6777_v63 = vunpack.c.h.bf16 %v5412_v31  ;;  %v5780_v2 = vpop.permute.xlu0 %857 }
  0xed   : > { %v1107_v35 = vmax.f32 %v979_v17, 0.0  ;;  %v985_v5 = vadd.f32 %v833_v52, %v6776_v15  ;;  %v1224_v4 = vpack.c.bf16 %v1112_v7, %v1108_v43  ;;  %v1111_v60 = vmax.f32 %v983_v61, 0.0  ;;  %v2346_v43 = vld [vmem:[%s5530_s22 + $0x78] sm:$0xff]  ;;  %v5778_v3 = vpop.permute.xlu1 %862  ;;  %3088 = vperm.xlu1 %4858, %v2347_v46  }
  0xee   : > { %v988_v19 = vadd.f32 %v838_v22, %v6777_v63  ;;  %v6778_v21 = vunpack.c.h.bf16 %v5415_v32  ;;  %v1226_v25 = vpack.c.bf16 %v1114_v16, %v1110_v40  ;;  %v1109_v26 = vmax.f32 %v981_v58, 0.0  ;;  %3083 = vperm.xlu0 %4857, %v2346_v43  }
  0xef   : > { %v1113_v52 = vmax.f32 %v985_v5, 0.0  ;;  %v6779_v14 = vunpack.c.h.bf16 %v5422_v37  ;;  %1473 = vmatprep.subr.bf16.mxu0 %v1224_v4  ;;  %v1223_v11 = vpack.c.bf16 %v1111_v60, %v1107_v35  ;;  %v6780_v12 = vunpack.c.h.bf16 %v5425_v38  ;;  %v2349_v60 = vld [vmem:[%s5530_s22 + $0x90] sm:$0xff] }
  0xf0   : > { %v992_v28 = vadd.f32 %v843_v62, %v6778_v21  ;;  %v1116_v54 = vmax.f32 %v988_v19, 0.0  ;;  %1586 = vmatprep.subr.bf16.mxu1 %v1226_v25  ;;  %v6781_v10 = vunpack.c.l.bf16 %v5412_v31  ;;  %v6782_v17 = vunpack.c.l.bf16 %v5415_v32  ;;  %v2348_v19 = vld [vmem:[%s5530_s22 + $0x88] sm:$0xff] }
  0xf1   : > { %v990_v6 = vadd.f32 %v838_v22, %v6779_v14  ;;  %v994_v55 = vadd.f32 %v843_v62, %v6780_v12  ;;  %v1225_v23 = vpack.c.bf16 %v1113_v52, %v1109_v26  ;;  %1474 = vmatpush1.bf16.msra.mxu0 %v1223_v11  ;;  %v6783_v53 = vunpack.c.l.bf16 %v5422_v37  ;;  %v5798_v52 = vpop.permute.xlu1 %872  ;;  %v5800_v14 = vpop.permute.xlu0 %867  ;;  %3098 = vperm.xlu1 %4858, %v2349_v60  }
  0xf2   : > { %v1120_v8 = vmax.f32 %v992_v28, 0.0  ;;  %v987_v9 = vadd.f32 %v838_v22, %v6781_v10  ;;  %v991_v27 = vadd.f32 %v843_v62, %v6782_v17  ;;  %v6784_v16 = vunpack.c.l.bf16 %v5425_v38  ;;  %3093 = vperm.xlu0 %4857, %v2348_v19  }
  0xf3   : > { %v1118_v48 = vmax.f32 %v990_v6, 0.0  ;;  %v1122_v40 = vmax.f32 %v994_v55, 0.0  ;;  %v989_v61 = vadd.f32 %v838_v22, %v6783_v53  ;;  %1587 = vmatpush1.bf16.msra.mxu1 %v1225_v23  ;;  %v6785_v1 = vunpack.c.h.bf16 %v5435_v44 }
  0xf4   : > { %v1228_v7 = vpack.c.bf16 %v1120_v8, %v1116_v54  ;;  %v993_v35 = vadd.f32 %v843_v62, %v6784_v16  ;;  %v1115_v31 = vmax.f32 %v987_v9, 0.0  ;;  %v1119_v32 = vmax.f32 %v991_v27, 0.0  ;;  %v2351_v27 = vld [vmem:[%s5530_s22 + $0xa0] sm:$0xff] }
  0xf5   : > { %v996_v58 = vadd.f32 %v848_v57, %v6785_v1  ;;  %v6786_v15 = vunpack.c.h.bf16 %v5438_v45  ;;  %v1230_v4 = vpack.c.bf16 %v1122_v40, %v1118_v48  ;;  %v1117_v37 = vmax.f32 %v989_v61, 0.0  ;;  %3108 = vperm.xlu1 %4858, %v2351_v27  }
  0xf6   : > { %1475 = vmatprep.subr.bf16.mxu0 %v1228_v7  ;;  %v1121_v22 = vmax.f32 %v993_v35, 0.0  ;;  %v6787_v38 = vunpack.c.h.bf16 %v5448_v51  ;;  %v1227_v63 = vpack.c.bf16 %v1119_v32, %v1115_v31  ;;  %v6788_v25 = vunpack.c.h.bf16 %v5451_v56  ;;  %v5823_v35 = vpop.permute.xlu1 %882  ;;  %v5825_v31 = vpop.permute.xlu0 %877 }
  0xf7   : > { %v1000_v5 = vadd.f32 %v5762_v18, %v6786_v15  ;;  %v1124_v21 = vmax.f32 %v996_v58, 0.0  ;;  %1588 = vmatprep.subr.bf16.mxu1 %v1230_v4  ;;  %v6789_v46 = vunpack.c.l.bf16 %v5435_v44  ;;  %v6790_v8 = vunpack.c.l.bf16 %v5438_v45 }
  0xf8   : > { %v998_v62 = vadd.f32 %v848_v57, %v6787_v38  ;;  %v1002_v26 = vadd.f32 %v5762_v18, %v6788_v25  ;;  %v1229_v6 = vpack.c.bf16 %v1121_v22, %v1117_v37  ;;  %1476 = vmatpush1.bf16.msra.mxu0 %v1227_v63  ;;  %v6791_v43 = vunpack.c.l.bf16 %v5448_v51 }
  0xf9   : > { %v1128_v28 = vmax.f32 %v1000_v5, 0.0  ;;  %v995_v54 = vadd.f32 %v848_v57, %v6789_v46  ;;  %v999_v12 = vadd.f32 %v5762_v18, %v6790_v8  ;;  %v6792_v10 = vunpack.c.l.bf16 %v5451_v56  ;;  %v2350_v56 = vld [vmem:[%s5530_s22 + $0x98] sm:$0xff]  ;;  %v2352_v46 = vld [vmem:[%s5530_s22 + $0xa8] sm:$0xff] }
  0xfa   : > { %v1126_v11 = vmax.f32 %v998_v62, 0.0  ;;  %v1130_v23 = vmax.f32 %v1002_v26, 0.0  ;;  %v997_v48 = vadd.f32 %v848_v57, %v6791_v43  ;;  %1589 = vmatpush1.bf16.msra.mxu1 %v1229_v6  ;;  %v6793_v45 = vunpack.c.h.bf16 %v5458_v47  ;;  %3103 = vperm.xlu0 %4857, %v2350_v56   ;;  %v2353_v6 = vld [vmem:[%s5530_s22 + $0xb0] sm:$0xff] }
  0xfb   : > { %v1232_v55 = vpack.c.bf16 %v1128_v28, %v1124_v21  ;;  %v1001_v9 = vadd.f32 %v5762_v18, %v6792_v10  ;;  %v1123_v44 = vmax.f32 %v995_v54, 0.0  ;;  %v1127_v17 = vmax.f32 %v999_v12, 0.0  ;;  %3118 = vperm.xlu1 %4858, %v2353_v6  }
  0xfc   : > { %v1004_v7 = vadd.f32 %v5780_v2, %v6793_v45  ;;  %v6794_v40 = vunpack.c.h.bf16 %v5465_v42  ;;  %v1234_v51 = vpack.c.bf16 %v1130_v23, %v1126_v11  ;;  %v1125_v57 = vmax.f32 %v997_v48, 0.0 }
  0xfd   : > { %1477 = vmatprep.subr.bf16.mxu0 %v1232_v55  ;;  %v1129_v61 = vmax.f32 %v1001_v9, 0.0  ;;  %v6795_v18 = vunpack.c.h.bf16 %v5468_v59  ;;  %v1231_v32 = vpack.c.bf16 %v1127_v17, %v1123_v44  ;;  %v6796_v15 = vunpack.c.h.bf16 %v5471_v20 }
  0xfe   : > { %v1008_v53 = vadd.f32 %v5778_v3, %v6794_v40  ;;  %v1132_v1 = vmax.f32 %v1004_v7, 0.0  ;;  %1590 = vmatprep.subr.bf16.mxu1 %v1234_v51  ;;  %v6797_v22 = vunpack.c.l.bf16 %v5458_v47  ;;  %v6798_v38 = vunpack.c.l.bf16 %v5465_v42  ;;  %3113 = vperm.xlu0 %4857, %v2352_v46  }
  0xff   : > { %v1006_v16 = vadd.f32 %v5780_v2, %v6795_v18  ;;  %v1010_v5 = vadd.f32 %v5778_v3, %v6796_v15  ;;  %v1233_v4 = vpack.c.bf16 %v1129_v61, %v1125_v57  ;;  %1478 = vmatpush1.bf16.msra.mxu0 %v1231_v32  ;;  %v6799_v21 = vunpack.c.l.bf16 %v5468_v59  ;;  %v2355_v57 = vld [vmem:[%s5530_s22 + $0xc0] sm:$0xff] }
 0x100   : > { %v1136_v58 = vmax.f32 %v1008_v53, 0.0  ;;  %v1003_v60 = vadd.f32 %v5780_v2, %v6797_v22  ;;  %v1007_v62 = vadd.f32 %v5778_v3, %v6798_v38  ;;  %v6800_v25 = vunpack.c.l.bf16 %v5471_v20  ;;  %v5852_v20 = vpop.permute.xlu0 %887  ;;  %3128 = vperm.xlu1 %4858, %v2355_v57  }
 0x101   : > { %v1134_v37 = vmax.f32 %v1006_v16, 0.0  ;;  %v1138_v19 = vmax.f32 %v1010_v5, 0.0  ;;  %v1005_v28 = vadd.f32 %v5780_v2, %v6799_v21  ;;  %1591 = vmatpush1.bf16.msra.mxu1 %v1233_v4  ;;  %v6801_v42 = vunpack.c.h.bf16 %v5484_v41  ;;  %v5850_v2 = vpop.permute.xlu1 %892 }
 0x102   : > { %v1236_v63 = vpack.c.bf16 %v1136_v58, %v1132_v1  ;;  %v1009_v26 = vadd.f32 %v5778_v3, %v6800_v25  ;;  %v1131_v47 = vmax.f32 %v1003_v60, 0.0  ;;  %v1135_v11 = vmax.f32 %v1007_v62, 0.0  ;;  %v2354_v58 = vld [vmem:[%s5530_s22 + $0xb8] sm:$0xff]  ;;  %v2357_v25 = vld [vmem:[%s5530_s22 + $0xd0] sm:$0xff] }
 0x103   : > { %v1012_v54 = vadd.f32 %v5800_v14, %v6801_v42  ;;  %v6802_v8 = vunpack.c.h.bf16 %v5491_v36  ;;  %v1238_v59 = vpack.c.bf16 %v1138_v19, %v1134_v37  ;;  %v1133_v3 = vmax.f32 %v1005_v28, 0.0  ;;  %3123 = vperm.xlu0 %4857, %v2354_v58  }
 0x104   : > { %1479 = vmatprep.subr.bf16.mxu0 %v1236_v63  ;;  %v1137_v55 = vmax.f32 %v1009_v26, 0.0  ;;  %v6803_v23 = vunpack.c.h.bf16 %v5494_v49  ;;  %v1235_v48 = vpack.c.bf16 %v1135_v11, %v1131_v47  ;;  %v6804_v44 = vunpack.c.h.bf16 %v5497_v0  ;;  %v5876_v15 = vpop.permute.xlu0 %897  ;;  %3138 = vperm.xlu1 %4858, %v2357_v25   ;;  %v6830_v25 = vld [vmem:[#allocation8_spill] sm:$0xff] }
 0x105   : > { %v1016_v12 = vadd.f32 %v5798_v52, %v6802_v8  ;;  %v1140_v10 = vmax.f32 %v1012_v54, 0.0  ;;  %1592 = vmatprep.subr.bf16.mxu1 %v1238_v59  ;;  %v6805_v7 = vunpack.c.l.bf16 %v5484_v41  ;;  %v6806_v53 = vunpack.c.l.bf16 %v5491_v36  ;;  %v5874_v41 = vpop.permute.xlu1 %902  ;;  %v2356_v54 = vld [vmem:[%s5530_s22 + $0xc8] sm:$0xff] }
 0x106   : > { %v1014_v43 = vadd.f32 %v5800_v14, %v6803_v23  ;;  %v1018_v17 = vadd.f32 %v5798_v52, %v6804_v44  ;;  %v1237_v27 = vpack.c.bf16 %v1137_v55, %v1133_v3  ;;  %1480 = vmatpush1.bf16.msra.mxu0 %v1235_v48  ;;  %v6807_v18 = vunpack.c.l.bf16 %v5494_v49 }
 0x107   : > { %v1144_v9 = vmax.f32 %v1016_v12, 0.0  ;;  %v1011_v40 = vadd.f32 %v5800_v14, %v6805_v7  ;;  %v1015_v51 = vadd.f32 %v5798_v52, %v6806_v53  ;;  %v6808_v32 = vunpack.c.l.bf16 %v5497_v0  ;;  %3133 = vperm.xlu0 %4857, %v2356_v54   ;;  %v2359_v53 = vld [vmem:[%s5530_s22 + $0xe0] sm:$0xff] }
 0x108   : > { %v1142_v45 = vmax.f32 %v1014_v43, 0.0  ;;  %v1146_v56 = vmax.f32 %v1018_v17, 0.0  ;;  %v1013_v16 = vadd.f32 %v5800_v14, %v6807_v18  ;;  %1593 = vmatpush1.bf16.msra.mxu1 %v1237_v27  ;;  %v6809_v4 = vunpack.c.h.bf16 %v5504_v34  ;;  %v5900_v3 = vpop.permute.xlu0 %907  ;;  %v6819_v17 = vld [vmem:[#allocation4_spill] sm:$0xff]  ;;  %v6823_v18 = vld [vmem:[#allocation6_spill] sm:$0xff]  ;;  %3148 = vperm.xlu1 %4858, %v2359_v53   ;;  %v6844_v53 = vld [vmem:[#allocation13_spill] sm:$0xff] }
 0x109   : > { %v1240_v61 = vpack.c.bf16 %v1144_v9, %v1140_v10  ;;  %v1017_v1 = vadd.f32 %v5798_v52, %v6808_v32  ;;  %v1139_v36 = vmax.f32 %v1011_v40, 0.0  ;;  %v1143_v5 = vmax.f32 %v1015_v51, 0.0  ;;  %v5898_v59 = vpop.permute.xlu1 %912  ;;  %v6817_v10 = vld [vmem:[#allocation3_spill] sm:$0xff]  ;;  %v5919_v51 = vld [vmem:[%s5327_s12 + $0x1e8] sm:$0xff] }
 0x10a   : > { %v1020_v37 = vadd.f32 %v5825_v31, %v6809_v4  ;;  %v6810_v49 = vunpack.c.h.bf16 %v5511_v29  ;;  %v1242_v0 = vpack.c.bf16 %v1146_v56, %v1142_v45  ;;  %v1141_v52 = vmax.f32 %v1013_v16, 0.0 }
 0x10b   : > { %1481 = vmatprep.subr.bf16.mxu0 %v1240_v61  ;;  %v1145_v22 = vmax.f32 %v1017_v1, 0.0  ;;  %v6811_v60 = vunpack.c.h.bf16 %v5514_v13  ;;  %v1239_v62 = vpack.c.bf16 %v1143_v5, %v1139_v36  ;;  %v6812_v21 = vunpack.c.h.bf16 %v5517_v39 }
 0x10c   : > { %v1024_v14 = vadd.f32 %v5823_v35, %v6810_v49  ;;  %v1148_v63 = vmax.f32 %v1020_v37, 0.0  ;;  %1594 = vmatprep.subr.bf16.mxu1 %v1242_v0  ;;  %v6813_v47 = vunpack.c.l.bf16 %v5504_v34  ;;  %v6814_v46 = vunpack.c.l.bf16 %v5511_v29  ;;  %v918_v5 = vpop.permute.xlu0 %917  ;;  %v2358_v0 = vld [vmem:[%s5530_s22 + $0xd8] sm:$0xff] }
 0x10d   : > { %v1022_v38 = vadd.f32 %v5825_v31, %v6811_v60  ;;  %v1026_v28 = vadd.f32 %v5823_v35, %v6812_v21  ;;  %v1241_v26 = vpack.c.bf16 %v1145_v22, %v1141_v52  ;;  %1482 = vmatpush1.bf16.msra.mxu0 %v1239_v62  ;;  %v6815_v55 = vunpack.c.l.bf16 %v5514_v13  ;;  %v923_v36 = vpop.permute.xlu1 %922  ;;  %v6827_v62 = vld [vmem:[#allocation7_spill] sm:$0xff]  ;;  %3143 = vperm.xlu0 %4857, %v2358_v0  }
 0x10e   : > { %v1152_v19 = vmax.f32 %v1024_v14, 0.0  ;;  %v1019_v11 = vadd.f32 %v5825_v31, %v6813_v47  ;;  %v1023_v42 = vadd.f32 %v5823_v35, %v6814_v46  ;;  %v6816_v23 = vunpack.c.l.bf16 %v5517_v39  ;;  %v6821_v39 = vld [vmem:[#allocation5_spill] sm:$0xff] }
 0x10f   : > { %v1150_v6 = vmax.f32 %v1022_v38, 0.0  ;;  %v1154_v12 = vmax.f32 %v1026_v28, 0.0  ;;  %v1021_v34 = vadd.f32 %v5825_v31, %v6815_v55  ;;  %1595 = vmatpush1.bf16.msra.mxu1 %v1241_v26  ;;  %v6818_v9 = vunpack.c.h.bf16 %v6817_v10 }
 0x110   : > { %v1244_v8 = vpack.c.bf16 %v1152_v19, %v1148_v63  ;;  %v1025_v29 = vadd.f32 %v5823_v35, %v6816_v23  ;;  %v1147_v43 = vmax.f32 %v1019_v11, 0.0  ;;  %v1151_v48 = vmax.f32 %v1023_v42, 0.0  ;;  %v6833_v42 = vld [vmem:[#allocation9_spill] sm:$0xff] }
 0x111   : > { %v1028_v44 = vadd.f32 %v5852_v20, %v6818_v9  ;;  %v6820_v27 = vunpack.c.h.bf16 %v6819_v17  ;;  %v1246_v13 = vpack.c.bf16 %v1154_v12, %v1150_v6  ;;  %v1149_v7 = vmax.f32 %v1021_v34, 0.0  ;;  %v2361_v23 = vld [vmem:[%s5530_s22 + $0xf0] sm:$0xff] }
 0x112   : > { %1483 = vmatprep.subr.bf16.mxu0 %v1244_v8  ;;  %v1153_v31 = vmax.f32 %v1025_v29, 0.0  ;;  %v6822_v35 = vunpack.c.h.bf16 %v6821_v39  ;;  %v1243_v57 = vpack.c.bf16 %v1151_v48, %v1147_v43  ;;  %v6824_v16 = vunpack.c.h.bf16 %v6823_v18  ;;  %3158 = vperm.xlu1 %4858, %v2361_v23  }
 0x113   : > { %v1032_v45 = vadd.f32 %v5850_v2, %v6820_v27  ;;  %v1156_v61 = vmax.f32 %v1028_v44, 0.0  ;;  %1596 = vmatprep.subr.bf16.mxu1 %v1246_v13  ;;  %v6825_v4 = vunpack.c.l.bf16 %v6817_v10  ;;  %v6826_v49 = vunpack.c.l.bf16 %v6819_v17  ;;  %v6838_v44 = vld [vmem:[#allocation11_spill] sm:$0xff]  ;;  %v6840_v13 = vld [vmem:[#allocation10_spill] sm:$0xff] }
 0x114   : > { %v1030_v40 = vadd.f32 %v5852_v20, %v6822_v35  ;;  %v1034_v32 = vadd.f32 %v5850_v2, %v6824_v16  ;;  %v1245_v1 = vpack.c.bf16 %v1153_v31, %v1149_v7  ;;  %1484 = vmatpush1.bf16.msra.mxu0 %v1243_v57  ;;  %v756_v60 = vunpack.c.h.bf16 %v5720_v24  ;;  %v6842_v35 = vld [vmem:[#allocation12_spill] sm:$0xff] }
 0x115   : > { %v1160_v56 = vmax.f32 %v1032_v45, 0.0  ;;  %v1027_v37 = vadd.f32 %v5852_v20, %v6825_v4  ;;  %v1031_v14 = vadd.f32 %v5850_v2, %v6826_v49  ;;  %v757_v38 = vunpack.c.l.bf16 %v5919_v51  ;;  %v2360_v45 = vld [vmem:[%s5530_s22 + $0xe8] sm:$0xff] }
 0x116   : > { %v1158_v58 = vmax.f32 %v1030_v40, 0.0  ;;  %v1162_v22 = vmax.f32 %v1034_v32, 0.0  ;;  %1597 = vmatpush1.bf16.msra.mxu1 %v1245_v1  ;;  %v6828_v63 = vunpack.c.l.bf16 %v6827_v62  ;;  %v6829_v21 = vunpack.c.h.bf16 %v6827_v62  ;;  %3153 = vperm.xlu0 %4857, %v2360_v45  }
 0x117   : > { %v1248_v52 = vpack.c.bf16 %v1160_v56, %v1156_v61  ;;  %v6831_v26 = vunpack.c.l.bf16 %v6830_v25  ;;  %v6832_v47 = vunpack.c.h.bf16 %v6830_v25  ;;  %v6834_v54 = vunpack.c.l.bf16 %v6833_v42  ;;  %v6846_v61 = vld [vmem:[#allocation14_spill] sm:$0xff] }
 0x118   : > { %v5935_v19 = vadd.f32 %v923_v36, %v6828_v63  ;;  %v5939_v28 = vadd.f32 %v923_v36, %v6829_v21  ;;  %v1250_v46 = vpack.c.bf16 %v1162_v22, %v1158_v58  ;;  %v6835_v12 = vunpack.c.h.bf16 %v6833_v42  ;;  %v6849_v22 = vld [vmem:[#allocation15_spill] sm:$0xff] }
 0x119   : > { %v5943_v6 = vadd.f32 %v923_v36, %v6831_v26  ;;  %v5947_v11 = vadd.f32 %v923_v36, %v6832_v47  ;;  %1485 = vmatprep.subr.bf16.mxu0 %v1248_v52  ;;  %v5951_v8 = vadd.f32 %v918_v5, %v6834_v54  ;;  %v1155_v34 = vmax.f32 %v1027_v37, 0.0  ;;  %v928_v36 = vpop.permute.xlu0 %927  ;;  %v6852_v26 = vld [vmem:[#allocation16_spill] sm:$0xff] }
 0x11a   : > { %v5955_v55 = vadd.f32 %v918_v5, %v6835_v12  ;;  %v1159_v29 = vmax.f32 %v1031_v14, 0.0  ;;  %v6836_v43 = vunpack.c.l.bf16 %v6821_v39  ;;  %v6837_v10 = vunpack.c.l.bf16 %v6823_v18  ;;  %1598 = vmatprep.subr.bf16.mxu1 %v1250_v46  ;;  %v933_v18 = vpop.permute.xlu1 %932 }
 0x11b   : > { %v6839_v17 = vunpack.c.h.bf16 %v6838_v44  ;;  %v6841_v7 = vunpack.c.l.bf16 %v6840_v13  ;;  %v6843_v40 = vunpack.c.h.bf16 %v6842_v35  ;;  %v6848_v4 = vunpack.c.h.bf16 %v6840_v13 }
 0x11c   : > { %v1029_v48 = vadd.f32 %v5852_v20, %v6836_v43  ;;  %v1033_v9 = vadd.f32 %v5850_v2, %v6837_v10  ;;  %v6845_v20 = vunpack.c.h.bf16 %v6844_v53  ;;  %v6847_v2 = vunpack.c.h.bf16 %v6846_v61  ;;  %v3502_v43 = vld [vmem:[%s6660_s9 + $0xe8] sm:$0xff] }
 0x11d   : > { %v1036_v27 = vadd.f32 %v5876_v15, %v6839_v17  ;;  %v5970_v31 = vadd.f32 %v918_v5, %v6841_v7  ;;  %v1040_v39 = vadd.f32 %v5874_v41, %v6843_v40  ;;  %v1247_v16 = vpack.c.bf16 %v1159_v29, %v1155_v34  ;;  %v6855_v34 = vld [vmem:[#allocation17_spill] sm:$0xff]  ;;  %3520 = vperm.xlu1 %4858, %v3502_v43  }
 0x11e   : > { %v1038_v57 = vadd.f32 %v5876_v15, %v6845_v20  ;;  %v1042_v56 = vadd.f32 %v5874_v41, %v6847_v2  ;;  %v1157_v32 = vmax.f32 %v1029_v48, 0.0  ;;  %v1161_v1 = vmax.f32 %v1033_v9, 0.0  ;;  %v2362_v48 = vld [vmem:[%s5530_s22 + $0xf8] sm:$0xff]  ;;  %s568_s22 = scalar_lea.vmem %s6661_s10, %s4673_s13 }
 0x11f   : > { %v1164_v58 = vmax.f32 %v1036_v27, 0.0  ;;  %v5983_v37 = vadd.f32 %v918_v5, %v6848_v4  ;;  %v1168_v49 = vmax.f32 %v1040_v39, 0.0  ;;  %1486 = vmatpush1.bf16.msra.mxu0 %v1247_v16  ;;  %v6850_v62 = vunpack.c.l.bf16 %v6849_v22  ;;  %3163 = vperm.xlu0 %4857, %v2362_v48  }
 0x120   : > { %v1166_v14 = vmax.f32 %v1038_v57, 0.0  ;;  %v1170_v0 = vmax.f32 %v1042_v56, 0.0  ;;  %v1249_v52 = vpack.c.bf16 %v1161_v1, %v1157_v32  ;;  %v6851_v21 = vunpack.c.h.bf16 %v6849_v22  ;;  %v6862_v57 = vld [vmem:[#allocation19_spill] sm:$0xff]  ;;  %v6864_v56 = vld [vmem:[#allocation20_spill] sm:$0xff] }
 0x121   : > { %v5987_v63 = vadd.f32 %v933_v18, %v6850_v62  ;;  %v6853_v47 = vunpack.c.l.bf16 %v6852_v26  ;;  %v1252_v5 = vpack.c.bf16 %v1168_v49, %v1164_v58  ;;  %v6854_v54 = vunpack.c.h.bf16 %v6852_v26  ;;  %v6870_v62 = vld [vmem:[#allocation18_spill] sm:$0xff] }
 0x122   : > { %v5991_v25 = vadd.f32 %v933_v18, %v6851_v21  ;;  %v1254_v42 = vpack.c.bf16 %v1170_v0, %v1166_v14  ;;  %v6856_v23 = vunpack.c.l.bf16 %v6855_v34  ;;  %1599 = vmatpush1.bf16.msra.mxu1 %v1249_v52  ;;  %v6857_v10 = vunpack.c.h.bf16 %v6855_v34  ;;  %v6868_v0 = vld [vmem:[#allocation22_spill] sm:$0xff]  ;;  %v938_v34 = vpop.permute.xlu0 %937 }
 0x123   : > { %v5995_v46 = vadd.f32 %v933_v18, %v6853_v47  ;;  %v5999_v12 = vadd.f32 %v933_v18, %v6854_v54  ;;  %v6858_v17 = vunpack.c.l.bf16 %v6838_v44  ;;  %v6859_v45 = vunpack.c.l.bf16 %v6842_v35  ;;  %1487 = vmatprep.subr.bf16.mxu0 %v1252_v5 }
 0x124   : > { %v6003_v29 = vadd.f32 %v928_v36, %v6856_v23  ;;  %v6011_v9 = vadd.f32 %v928_v36, %v6857_v10  ;;  %v6860_v7 = vunpack.c.l.bf16 %v6844_v53  ;;  %1600 = vmatprep.subr.bf16.mxu1 %v1254_v42  ;;  %v6861_v39 = vunpack.c.l.bf16 %v6846_v61  ;;  %v943_v61 = vpop.permute.xlu1 %942 }
 0x125   : > { %v1035_v27 = vadd.f32 %v5876_v15, %v6858_v17  ;;  %v1039_v13 = vadd.f32 %v5874_v41, %v6859_v45  ;;  %v6863_v2 = vunpack.c.h.bf16 %v6862_v57  ;;  %v6865_v18 = vunpack.c.h.bf16 %v6864_v56  ;;  %v3504_v17 = vld [vmem:[%s6660_s9 + $0xf8] sm:$0xff]  ;;  %v6873_v45 = vld [vmem:[#allocation23_spill] sm:$0xff] }
 0x126   : > { %v1037_v40 = vadd.f32 %v5876_v15, %v6860_v7  ;;  %v1041_v20 = vadd.f32 %v5874_v41, %v6861_v39  ;;  %v758_v16 = vunpack.c.h.bf16 %v5919_v51  ;;  %v6866_v15 = vld [vmem:[#allocation21_spill] sm:$0xff]  ;;  %v6869_v52 = vunpack.c.h.bf16 %v6868_v0  ;;  %v6876_v39 = vld [vmem:[#allocation24_spill] sm:$0xff]  ;;  %3530 = vperm.xlu1 %4858, %v3504_v17   ;;  %v3505_v17 = vld [vmem:[%s6660_s9 + $0x100] sm:$0xff] }
 0x127   : > { %v1044_v44 = vadd.f32 %v5900_v3, %v6863_v2  ;;  %v1048_v35 = vadd.f32 %v5898_v59, %v6865_v18  ;;  %v1163_v32 = vmax.f32 %v1035_v27, 0.0  ;;  %v1167_v53 = vmax.f32 %v1039_v13, 0.0  ;;  %v3503_v27 = vld [vmem:[%s6660_s9 + $0xf0] sm:$0xff] }
 0x128   : > { %v1165_v1 = vmax.f32 %v1037_v40, 0.0  ;;  %v6867_v58 = vunpack.c.h.bf16 %v6866_v15  ;;  %v1169_v41 = vmax.f32 %v1041_v20, 0.0  ;;  %v1050_v22 = vadd.f32 %v5898_v59, %v6869_v52  ;;  %3525 = vperm.xlu0 %4857, %v3503_v27  }
 0x129   : > { %v1172_v49 = vmax.f32 %v1044_v44, 0.0  ;;  %v1176_v14 = vmax.f32 %v1048_v35, 0.0  ;;  %v6871_v21 = vunpack.c.l.bf16 %v6870_v62  ;;  %v6872_v47 = vunpack.c.h.bf16 %v6870_v62  ;;  %v6879_v35 = vld [vmem:[#allocation25_spill] sm:$0xff] }
 0x12a   : > { %v1046_v4 = vadd.f32 %v5900_v3, %v6867_v58  ;;  %v1251_v42 = vpack.c.bf16 %v1167_v53, %v1163_v32  ;;  %v1253_v23 = vpack.c.bf16 %v1169_v41, %v1165_v1  ;;  %v1178_v48 = vmax.f32 %v1050_v22, 0.0 }
 0x12b   : > { %v6040_v26 = vadd.f32 %v928_v36, %v6871_v21  ;;  %v6044_v5 = vadd.f32 %v928_v36, %v6872_v47  ;;  %v1256_v43 = vpack.c.bf16 %v1176_v14, %v1172_v49  ;;  %v1180_v10 = vmax.f32 %v5955_v55, 0.0  ;;  %v953_v21 = vpop.permute.xlu1 %952 }
 0x12c   : > { %v1174_v54 = vmax.f32 %v1046_v4, 0.0  ;;  %1488 = vmatpush1.bf16.msra.mxu0 %v1251_v42  ;;  %v6874_v36 = vunpack.c.l.bf16 %v6873_v45  ;;  %v6875_v7 = vunpack.c.h.bf16 %v6873_v45  ;;  %v6877_v20 = vunpack.c.l.bf16 %v6876_v39  ;;  %1601 = vmatpush1.bf16.msra.mxu1 %v1253_v23 }
 0x12d   : > { %v6878_v2 = vunpack.c.h.bf16 %v6876_v39  ;;  %1489 = vmatprep.subr.bf16.mxu0 %v1256_v43  ;;  %v6880_v32 = vunpack.c.l.bf16 %v6879_v35  ;;  %v6881_v1 = vunpack.c.l.bf16 %v6862_v57  ;;  %v1184_v4 = vmax.f32 %v5939_v28, 0.0  ;;  %3535 = vperm.xlu0 %4857, %v3505_v17   ;;  %v3513_v17 = vld [vmem:[%s6660_s9 + $0x140] sm:$0xff] }
 0x12e   : > { %v6055_v13 = vadd.f32 %v943_v61, %v6874_v36  ;;  %v6059_v40 = vadd.f32 %v943_v61, %v6875_v7  ;;  %v6063_v55 = vadd.f32 %v943_v61, %v6877_v20  ;;  %v1258_v18 = vpack.c.bf16 %v1178_v48, %v1174_v54  ;;  %v948_v48 = vpop.permute.xlu0 %947  ;;  %v6889_v36 = vld [vmem:[#allocation27_spill] sm:$0xff] }
 0x12f   : > { %v6067_v44 = vadd.f32 %v943_v61, %v6878_v2  ;;  %v6071_v53 = vadd.f32 %v938_v34, %v6880_v32  ;;  %v1043_v58 = vadd.f32 %v5900_v3, %v6881_v1  ;;  %v6882_v41 = vunpack.c.l.bf16 %v6864_v56  ;;  %v6886_v56 = vld [vmem:[#allocation26_spill] sm:$0xff] }
 0x130   : > { %v6883_v61 = vunpack.c.l.bf16 %v6866_v15  ;;  %v6884_v52 = vunpack.c.l.bf16 %v6868_v0  ;;  %v1182_v62 = vmax.f32 %v5983_v37, 0.0  ;;  %1602 = vmatprep.subr.bf16.mxu1 %v1258_v18  ;;  %v6885_v28 = vunpack.c.h.bf16 %v6879_v35 }
 0x131   : > { %v1047_v49 = vadd.f32 %v5898_v59, %v6882_v41  ;;  %v6887_v47 = vunpack.c.l.bf16 %v6886_v56  ;;  %v1171_v15 = vmax.f32 %v1043_v58, 0.0  ;;  %v6888_v37 = vunpack.c.h.bf16 %v6886_v56  ;;  %v3508_v41 = vld [vmem:[%s6660_s9 + $0x118] sm:$0xff] }
 0x132   : > { %v1045_v14 = vadd.f32 %v5900_v3, %v6883_v61  ;;  %v1049_v22 = vadd.f32 %v5898_v59, %v6884_v52  ;;  %v6089_v57 = vadd.f32 %v938_v34, %v6885_v28  ;;  %v1186_v3 = vmax.f32 %v5947_v11, 0.0  ;;  %v3506_v59 = vld [vmem:[%s6660_s9 + $0x108] sm:$0xff] }
 0x133   : > { %v6093_v42 = vadd.f32 %v938_v34, %v6887_v47  ;;  %v1070_v0 = vadd.f32 %v938_v34, %v6888_v37  ;;  %v1175_v54 = vmax.f32 %v1047_v49, 0.0  ;;  %v1260_v27 = vpack.c.bf16 %v1184_v4, %v1180_v10  ;;  %3540 = vperm.xlu1 %4858, %v3506_v59  }
 0x134   : > { %v1173_v23 = vmax.f32 %v1045_v14, 0.0  ;;  %v1177_v43 = vmax.f32 %v1049_v22, 0.0  ;;  %v1262_v45 = vpack.c.bf16 %v1186_v3, %v1182_v62  ;;  %v6890_v7 = vunpack.c.l.bf16 %v6889_v36 }
 0x135   : > { %v6891_v39 = vunpack.c.h.bf16 %v6889_v36  ;;  %v1255_v2 = vpack.c.bf16 %v1175_v54, %v1171_v15  ;;  %v6892_v18 = vunpack.c.l.bf16 %v5672_v30  ;;  %v6118_v32 = vadd.f32 %v953_v21, %v762_v50  ;;  %v4859_v36 = vld [vmem:[%s6655_s4] ss:$8 sps:$4 sm:$0xff]  }
 0x136   : > { %v6106_v11 = vadd.f32 %v953_v21, %v6890_v7  ;;  %v1257_v34 = vpack.c.bf16 %v1177_v43, %v1173_v23  ;;  %v6122_v10 = vadd.f32 %v948_v48, %v756_v60  ;;  %v1179_v1 = vmax.f32 %v5951_v8, 0.0  ;;  %v3516_v7 = vld [vmem:[%s6660_s9 + $0x158] sm:$0xff] }
 0x137   : > { %v6110_v20 = vadd.f32 %v953_v21, %v6891_v39  ;;  %v6114_v35 = vadd.f32 %v953_v21, %v6892_v18  ;;  %v1183_v58 = vmax.f32 %v5935_v19, 0.0  ;;  %v1181_v4 = vmax.f32 %v5970_v31, 0.0  ;;  %1490 = vmatpush1.bf16.msra.mxu0 %v1255_v2  ;;  %v3507_v19 = vld [vmem:[%s6660_s9 + $0x110] sm:$0xff]  ;;  %3550 = vperm.xlu1 %4858, %v3508_v41   ;;  %v3517_v2 = vld [vmem:[%s6660_s9 + $0x160] sm:$0xff]  ;;  %v4010_v18 = vld [vmem:[%s6660_s9 + $0x178] sm:$0xff] }
 0x138   : > { %1603 = vmatpush1.bf16.msra.mxu1 %v1257_v34  ;;  %v1185_v30 = vmax.f32 %v5943_v6, 0.0  ;;  %v1188_v50 = vmax.f32 %v6011_v9, 0.0  ;;  %v1192_v60 = vmax.f32 %v5991_v25, 0.0  ;;  %v1190_v49 = vmax.f32 %v6044_v5, 0.0  ;;  %1491 = vmatprep.subr.bf16.mxu0 %v1260_v27  ;;  %v3515_v39 = vld [vmem:[%s6660_s9 + $0x150] sm:$0xff] }
 0x139   : > { %1604 = vmatprep.subr.bf16.mxu1 %v1262_v45  ;;  %v1078_v8 = vadd.f32 %v948_v48, %v758_v16  ;;  %v1259_v31 = vpack.c.bf16 %v1183_v58, %v1179_v1  ;;  %v1194_v61 = vmax.f32 %v5999_v12, 0.0  ;;  %v1187_v6 = vmax.f32 %v6003_v29, 0.0  ;;  %3545 = vperm.xlu0 %4857, %v3507_v19   ;;  %v3510_v12 = vld [vmem:[%s6660_s9 + $0x128] sm:$0xff]  ;;  %v4864_v34 = vld [vmem:[%s6655_s4 + $0x10] ss:$8 sps:$4 sm:$0xff]   ;;  %v4011_v1 = vld [vmem:[%s6660_s9 + $0x180] sm:$0xff] }
 0x13a   : > { %v1261_v14 = vpack.c.bf16 %v1185_v30, %v1181_v4  ;;  %v1191_v9 = vmax.f32 %v5987_v63, 0.0  ;;  %v1189_v25 = vmax.f32 %v6040_v26, 0.0  ;;  %v1193_v5 = vmax.f32 %v5995_v46, 0.0  ;;  %v3509_v26 = vld [vmem:[%s6660_s9 + $0x120] sm:$0xff]  ;;  %v4014_v4 = vld [vmem:[%s6660_s9 + $0x198] sm:$0xff]  ;;  %v4013_v30 = vld [vmem:[%s6660_s9 + $0x190] sm:$0xff] }
 0x13b   : > { %v1264_v52 = vpack.c.bf16 %v1192_v60, %v1188_v50  ;;  %v1266_v22 = vpack.c.bf16 %v1194_v61, %v1190_v49  ;;  %v1196_v62 = vmax.f32 %v6089_v57, 0.0  ;;  %v1200_v21 = vmax.f32 %v6059_v40, 0.0  ;;  %1492 = vmatpush1.bf16.msra.mxu0 %v1259_v31  ;;  %3560 = vperm.xlu1 %4858, %v3510_v12   ;;  %v4867_v58 = vld [vmem:[%s6655_s4 + $0x20] ss:$8 sps:$4 sm:$0xff]   ;;  %v4868_v41 = vld [vmem:[%s6655_s4 + $0x34] ss:$8 sps:$4 sm:$0xff]   ;;  %v1315_v12 = vpop.permute.xlu1 %1314 }
 0x13c   : > { %v1075_v29 = vadd.f32 %v948_v48, %v755_v33  ;;  %v1077_v63 = vadd.f32 %v948_v48, %v757_v38  ;;  %1605 = vmatpush1.bf16.msra.mxu1 %v1261_v14  ;;  %v1198_v46 = vmax.f32 %v1070_v0, 0.0  ;;  %v1202_v16 = vmax.f32 %v6067_v44, 0.0  ;;  %v3514_v48 = vld [vmem:[%s6660_s9 + $0x148] sm:$0xff]  ;;  %v4015_v60 = vld [vmem:[%s6660_s9 + $0x1a0] sm:$0xff]  ;;  %v4870_v49 = vld [vmem:[%s6655_s4 + $0x30] ss:$8 sps:$4 sm:$0xff]  }
 0x13d   : > { %1493 = vmatprep.subr.bf16.mxu0 %v1264_v52  ;;  %1606 = vmatprep.subr.bf16.mxu1 %v1266_v22  ;;  %v1195_v40 = vmax.f32 %v6071_v53, 0.0  ;;  %v1199_v28 = vmax.f32 %v6055_v13, 0.0  ;;  %v1197_v24 = vmax.f32 %v6093_v42, 0.0  ;;  %v1201_v33 = vmax.f32 %v6063_v55, 0.0  ;;  %v3512_v13 = vld [vmem:[%s6660_s9 + $0x138] sm:$0xff]  ;;  %v3511_v55 = vld [vmem:[%s6660_s9 + $0x130] sm:$0xff] }
 0x13e   : > { %v1263_v51 = vpack.c.bf16 %v1191_v9, %v1187_v6  ;;  %v1265_v38 = vpack.c.bf16 %v1193_v5, %v1189_v25  ;;  %v1268_v57 = vpack.c.bf16 %v1200_v21, %v1196_v62  ;;  %v1270_v56 = vpack.c.bf16 %v1202_v16, %v1198_v46  ;;  %3555 = vperm.xlu0 %4857, %v3509_v26   ;;  %v4278_v50 = vld [vmem:[%s6660_s9 + $0x1a8] sm:$0xff]  ;;  %v4280_v19 = vld [vmem:[%s6660_s9 + $0x1b8] sm:$0xff]  ;;  %v4279_v31 = vld [vmem:[%s6660_s9 + $0x1b0] sm:$0xff] }
 0x13f   : > { %v1204_v44 = vmax.f32 %v6122_v10, 0.0  ;;  %v1208_v47 = vmax.f32 %v6110_v20, 0.0  ;;  %v1206_v15 = vmax.f32 %v1078_v8, 0.0  ;;  %v1210_v3 = vmax.f32 %v6118_v32, 0.0  ;;  %3570 = vperm.xlu1 %4858, %v3512_v13   ;;  %v4008_v20 = vld [vmem:[%s6660_s9 + $0x168] sm:$0xff]  ;;  %v4009_v32 = vld [vmem:[%s6660_s9 + $0x170] sm:$0xff] }
 0x140   : > { %1494 = vmatpush1.bf16.msra.mxu0 %v1263_v51  ;;  %1607 = vmatpush1.bf16.msra.mxu1 %v1265_v38  ;;  %v1267_v53 = vpack.c.bf16 %v1199_v28, %v1195_v40  ;;  %v1269_v42 = vpack.c.bf16 %v1201_v33, %v1197_v24  ;;  %v1203_v59 = vmax.f32 %v1075_v29, 0.0  ;;  %v1207_v37 = vmax.f32 %v6106_v11, 0.0  ;;  %v4862_v11 = vld [vmem:[%s6655_s4 + $0x14] ss:$8 sps:$4 sm:$0xff]   ;;  %v4012_v10 = vld [vmem:[%s6660_s9 + $0x188] sm:$0xff]  ;;  %v4281_v6 = vld [vmem:[%s6660_s9 + $0x1c0] sm:$0xff]  ;;  %v1310_v29 = vpop.permute.xlu0 %1309 }
 0x141   : > { %1495 = vmatprep.subr.bf16.mxu0 %v1268_v57  ;;  %1608 = vmatprep.subr.bf16.mxu1 %v1270_v56  ;;  %v1205_v0 = vmax.f32 %v1077_v63, 0.0  ;;  %v1209_v54 = vmax.f32 %v6114_v35, 0.0  ;;  %v1272_v23 = vpack.c.bf16 %v1208_v47, %v1204_v44  ;;  %v1274_v43 = vpack.c.bf16 %v1210_v3, %v1206_v15  ;;  %v4865_v35 = vld [vmem:[%s6655_s4 + $0x24] ss:$8 sps:$4 sm:$0xff]   ;;  %v4873_v14 = vld [vmem:[%s6655_s4 + $0x40] ss:$8 sps:$4 sm:$0xff]  }
 0x142   : > { %3565 = vperm.xlu0 %4857, %v3511_v55   ;;  %v1271_v27 = vpack.c.bf16 %v1207_v37, %v1203_v59  ;;  %v4871_v8 = vld [vmem:[%s6655_s4 + $0x44] ss:$8 sps:$4 sm:$0xff]   ;;  %v4874_v9 = vld [vmem:[%s6655_s4 + $0x54] ss:$8 sps:$4 sm:$0xff]   ;;  %v4876_v25 = vld [vmem:[%s6655_s4 + $0x50] ss:$8 sps:$4 sm:$0xff]  }
 0x143   : > { %v1273_v45 = vpack.c.bf16 %v1209_v54, %v1205_v0  ;;  %3580 = vperm.xlu1 %4858, %v3514_v48   ;;  %v4449_v61 = vld [vmem:[%s6660_s9 + $0x1c8] sm:$0xff]  ;;  %v4880_v22 = vld [vmem:[%s6655_s4 + $0x74] ss:$8 sps:$4 sm:$0xff]   ;;  %v4882_v62 = vld [vmem:[%s6655_s4 + $0x70] ss:$8 sps:$4 sm:$0xff]   ;;  %v6893_v21 = vmov 0  }
 0x144   : > { %1496 = vmatpush1.bf16.msra.mxu0 %v1267_v53  ;;  %1609 = vmatpush1.bf16.msra.mxu1 %v1269_v42  ;;  %v4877_v5 = vld [vmem:[%s6655_s4 + $0x64] ss:$8 sps:$4 sm:$0xff]   ;;  %v4879_v52 = vld [vmem:[%s6655_s4 + $0x60] ss:$8 sps:$4 sm:$0xff]  }
 0x145   : > { %1497 = vmatprep.subr.bf16.mxu0 %v1272_v23  ;;  %1610 = vmatprep.subr.bf16.mxu1 %v1274_v43  ;;  %v1325_v23 = vpop.permute.xlu1 %1324  ;;  %v1320_v43 = vpop.permute.xlu0 %1319 }
 0x146   : > { %3575 = vperm.xlu0 %4857, %v3513_v17  }
 0x147   : > { %3590 = vperm.xlu1 %4858, %v3516_v7  }
 0x148   : > { %1498 = vmatpush1.bf16.msra.mxu0 %v1271_v27  ;;  %1611 = vmatpush1.bf16.msra.mxu1 %v1273_v45 }
 0x14a   : > { %3585 = vperm.xlu0 %4857, %v3515_v39  }
 0x14b   : > { %1500 = vmatmul.mubr.bf16.vlgmr.msra.gmra.mrb[0].mxu0 %v4859_v36  ;;  %1613 = vmatmul.mubr.bf16.vlgmr.msra.gmra.mrb[0].mxu1 %v4859_v36 }
 0x14c   : > { %1509 = vmatprep.mubr.bf16.mxu0 %v4862_v11  ;;  %1622 = vmatprep.mubr.bf16.mxu1 %v4862_v11 }
 0x14d   : > { %4018 = vperm.xlu1 %4858, %v4008_v20  }
 0x14e   : > { %3595 = vperm.xlu0 %4857, %v3517_v2  }
 0x151   : > { %4028 = vperm.xlu1 %4858, %v4010_v18  }
 0x152   : > { %4023 = vperm.xlu0 %4857, %v4009_v32  }
 0x153   : > { %1510 = vmatmul.mubr.bf16.gmra.mrb[4].mxu0 %v4864_v34  ;;  %1623 = vmatmul.mubr.bf16.gmra.mrb[4].mxu1 %v4864_v34 }
 0x154   : > { %1519 = vmatprep.mubr.bf16.mxu0 %v4865_v35  ;;  %1632 = vmatprep.mubr.bf16.mxu1 %v4865_v35 }
 0x155   : > { %4038 = vperm.xlu1 %4858, %v4012_v10  }
 0x156   : > { %4033 = vperm.xlu0 %4857, %v4011_v1  }
 0x159   : > { %4048 = vperm.xlu1 %4858, %v4014_v4  }
 0x15a   : > { %4043 = vperm.xlu0 %4857, %v4013_v30  }
 0x15b   : > { %1520 = vmatmul.mubr.bf16.gmra.mrb[8].mxu0 %v4867_v58  ;;  %1633 = vmatmul.mubr.bf16.gmra.mrb[8].mxu1 %v4867_v58 }
 0x15c   : > { %1529 = vmatprep.mubr.bf16.mxu0 %v4868_v41  ;;  %1642 = vmatprep.mubr.bf16.mxu1 %v4868_v41 }
 0x15d   : > { %4284 = vperm.xlu1 %4858, %v4278_v50  }
 0x15e   : > { %4053 = vperm.xlu0 %4857, %v4015_v60  }
 0x161   : > { %4294 = vperm.xlu1 %4858, %v4280_v19  }
 0x162   : > { %4289 = vperm.xlu0 %4857, %v4279_v31  }
 0x163   : > { %1530 = vmatmul.mubr.bf16.gmra.mrb[12].mxu0 %v4870_v49  ;;  %1643 = vmatmul.mubr.bf16.gmra.mrb[12].mxu1 %v4870_v49 }
 0x164   : > { %1539 = vmatprep.mubr.bf16.mxu0 %v4871_v8  ;;  %1652 = vmatprep.mubr.bf16.mxu1 %v4871_v8 }
 0x165   : > { %4452 = vperm.xlu1 %4858, %v4449_v61  }
 0x166   : > { %4299 = vperm.xlu0 %4857, %v4281_v6  }
 0x16b   : > { %1540 = vmatmul.mubr.bf16.gmra.mrb[16].mxu0 %v4873_v14  ;;  %1653 = vmatmul.mubr.bf16.gmra.mrb[16].mxu1 %v4873_v14  ;;  %v1335_v14 = vpop.permute.xlu1 %1334 }
 0x16c   : > { %1549 = vmatprep.mubr.bf16.mxu0 %v4874_v9  ;;  %1662 = vmatprep.mubr.bf16.mxu1 %v4874_v9  ;;  %v1330_v9 = vpop.permute.xlu0 %1329 }
 0x173   : > { %1550 = vmatmul.mubr.bf16.gmra.mrb[20].mxu0 %v4876_v25  ;;  %1663 = vmatmul.mubr.bf16.gmra.mrb[20].mxu1 %v4876_v25 }
 0x174   : > { %1559 = vmatprep.mubr.bf16.mxu0 %v4877_v5  ;;  %1672 = vmatprep.mubr.bf16.mxu1 %v4877_v5 }
 0x17b   : > { %1560 = vmatmul.mubr.bf16.gmra.mrb[24].mxu0 %v4879_v52  ;;  %1673 = vmatmul.mubr.bf16.gmra.mrb[24].mxu1 %v4879_v52 }
 0x17c   : > { %1569 = vmatprep.mubr.bf16.mxu0 %v4880_v22  ;;  %1682 = vmatprep.mubr.bf16.mxu1 %v4880_v22 }
 0x183   : > { %1570 = vmatmul.mubr.bf16.gmra.mrb[28].mxu0 %v4882_v62  ;;  %1683 = vmatmul.mubr.bf16.gmra.mrb[28].mxu1 %v4882_v62 }
 0x184   : > { %1901 = vmatprep.mubr.bf16.mxu0 %v6893_v21  ;;  %1974 = vmatprep.mubr.bf16.mxu1 %v6893_v21 }
 0x21e   : > { %v1501_v63 = vpop.f32.mrb[0].mxu0  ;;  %v1614_v46 = vpop.f32.mrb[0].mxu1 }
 0x21f   : > { %v1502_v16 = vadd.f32 %v1501_v63, %v1310_v29  ;;  %v1615_v26 = vadd.f32 %v1614_v46, %v1310_v29  ;;  %v1503_v40 = vpop.f32.mrb[1].mxu0  ;;  %v1616_v28 = vpop.f32.mrb[1].mxu1 }
 0x220   : > { %v1504_v24 = vadd.f32 %v1503_v40, %v1310_v29  ;;  %v1617_v33 = vadd.f32 %v1616_v28, %v1310_v29  ;;  %v1505_v51 = vpop.f32.mrb[2].mxu0  ;;  %v1618_v38 = vpop.f32.mrb[2].mxu1 }
 0x221   : > { %v1506_v57 = vadd.f32 %v1505_v51, %v1315_v12  ;;  %v1619_v56 = vadd.f32 %v1618_v38, %v1315_v12  ;;  %v1507_v44 = vpop.f32.mrb[3].mxu0  ;;  %v1620_v47 = vpop.f32.mrb[3].mxu1  ;;  %v1693_v13 = vmax.f32 %v1502_v16, 0.0  ;;  %v1695_v55 = vmax.f32 %v1615_v26, 0.0 }
 0x222   : > { %v1508_v15 = vadd.f32 %v1507_v44, %v1315_v12  ;;  %v1621_v3 = vadd.f32 %v1620_v47, %v1315_v12  ;;  %v1694_v59 = vmax.f32 %v1504_v24, 0.0  ;;  %v1696_v37 = vmax.f32 %v1617_v33, 0.0 }
 0x223   : > { %v1697_v53 = vmax.f32 %v1506_v57, 0.0  ;;  %v1699_v42 = vmax.f32 %v1619_v56, 0.0 }
 0x224   : > { %v1698_v0 = vmax.f32 %v1508_v15, 0.0  ;;  %v1700_v54 = vmax.f32 %v1621_v3, 0.0 }
 0x225   : > { %v1757_v48 = vpack.c.bf16 %v1697_v53, %v1693_v13  ;;  %v1759_v17 = vpack.c.bf16 %v1699_v42, %v1695_v55 }
 0x226   : > { %v1758_v27 = vpack.c.bf16 %v1698_v0, %v1694_v59  ;;  %v1760_v45 = vpack.c.bf16 %v1700_v54, %v1696_v37  ;;  %v1511_v36 = vpop.f32.mrb[4].mxu0  ;;  %v1624_v7 = vpop.f32.mrb[4].mxu1 }
 0x227   : > { %v1512_v11 = vadd.f32 %v1511_v36, %v1320_v43  ;;  %v1625_v39 = vadd.f32 %v1624_v7, %v1320_v43  ;;  %v1513_v20 = vpop.f32.mrb[5].mxu0  ;;  %v1626_v2 = vpop.f32.mrb[5].mxu1 }
 0x228   : > { %v1514_v34 = vadd.f32 %v1513_v20, %v1320_v43  ;;  %v1627_v18 = vadd.f32 %v1626_v2, %v1320_v43  ;;  %v1515_v35 = vpop.f32.mrb[6].mxu0  ;;  %v1628_v32 = vpop.f32.mrb[6].mxu1  ;;  %1869 = vmatprep.subr.bf16.mxu0 %v1758_v27  ;;  %1942 = vmatprep.subr.bf16.mxu1 %v1760_v45 }
 0x229   : > { %v1516_v10 = vadd.f32 %v1515_v35, %v1325_v23  ;;  %v1629_v1 = vadd.f32 %v1628_v32, %v1325_v23  ;;  %v1517_v58 = vpop.f32.mrb[7].mxu0  ;;  %v1630_v4 = vpop.f32.mrb[7].mxu1  ;;  %1870 = vmatpush1.bf16.msra.mxu0 %v1757_v48  ;;  %1943 = vmatpush1.bf16.msra.mxu1 %v1759_v17  ;;  %v1701_v50 = vmax.f32 %v1512_v11, 0.0  ;;  %v1703_v60 = vmax.f32 %v1625_v39, 0.0 }
 0x22a   : > { %v1518_v41 = vadd.f32 %v1517_v58, %v1325_v23  ;;  %v1631_v30 = vadd.f32 %v1630_v4, %v1325_v23  ;;  %v1702_v8 = vmax.f32 %v1514_v34, 0.0  ;;  %v1704_v31 = vmax.f32 %v1627_v18, 0.0  ;;  %v1345_v37 = vpop.permute.xlu1 %1344  ;;  %v1340_v0 = vpop.permute.xlu0 %1339 }
 0x22b   : > { %v1705_v49 = vmax.f32 %v1516_v10, 0.0  ;;  %v1707_v19 = vmax.f32 %v1629_v1, 0.0 }
 0x22c   : > { %v1706_v61 = vmax.f32 %v1518_v41, 0.0  ;;  %v1708_v6 = vmax.f32 %v1631_v30, 0.0 }
 0x22d   : > { %v1761_v25 = vpack.c.bf16 %v1705_v49, %v1701_v50  ;;  %v1763_v5 = vpack.c.bf16 %v1707_v19, %v1703_v60 }
 0x22e   : > { %v1762_v52 = vpack.c.bf16 %v1706_v61, %v1702_v8  ;;  %v1764_v22 = vpack.c.bf16 %v1708_v6, %v1704_v31  ;;  %v1521_v62 = vpop.f32.mrb[8].mxu0  ;;  %v1634_v12 = vpop.f32.mrb[8].mxu1 }
 0x22f   : > { %v1522_v29 = vadd.f32 %v1521_v62, %v1330_v9  ;;  %v1635_v63 = vadd.f32 %v1634_v12, %v1330_v9  ;;  %v1523_v46 = vpop.f32.mrb[9].mxu0  ;;  %v1636_v16 = vpop.f32.mrb[9].mxu1 }
 0x230   : > { %v1524_v26 = vadd.f32 %v1523_v46, %v1330_v9  ;;  %v1637_v40 = vadd.f32 %v1636_v16, %v1330_v9  ;;  %v1525_v28 = vpop.f32.mrb[10].mxu0  ;;  %v1638_v24 = vpop.f32.mrb[10].mxu1  ;;  %1871 = vmatprep.subr.bf16.mxu0 %v1762_v52  ;;  %1944 = vmatprep.subr.bf16.mxu1 %v1764_v22 }
 0x231   : > { %v1526_v33 = vadd.f32 %v1525_v28, %v1335_v14  ;;  %v1639_v51 = vadd.f32 %v1638_v24, %v1335_v14  ;;  %v1527_v38 = vpop.f32.mrb[11].mxu0  ;;  %v1640_v57 = vpop.f32.mrb[11].mxu1  ;;  %1872 = vmatpush1.bf16.msra.mxu0 %v1761_v25  ;;  %1945 = vmatpush1.bf16.msra.mxu1 %v1763_v5  ;;  %v1709_v47 = vmax.f32 %v1522_v29, 0.0  ;;  %v1711_v15 = vmax.f32 %v1635_v63, 0.0 }
 0x232   : > { %v1528_v56 = vadd.f32 %v1527_v38, %v1335_v14  ;;  %v1641_v44 = vadd.f32 %v1640_v57, %v1335_v14  ;;  %v1710_v55 = vmax.f32 %v1524_v26, 0.0  ;;  %v1712_v53 = vmax.f32 %v1637_v40, 0.0  ;;  %v1355_v31 = vpop.permute.xlu1 %1354  ;;  %v1350_v61 = vpop.permute.xlu0 %1349 }
 0x233   : > { %v1713_v3 = vmax.f32 %v1526_v33, 0.0  ;;  %v1715_v13 = vmax.f32 %v1639_v51, 0.0 }
 0x234   : > { %v1714_v42 = vmax.f32 %v1528_v56, 0.0  ;;  %v1716_v59 = vmax.f32 %v1641_v44, 0.0 }
 0x235   : > { %v1765_v54 = vpack.c.bf16 %v1713_v3, %v1709_v47  ;;  %v1767_v23 = vpack.c.bf16 %v1715_v13, %v1711_v15 }
 0x236   : > { %v1766_v43 = vpack.c.bf16 %v1714_v42, %v1710_v55  ;;  %v1768_v48 = vpack.c.bf16 %v1716_v59, %v1712_v53  ;;  %v1531_v17 = vpop.f32.mrb[12].mxu0  ;;  %v1644_v27 = vpop.f32.mrb[12].mxu1 }
 0x237   : > { %v1532_v45 = vadd.f32 %v1531_v17, %v1340_v0  ;;  %v1645_v36 = vadd.f32 %v1644_v27, %v1340_v0  ;;  %v1533_v7 = vpop.f32.mrb[13].mxu0  ;;  %v1646_v11 = vpop.f32.mrb[13].mxu1 }
 0x238   : > { %v1534_v39 = vadd.f32 %v1533_v7, %v1340_v0  ;;  %v1647_v20 = vadd.f32 %v1646_v11, %v1340_v0  ;;  %v1535_v2 = vpop.f32.mrb[14].mxu0  ;;  %v1648_v34 = vpop.f32.mrb[14].mxu1  ;;  %1873 = vmatprep.subr.bf16.mxu0 %v1766_v43  ;;  %1946 = vmatprep.subr.bf16.mxu1 %v1768_v48 }
 0x239   : > { %v1536_v18 = vadd.f32 %v1535_v2, %v1345_v37  ;;  %v1649_v35 = vadd.f32 %v1648_v34, %v1345_v37  ;;  %v1537_v32 = vpop.f32.mrb[15].mxu0  ;;  %v1650_v10 = vpop.f32.mrb[15].mxu1  ;;  %1874 = vmatpush1.bf16.msra.mxu0 %v1765_v54  ;;  %1947 = vmatpush1.bf16.msra.mxu1 %v1767_v23  ;;  %v1717_v4 = vmax.f32 %v1532_v45, 0.0  ;;  %v1719_v41 = vmax.f32 %v1645_v36, 0.0 }
 0x23a   : > { %v1538_v1 = vadd.f32 %v1537_v32, %v1345_v37  ;;  %v1651_v58 = vadd.f32 %v1650_v10, %v1345_v37  ;;  %v1718_v60 = vmax.f32 %v1534_v39, 0.0  ;;  %v1720_v49 = vmax.f32 %v1647_v20, 0.0  ;;  %v1365_v53 = vpop.permute.xlu1 %1364  ;;  %v1360_v42 = vpop.permute.xlu0 %1359 }
 0x23b   : > { %v1721_v30 = vmax.f32 %v1536_v18, 0.0  ;;  %v1723_v50 = vmax.f32 %v1649_v35, 0.0 }
 0x23c   : > { %v1722_v19 = vmax.f32 %v1538_v1, 0.0  ;;  %v1724_v8 = vmax.f32 %v1651_v58, 0.0 }
 0x23d   : > { %v1769_v6 = vpack.c.bf16 %v1721_v30, %v1717_v4  ;;  %v1771_v14 = vpack.c.bf16 %v1723_v50, %v1719_v41 }
 0x23e   : > { %v1770_v9 = vpack.c.bf16 %v1722_v19, %v1718_v60  ;;  %v1772_v25 = vpack.c.bf16 %v1724_v8, %v1720_v49  ;;  %v1541_v5 = vpop.f32.mrb[16].mxu0  ;;  %v1654_v52 = vpop.f32.mrb[16].mxu1 }
 0x23f   : > { %v1542_v22 = vadd.f32 %v1541_v5, %v1350_v61  ;;  %v1655_v62 = vadd.f32 %v1654_v52, %v1350_v61  ;;  %v1543_v12 = vpop.f32.mrb[17].mxu0  ;;  %v1656_v29 = vpop.f32.mrb[17].mxu1 }
 0x240   : > { %v1544_v63 = vadd.f32 %v1543_v12, %v1350_v61  ;;  %v1657_v46 = vadd.f32 %v1656_v29, %v1350_v61  ;;  %v1545_v16 = vpop.f32.mrb[18].mxu0  ;;  %v1658_v26 = vpop.f32.mrb[18].mxu1  ;;  %1875 = vmatprep.subr.bf16.mxu0 %v1770_v9  ;;  %1948 = vmatprep.subr.bf16.mxu1 %v1772_v25 }
 0x241   : > { %v1546_v40 = vadd.f32 %v1545_v16, %v1355_v31  ;;  %v1659_v28 = vadd.f32 %v1658_v26, %v1355_v31  ;;  %v1547_v24 = vpop.f32.mrb[19].mxu0  ;;  %v1660_v33 = vpop.f32.mrb[19].mxu1  ;;  %1876 = vmatpush1.bf16.msra.mxu0 %v1769_v6  ;;  %1949 = vmatpush1.bf16.msra.mxu1 %v1771_v14  ;;  %v1725_v57 = vmax.f32 %v1542_v22, 0.0  ;;  %v1727_v56 = vmax.f32 %v1655_v62, 0.0 }
 0x242   : > { %v1548_v51 = vadd.f32 %v1547_v24, %v1355_v31  ;;  %v1661_v38 = vadd.f32 %v1660_v33, %v1355_v31  ;;  %v1726_v15 = vmax.f32 %v1544_v63, 0.0  ;;  %v1728_v3 = vmax.f32 %v1657_v46, 0.0  ;;  %v1375_v49 = vpop.permute.xlu1 %1374  ;;  %v1370_v19 = vpop.permute.xlu0 %1369 }
 0x243   : > { %v1729_v44 = vmax.f32 %v1546_v40, 0.0  ;;  %v1731_v47 = vmax.f32 %v1659_v28, 0.0 }
 0x244   : > { %v1730_v13 = vmax.f32 %v1548_v51, 0.0  ;;  %v1732_v55 = vmax.f32 %v1661_v38, 0.0 }
 0x245   : > { %v1773_v59 = vpack.c.bf16 %v1729_v44, %v1725_v57  ;;  %v1775_v37 = vpack.c.bf16 %v1731_v47, %v1727_v56 }
 0x246   : > { %v1774_v0 = vpack.c.bf16 %v1730_v13, %v1726_v15  ;;  %v1776_v54 = vpack.c.bf16 %v1732_v55, %v1728_v3  ;;  %v1551_v23 = vpop.f32.mrb[20].mxu0  ;;  %v1664_v43 = vpop.f32.mrb[20].mxu1 }
 0x247   : > { %v1552_v48 = vadd.f32 %v1551_v23, %v1360_v42  ;;  %v1665_v17 = vadd.f32 %v1664_v43, %v1360_v42  ;;  %v1553_v27 = vpop.f32.mrb[21].mxu0  ;;  %v1666_v45 = vpop.f32.mrb[21].mxu1 }
 0x248   : > { %v1554_v36 = vadd.f32 %v1553_v27, %v1360_v42  ;;  %v1667_v7 = vadd.f32 %v1666_v45, %v1360_v42  ;;  %v1555_v11 = vpop.f32.mrb[22].mxu0  ;;  %v1668_v39 = vpop.f32.mrb[22].mxu1  ;;  %1877 = vmatprep.subr.bf16.mxu0 %v1774_v0  ;;  %1950 = vmatprep.subr.bf16.mxu1 %v1776_v54 }
 0x249   : > { %v1556_v20 = vadd.f32 %v1555_v11, %v1365_v53  ;;  %v1669_v2 = vadd.f32 %v1668_v39, %v1365_v53  ;;  %v1557_v34 = vpop.f32.mrb[23].mxu0  ;;  %v1670_v18 = vpop.f32.mrb[23].mxu1  ;;  %1878 = vmatpush1.bf16.msra.mxu0 %v1773_v59  ;;  %1951 = vmatpush1.bf16.msra.mxu1 %v1775_v37  ;;  %v1733_v10 = vmax.f32 %v1552_v48, 0.0  ;;  %v1735_v1 = vmax.f32 %v1665_v17, 0.0 }
 0x24a   : > { %v1558_v35 = vadd.f32 %v1557_v34, %v1365_v53  ;;  %v1671_v32 = vadd.f32 %v1670_v18, %v1365_v53  ;;  %v1734_v41 = vmax.f32 %v1554_v36, 0.0  ;;  %v1736_v30 = vmax.f32 %v1667_v7, 0.0  ;;  %v1385_v3 = vpop.permute.xlu1 %1384  ;;  %v1380_v13 = vpop.permute.xlu0 %1379 }
 0x24b   : > { %v1737_v58 = vmax.f32 %v1556_v20, 0.0  ;;  %v1739_v4 = vmax.f32 %v1669_v2, 0.0 }
 0x24c   : > { %v1738_v50 = vmax.f32 %v1558_v35, 0.0  ;;  %v1740_v60 = vmax.f32 %v1671_v32, 0.0 }
 0x24d   : > { %v1777_v8 = vpack.c.bf16 %v1737_v58, %v1733_v10  ;;  %v1779_v31 = vpack.c.bf16 %v1739_v4, %v1735_v1 }
 0x24e   : > { %v1778_v61 = vpack.c.bf16 %v1738_v50, %v1734_v41  ;;  %v1780_v6 = vpack.c.bf16 %v1740_v60, %v1736_v30  ;;  %v1561_v14 = vpop.f32.mrb[24].mxu0  ;;  %v1674_v9 = vpop.f32.mrb[24].mxu1 }
 0x24f   : > { %v1562_v25 = vadd.f32 %v1561_v14, %v1370_v19  ;;  %v1675_v5 = vadd.f32 %v1674_v9, %v1370_v19  ;;  %v1563_v52 = vpop.f32.mrb[25].mxu0  ;;  %v1676_v22 = vpop.f32.mrb[25].mxu1 }
 0x250   : > { %v1564_v62 = vadd.f32 %v1563_v52, %v1370_v19  ;;  %v1677_v12 = vadd.f32 %v1676_v22, %v1370_v19  ;;  %v1565_v29 = vpop.f32.mrb[26].mxu0  ;;  %v1678_v63 = vpop.f32.mrb[26].mxu1  ;;  %1879 = vmatprep.subr.bf16.mxu0 %v1778_v61  ;;  %1952 = vmatprep.subr.bf16.mxu1 %v1780_v6  ;;  %v4883_v19 = vld [vmem:[%s6656_s5] sm:$0xff]   ;;  %v4886_v61 = vld [vmem:[%s6656_s5 + $0x18] sm:$0xff]  }
 0x251   : > { %v1566_v46 = vadd.f32 %v1565_v29, %v1375_v49  ;;  %v1679_v16 = vadd.f32 %v1678_v63, %v1375_v49  ;;  %v1567_v26 = vpop.f32.mrb[27].mxu0  ;;  %v1680_v40 = vpop.f32.mrb[27].mxu1  ;;  %1880 = vmatpush1.bf16.msra.mxu0 %v1777_v8  ;;  %1953 = vmatpush1.bf16.msra.mxu1 %v1779_v31  ;;  %v1741_v33 = vmax.f32 %v1562_v25, 0.0  ;;  %v1743_v51 = vmax.f32 %v1675_v5, 0.0  ;;  %v4884_v8 = vld [vmem:[%s6656_s5 + $0x8] sm:$0xff]   ;;  %v4885_v31 = vld [vmem:[%s6656_s5 + $0x10] sm:$0xff]  }
 0x252   : > { %v1568_v28 = vadd.f32 %v1567_v26, %v1375_v49  ;;  %v1681_v24 = vadd.f32 %v1680_v40, %v1375_v49  ;;  %v1742_v56 = vmax.f32 %v1564_v62, 0.0  ;;  %v1744_v44 = vmax.f32 %v1677_v12, 0.0  ;;  %v1813_v6 = vpop.permute.xlu1 %1812  ;;  %v1808_v14 = vpop.permute.xlu0 %1807 }
 0x253   : > { %v1745_v38 = vmax.f32 %v1566_v46, 0.0  ;;  %v1747_v57 = vmax.f32 %v1679_v16, 0.0 }
 0x254   : > { %v1746_v47 = vmax.f32 %v1568_v28, 0.0  ;;  %v1748_v15 = vmax.f32 %v1681_v24, 0.0 }
 0x255   : > { %v1781_v55 = vpack.c.bf16 %v1745_v38, %v1741_v33  ;;  %v1783_v53 = vpack.c.bf16 %v1747_v57, %v1743_v51 }
 0x256   : > { %v1782_v42 = vpack.c.bf16 %v1746_v47, %v1742_v56  ;;  %v1784_v59 = vpack.c.bf16 %v1748_v15, %v1744_v44  ;;  %v1571_v37 = vpop.f32.mrb[28].mxu0  ;;  %v1684_v0 = vpop.f32.mrb[28].mxu1 }
 0x257   : > { %v1572_v54 = vadd.f32 %v1571_v37, %v1380_v13  ;;  %v1685_v23 = vadd.f32 %v1684_v0, %v1380_v13  ;;  %v1573_v43 = vpop.f32.mrb[29].mxu0  ;;  %v1686_v48 = vpop.f32.mrb[29].mxu1 }
 0x258   : > { %v1574_v17 = vadd.f32 %v1573_v43, %v1380_v13  ;;  %v1687_v27 = vadd.f32 %v1686_v48, %v1380_v13  ;;  %v1575_v45 = vpop.f32.mrb[30].mxu0  ;;  %v1688_v36 = vpop.f32.mrb[30].mxu1  ;;  %1881 = vmatprep.subr.bf16.mxu0 %v1782_v42  ;;  %1954 = vmatprep.subr.bf16.mxu1 %v1784_v59 }
 0x259   : > { %v1576_v7 = vadd.f32 %v1575_v45, %v1385_v3  ;;  %v1689_v11 = vadd.f32 %v1688_v36, %v1385_v3  ;;  %v1577_v39 = vpop.f32.mrb[31].mxu0  ;;  %v1690_v20 = vpop.f32.mrb[31].mxu1  ;;  %1882 = vmatpush1.bf16.msra.mxu0 %v1781_v55  ;;  %1955 = vmatpush1.bf16.msra.mxu1 %v1783_v53  ;;  %v1749_v18 = vmax.f32 %v1572_v54, 0.0  ;;  %v1751_v35 = vmax.f32 %v1685_v23, 0.0 }
 0x25a   : > { %v1578_v2 = vadd.f32 %v1577_v39, %v1385_v3  ;;  %v1691_v34 = vadd.f32 %v1690_v20, %v1385_v3  ;;  %v1750_v1 = vmax.f32 %v1574_v17, 0.0  ;;  %v1752_v58 = vmax.f32 %v1687_v27, 0.0  ;;  %v1823_v13 = vpop.permute.xlu1 %1822  ;;  %v1818_v55 = vpop.permute.xlu0 %1817 }
 0x25b   : > { %v1753_v32 = vmax.f32 %v1576_v7, 0.0  ;;  %v1755_v10 = vmax.f32 %v1689_v11, 0.0 }
 0x25c   : > { %v1754_v4 = vmax.f32 %v1578_v2, 0.0  ;;  %v1756_v41 = vmax.f32 %v1691_v34, 0.0 }
 0x25d   : > { %v1785_v30 = vpack.c.bf16 %v1753_v32, %v1749_v18  ;;  %v1787_v50 = vpack.c.bf16 %v1755_v10, %v1751_v35 }
 0x25e   : > { %v1786_v60 = vpack.c.bf16 %v1754_v4, %v1750_v1  ;;  %v1788_v49 = vpack.c.bf16 %v1756_v41, %v1752_v58 }
 0x260   : > { %1883 = vmatprep.subr.bf16.mxu0 %v1786_v60  ;;  %1956 = vmatprep.subr.bf16.mxu1 %v1788_v49  ;;  %v1828_v60 = vpop.permute.xlu0 %1827 }
 0x261   : > { %1884 = vmatpush1.bf16.msra.mxu0 %v1785_v30  ;;  %1957 = vmatpush1.bf16.msra.mxu1 %v1787_v50  ;;  %v1833_v50 = vpop.permute.xlu1 %1832 }
 0x264   : > { %1902 = vmatmul.mubr.bf16.vlgmr.msra.gmra.mrb[32].mxu0 %v4883_v19  ;;  %1975 = vmatmul.mubr.bf16.vlgmr.msra.gmra.mrb[32].mxu1 %v4883_v19 }
 0x265   : > { %1911 = vmatprep.mubr.bf16.mxu0 %v6893_v21  ;;  %1984 = vmatprep.mubr.bf16.mxu1 %v6893_v21 }
 0x26c   : > { %1912 = vmatmul.mubr.bf16.gmra.mrb[36].mxu0 %v4884_v8  ;;  %1985 = vmatmul.mubr.bf16.gmra.mrb[36].mxu1 %v4884_v8 }
 0x26d   : > { %1921 = vmatprep.mubr.bf16.mxu0 %v6893_v21  ;;  %1994 = vmatprep.mubr.bf16.mxu1 %v6893_v21 }
 0x274   : > { %1922 = vmatmul.mubr.bf16.gmra.mrb[40].mxu0 %v4885_v31  ;;  %1995 = vmatmul.mubr.bf16.gmra.mrb[40].mxu1 %v4885_v31 }
 0x275   : > { %1931 = vmatprep.mubr.bf16.mxu0 %v6893_v21  ;;  %2004 = vmatprep.mubr.bf16.mxu1 %v6893_v21 }
 0x27c   : > { %1932 = vmatmul.mubr.bf16.gmra.mrb[44].mxu0 %v4886_v61  ;;  %2005 = vmatmul.mubr.bf16.gmra.mrb[44].mxu1 %v4886_v61 }
 0x27d   : > { %2140 = vmatprep.mubr.bf16.mxu0 %v6893_v21  ;;  %2193 = vmatprep.mubr.bf16.mxu1 %v6893_v21 }
 0x337   : > { %v1903_v9 = vpop.f32.mrb[32].mxu0  ;;  %v1976_v25 = vpop.f32.mrb[32].mxu1 }
 0x338   : > { %v1904_v5 = vadd.f32 %v1903_v9, %v1808_v14  ;;  %v1977_v52 = vadd.f32 %v1976_v25, %v1808_v14  ;;  %v1905_v22 = vpop.f32.mrb[33].mxu0  ;;  %v1978_v62 = vpop.f32.mrb[33].mxu1 }
 0x339   : > { %v1906_v12 = vadd.f32 %v1905_v22, %v1808_v14  ;;  %v1979_v29 = vadd.f32 %v1978_v62, %v1808_v14  ;;  %v1907_v63 = vpop.f32.mrb[34].mxu0  ;;  %v1980_v46 = vpop.f32.mrb[34].mxu1 }
 0x33a   : > { %v1908_v16 = vadd.f32 %v1907_v63, %v1813_v6  ;;  %v1981_v26 = vadd.f32 %v1980_v46, %v1813_v6  ;;  %v1909_v40 = vpop.f32.mrb[35].mxu0  ;;  %v1982_v28 = vpop.f32.mrb[35].mxu1  ;;  %v2015_v51 = vmax.f32 %v1904_v5, 0.0  ;;  %v2017_v38 = vmax.f32 %v1977_v52, 0.0 }
 0x33b   : > { %v1910_v24 = vadd.f32 %v1909_v40, %v1813_v6  ;;  %v1983_v33 = vadd.f32 %v1982_v28, %v1813_v6  ;;  %v2016_v44 = vmax.f32 %v1906_v12, 0.0  ;;  %v2018_v47 = vmax.f32 %v1979_v29, 0.0 }
 0x33c   : > { %v2019_v57 = vmax.f32 %v1908_v16, 0.0  ;;  %v2021_v56 = vmax.f32 %v1981_v26, 0.0 }
 0x33d   : > { %v2020_v15 = vmax.f32 %v1910_v24, 0.0  ;;  %v2022_v3 = vmax.f32 %v1983_v33, 0.0 }
 0x33e   : > { %v2047_v53 = vpack.c.bf16 %v2019_v57, %v2015_v51  ;;  %v2049_v42 = vpack.c.bf16 %v2021_v56, %v2017_v38 }
 0x33f   : > { %v2048_v59 = vpack.c.bf16 %v2020_v15, %v2016_v44  ;;  %v2050_v37 = vpack.c.bf16 %v2022_v3, %v2018_v47  ;;  %v1913_v0 = vpop.f32.mrb[36].mxu0  ;;  %v1986_v54 = vpop.f32.mrb[36].mxu1 }
 0x340   : > { %v1914_v23 = vadd.f32 %v1913_v0, %v1818_v55  ;;  %v1987_v43 = vadd.f32 %v1986_v54, %v1818_v55  ;;  %v1915_v48 = vpop.f32.mrb[37].mxu0  ;;  %v1988_v17 = vpop.f32.mrb[37].mxu1 }
 0x341   : > { %v1916_v27 = vadd.f32 %v1915_v48, %v1818_v55  ;;  %v1989_v45 = vadd.f32 %v1988_v17, %v1818_v55  ;;  %v1917_v36 = vpop.f32.mrb[38].mxu0  ;;  %v1990_v7 = vpop.f32.mrb[38].mxu1  ;;  %2108 = vmatprep.subr.bf16.mxu0 %v2048_v59  ;;  %2161 = vmatprep.subr.bf16.mxu1 %v2050_v37 }
 0x342   : > { %v1918_v11 = vadd.f32 %v1917_v36, %v1823_v13  ;;  %v1991_v39 = vadd.f32 %v1990_v7, %v1823_v13  ;;  %v1919_v20 = vpop.f32.mrb[39].mxu0  ;;  %v1992_v2 = vpop.f32.mrb[39].mxu1  ;;  %2109 = vmatpush1.bf16.msra.mxu0 %v2047_v53  ;;  %2162 = vmatpush1.bf16.msra.mxu1 %v2049_v42  ;;  %v2023_v35 = vmax.f32 %v1914_v23, 0.0  ;;  %v2025_v32 = vmax.f32 %v1987_v43, 0.0 }
 0x343   : > { %v1920_v34 = vadd.f32 %v1919_v20, %v1823_v13  ;;  %v1993_v18 = vadd.f32 %v1992_v2, %v1823_v13  ;;  %v2024_v58 = vmax.f32 %v1916_v27, 0.0  ;;  %v2026_v4 = vmax.f32 %v1989_v45, 0.0  ;;  %v1843_v47 = vpop.permute.xlu1 %1842  ;;  %v1838_v15 = vpop.permute.xlu0 %1837 }
 0x344   : > { %v2027_v10 = vmax.f32 %v1918_v11, 0.0  ;;  %v2029_v1 = vmax.f32 %v1991_v39, 0.0 }
 0x345   : > { %v2028_v41 = vmax.f32 %v1920_v34, 0.0  ;;  %v2030_v30 = vmax.f32 %v1993_v18, 0.0 }
 0x346   : > { %v2051_v49 = vpack.c.bf16 %v2027_v10, %v2023_v35  ;;  %v2053_v19 = vpack.c.bf16 %v2029_v1, %v2025_v32 }
 0x347   : > { %v2052_v8 = vpack.c.bf16 %v2028_v41, %v2024_v58  ;;  %v2054_v31 = vpack.c.bf16 %v2030_v30, %v2026_v4  ;;  %v1923_v61 = vpop.f32.mrb[40].mxu0  ;;  %v1996_v6 = vpop.f32.mrb[40].mxu1 }
 0x348   : > { %v1924_v14 = vadd.f32 %v1923_v61, %v1828_v60  ;;  %v1997_v9 = vadd.f32 %v1996_v6, %v1828_v60  ;;  %v1925_v25 = vpop.f32.mrb[41].mxu0  ;;  %v1998_v5 = vpop.f32.mrb[41].mxu1 }
 0x349   : > { %v1926_v52 = vadd.f32 %v1925_v25, %v1828_v60  ;;  %v1999_v22 = vadd.f32 %v1998_v5, %v1828_v60  ;;  %v1927_v62 = vpop.f32.mrb[42].mxu0  ;;  %v2000_v12 = vpop.f32.mrb[42].mxu1  ;;  %2110 = vmatprep.subr.bf16.mxu0 %v2052_v8  ;;  %2163 = vmatprep.subr.bf16.mxu1 %v2054_v31  ;;  %v4887_v60 = vld [vmem:[%s6657_s6] sm:$0xff]  }
 0x34a   : > { %v1928_v29 = vadd.f32 %v1927_v62, %v1833_v50  ;;  %v2001_v63 = vadd.f32 %v2000_v12, %v1833_v50  ;;  %v1929_v46 = vpop.f32.mrb[43].mxu0  ;;  %v2002_v16 = vpop.f32.mrb[43].mxu1  ;;  %2111 = vmatpush1.bf16.msra.mxu0 %v2051_v49  ;;  %2164 = vmatpush1.bf16.msra.mxu1 %v2053_v19  ;;  %v2031_v28 = vmax.f32 %v1924_v14, 0.0  ;;  %v2033_v24 = vmax.f32 %v1997_v9, 0.0  ;;  %v4888_v49 = vld [vmem:[%s6657_s6 + $0x8] sm:$0xff]  }
 0x34b   : > { %v1930_v26 = vadd.f32 %v1929_v46, %v1833_v50  ;;  %v2003_v40 = vadd.f32 %v2002_v16, %v1833_v50  ;;  %v2032_v38 = vmax.f32 %v1926_v52, 0.0  ;;  %v2034_v57 = vmax.f32 %v1999_v22, 0.0  ;;  %v2079_v19 = vpop.permute.xlu1 %2078  ;;  %v2074_v8 = vpop.permute.xlu0 %2073 }
 0x34c   : > { %v2035_v33 = vmax.f32 %v1928_v29, 0.0  ;;  %v2037_v51 = vmax.f32 %v2001_v63, 0.0 }
 0x34d   : > { %v2036_v56 = vmax.f32 %v1930_v26, 0.0  ;;  %v2038_v44 = vmax.f32 %v2003_v40, 0.0 }
 0x34e   : > { %v2055_v3 = vpack.c.bf16 %v2035_v33, %v2031_v28  ;;  %v2057_v13 = vpack.c.bf16 %v2037_v51, %v2033_v24 }
 0x34f   : > { %v2056_v55 = vpack.c.bf16 %v2036_v56, %v2032_v38  ;;  %v2058_v53 = vpack.c.bf16 %v2038_v44, %v2034_v57  ;;  %v1933_v42 = vpop.f32.mrb[44].mxu0  ;;  %v2006_v59 = vpop.f32.mrb[44].mxu1 }
 0x350   : > { %v1934_v37 = vadd.f32 %v1933_v42, %v1838_v15  ;;  %v2007_v0 = vadd.f32 %v2006_v59, %v1838_v15  ;;  %v1935_v54 = vpop.f32.mrb[45].mxu0  ;;  %v2008_v23 = vpop.f32.mrb[45].mxu1 }
 0x351   : > { %v1936_v43 = vadd.f32 %v1935_v54, %v1838_v15  ;;  %v2009_v48 = vadd.f32 %v2008_v23, %v1838_v15  ;;  %v1937_v17 = vpop.f32.mrb[46].mxu0  ;;  %v2010_v27 = vpop.f32.mrb[46].mxu1  ;;  %2112 = vmatprep.subr.bf16.mxu0 %v2056_v55  ;;  %2165 = vmatprep.subr.bf16.mxu1 %v2058_v53 }
 0x352   : > { %v1938_v45 = vadd.f32 %v1937_v17, %v1843_v47  ;;  %v2011_v36 = vadd.f32 %v2010_v27, %v1843_v47  ;;  %v1939_v7 = vpop.f32.mrb[47].mxu0  ;;  %v2012_v11 = vpop.f32.mrb[47].mxu1  ;;  %2113 = vmatpush1.bf16.msra.mxu0 %v2055_v3  ;;  %2166 = vmatpush1.bf16.msra.mxu1 %v2057_v13  ;;  %v2039_v2 = vmax.f32 %v1934_v37, 0.0  ;;  %v2041_v34 = vmax.f32 %v2007_v0, 0.0 }
 0x353   : > { %v1940_v39 = vadd.f32 %v1939_v7, %v1843_v47  ;;  %v2013_v20 = vadd.f32 %v2012_v11, %v1843_v47  ;;  %v2040_v32 = vmax.f32 %v1936_v43, 0.0  ;;  %v2042_v10 = vmax.f32 %v2009_v48, 0.0  ;;  %v2089_v44 = vpop.permute.xlu1 %2088  ;;  %v2084_v47 = vpop.permute.xlu0 %2083 }
 0x354   : > { %v2043_v18 = vmax.f32 %v1938_v45, 0.0  ;;  %v2045_v35 = vmax.f32 %v2011_v36, 0.0 }
 0x355   : > { %v2044_v1 = vmax.f32 %v1940_v39, 0.0  ;;  %v2046_v58 = vmax.f32 %v2013_v20, 0.0 }
 0x356   : > { %v2059_v4 = vpack.c.bf16 %v2043_v18, %v2039_v2  ;;  %v2061_v41 = vpack.c.bf16 %v2045_v35, %v2041_v34 }
 0x357   : > { %v2060_v30 = vpack.c.bf16 %v2044_v1, %v2040_v32  ;;  %v2062_v50 = vpack.c.bf16 %v2046_v58, %v2042_v10 }
 0x359   : > { %2114 = vmatprep.subr.bf16.mxu0 %v2060_v30  ;;  %2167 = vmatprep.subr.bf16.mxu1 %v2062_v50  ;;  %v2238_v50 = vld [vmem:[%s6658_s7] sm:$0xf] }
 0x35a   : > { %2115 = vmatpush1.bf16.msra.mxu0 %v2059_v4  ;;  %2168 = vmatpush1.bf16.msra.mxu1 %v2061_v41 }
 0x35d   : > { %4696 = vmatmul.mubr.msk.bf16.vlgmr.msra.gmra.mrb[48].mxu0 %vm2101_vm0, %v4887_v60  ;;  %4698 = vmatmul.mubr.msk.bf16.vlgmr.msra.gmra.mrb[48].mxu1 %vm2101_vm0, %v4887_v60  ;;  %v4976_v60 = vmov 0.0  }
 0x35e   : > { %2150 = vmatprep.mubr.bf16.mxu0 %v6893_v21  ;;  %2203 = vmatprep.mubr.bf16.mxu1 %v6893_v21 }
 0x365   : > { %4697 = vmatmul.mubr.msk.bf16.gmra.mrb[52].mxu0 %vm2101_vm0, %v4888_v49  ;;  %4699 = vmatmul.mubr.msk.bf16.gmra.mrb[52].mxu1 %vm2101_vm0, %v4888_v49  ;;  %v2243_v49 = vpop.permute.xlu0 %2242 }
 0x366   : > { %2281 = vmatprep.mubr.bf16.mxu0 %v6893_v21  ;;  %2322 = vmatprep.mubr.bf16.mxu1 %v6893_v21 }
 0x430   : > { %v2142_v31 = vpop.f32.mrb[48].mxu0  ;;  %v2195_v61 = vpop.f32.mrb[48].mxu1 }
 0x431   : > { %v2143_v6 = vadd.f32 %v2142_v31, %v2074_v8  ;;  %v2196_v14 = vadd.f32 %v2195_v61, %v2074_v8  ;;  %v2144_v9 = vpop.f32.mrb[49].mxu0  ;;  %v2197_v25 = vpop.f32.mrb[49].mxu1 }
 0x432   : > { %v2145_v5 = vadd.f32 %v2144_v9, %v2074_v8  ;;  %v2198_v52 = vadd.f32 %v2197_v25, %v2074_v8  ;;  %v2146_v22 = vpop.f32.mrb[50].mxu0  ;;  %v2199_v62 = vpop.f32.mrb[50].mxu1 }
 0x433   : > { %v2147_v12 = vadd.f32 %v2146_v22, %v2079_v19  ;;  %v2200_v29 = vadd.f32 %v2199_v62, %v2079_v19  ;;  %v2148_v63 = vpop.f32.mrb[51].mxu0  ;;  %v2201_v46 = vpop.f32.mrb[51].mxu1  ;;  %v2214_v40 = vmax.f32 %v2143_v6, 0.0  ;;  %v2216_v28 = vmax.f32 %v2196_v14, 0.0 }
 0x434   : > { %v2149_v16 = vadd.f32 %v2148_v63, %v2079_v19  ;;  %v2202_v26 = vadd.f32 %v2201_v46, %v2079_v19  ;;  %v2215_v51 = vmax.f32 %v2145_v5, 0.0  ;;  %v2217_v38 = vmax.f32 %v2198_v52, 0.0  ;;  %v2365_v63 = vld [vmem:[%s6654_s3 + $0x10] sm:$0xff]  ;;  %v2366_v46 = vld [vmem:[%s6654_s3 + $0x18] sm:$0xff] }
 0x435   : > { %v2218_v24 = vmax.f32 %v2147_v12, 0.0  ;;  %v2220_v33 = vmax.f32 %v2200_v29, 0.0  ;;  %v2363_v12 = vld [vmem:[%s6654_s3] sm:$0xff]  ;;  %v2364_v29 = vld [vmem:[%s6654_s3 + $0x8] sm:$0xff] }
 0x436   : > { %v2219_v57 = vmax.f32 %v2149_v16, 0.0  ;;  %v2221_v56 = vmax.f32 %v2202_v26, 0.0  ;;  %v2367_v16 = vld [vmem:[%s6654_s3 + $0x20] sm:$0xff]  ;;  %v2368_v26 = vld [vmem:[%s6654_s3 + $0x28] sm:$0xff] }
 0x437   : > { %v2230_v15 = vpack.c.bf16 %v2218_v24, %v2214_v40  ;;  %v2232_v3 = vpack.c.bf16 %v2220_v33, %v2216_v28  ;;  %v2369_v40 = vld [vmem:[%s6654_s3 + $0x30] sm:$0xff]  ;;  %v2370_v28 = vld [vmem:[%s6654_s3 + $0x38] sm:$0xff]  ;;  %v2371_v24 = vld [vmem:[%s6654_s3 + $0x40] sm:$0xff] }
 0x438   : > { %v2231_v13 = vpack.c.bf16 %v2219_v57, %v2215_v51  ;;  %v2233_v55 = vpack.c.bf16 %v2221_v56, %v2217_v38  ;;  %v2152_v53 = vpop.f32.mrb[52].mxu0  ;;  %v2205_v42 = vpop.f32.mrb[52].mxu1  ;;  %v2372_v33 = vld [vmem:[%s6654_s3 + $0x48] sm:$0xff]  ;;  %v2373_v51 = vld [vmem:[%s6654_s3 + $0x50] sm:$0xff]  ;;  %v2374_v38 = vld [vmem:[%s6654_s3 + $0x58] sm:$0xff] }
 0x439   : > { %v2153_v59 = vadd.f32 %v2152_v53, %v2084_v47  ;;  %v2206_v37 = vadd.f32 %v2205_v42, %v2084_v47  ;;  %v2154_v0 = vpop.f32.mrb[53].mxu0  ;;  %v2207_v54 = vpop.f32.mrb[53].mxu1  ;;  %v2375_v57 = vld [vmem:[%s6654_s3 + $0x60] sm:$0xff]  ;;  %v2376_v56 = vld [vmem:[%s6654_s3 + $0x68] sm:$0xff] }
 0x43a   : > { %v2155_v23 = vadd.f32 %v2154_v0, %v2084_v47  ;;  %v2208_v43 = vadd.f32 %v2207_v54, %v2084_v47  ;;  %v2156_v48 = vpop.f32.mrb[54].mxu0  ;;  %v2209_v17 = vpop.f32.mrb[54].mxu1  ;;  %2249 = vmatprep.subr.bf16.mxu0 %v2231_v13  ;;  %2290 = vmatprep.subr.bf16.mxu1 %v2233_v55  ;;  %v2378_v47 = vld [vmem:[%s6654_s3 + $0x78] sm:$0xff]  ;;  %v2381_v13 = vld [vmem:[%s6654_s3 + $0x90] sm:$0xff]  ;;  %v2383_v53 = vld [vmem:[%s6654_s3 + $0xa0] sm:$0xff] }
 0x43b   : > { %v2157_v27 = vadd.f32 %v2156_v48, %v2089_v44  ;;  %v2210_v45 = vadd.f32 %v2209_v17, %v2089_v44  ;;  %v2158_v36 = vpop.f32.mrb[55].mxu0  ;;  %v2211_v7 = vpop.f32.mrb[55].mxu1  ;;  %2250 = vmatpush1.bf16.msra.mxu0 %v2230_v15  ;;  %2291 = vmatpush1.bf16.msra.mxu1 %v2232_v3  ;;  %v2222_v20 = vmax.f32 %v2153_v59, 0.0  ;;  %v2224_v2 = vmax.f32 %v2206_v37, 0.0  ;;  %v2379_v15 = vld [vmem:[%s6654_s3 + $0x80] sm:$0xff]  ;;  %v2380_v3 = vld [vmem:[%s6654_s3 + $0x88] sm:$0xff] }
 0x43c   : > { %v2159_v11 = vadd.f32 %v2158_v36, %v2089_v44  ;;  %v2212_v39 = vadd.f32 %v2211_v7, %v2089_v44  ;;  %v2223_v35 = vmax.f32 %v2155_v23, 0.0  ;;  %v2225_v32 = vmax.f32 %v2208_v43, 0.0  ;;  %v2377_v44 = vld [vmem:[%s6654_s3 + $0x70] sm:$0xff]  ;;  %v2382_v55 = vld [vmem:[%s6654_s3 + $0x98] sm:$0xff]  ;;  %v2384_v42 = vld [vmem:[%s6654_s3 + $0xa8] sm:$0xff] }
 0x43d   : > { %v2226_v34 = vmax.f32 %v2157_v27, 0.0  ;;  %v2228_v18 = vmax.f32 %v2210_v45, 0.0  ;;  %v2385_v59 = vld [vmem:[%s6654_s3 + $0xb0] sm:$0xff]  ;;  %v2386_v37 = vld [vmem:[%s6654_s3 + $0xb8] sm:$0xff]  ;;  %v2387_v0 = vld [vmem:[%s6654_s3 + $0xc0] sm:$0xff] }
 0x43e   : > { %v2227_v10 = vmax.f32 %v2159_v11, 0.0  ;;  %v2229_v1 = vmax.f32 %v2212_v39, 0.0  ;;  %v2388_v54 = vld [vmem:[%s6654_s3 + $0xc8] sm:$0xff]  ;;  %v2389_v23 = vld [vmem:[%s6654_s3 + $0xd0] sm:$0xff]  ;;  %v2390_v43 = vld [vmem:[%s6654_s3 + $0xd8] sm:$0xff] }
 0x43f   : > { %v2234_v58 = vpack.c.bf16 %v2226_v34, %v2222_v20  ;;  %v2236_v4 = vpack.c.bf16 %v2228_v18, %v2224_v2  ;;  %v2391_v48 = vld [vmem:[%s6654_s3 + $0xe0] sm:$0xff]  ;;  %v2392_v17 = vld [vmem:[%s6654_s3 + $0xe8] sm:$0xff]  ;;  %v2393_v27 = vld [vmem:[%s6654_s3 + $0xf0] sm:$0xff]  ;;  %v3009_v20 = vpop.permute.xlu1 %3008  ;;  %v3014_v2 = vpop.permute.xlu0 %3013 }
 0x440   : > { %v2235_v41 = vpack.c.bf16 %v2227_v10, %v2223_v35  ;;  %v2237_v30 = vpack.c.bf16 %v2229_v1, %v2225_v32  ;;  %v2394_v45 = vld [vmem:[%s6654_s3 + $0xf8] sm:$0xff] }
 0x442   : > { %2251 = vmatprep.subr.bf16.mxu0 %v2235_v41  ;;  %2292 = vmatprep.subr.bf16.mxu1 %v2237_v30 }
 0x443   : > { %2252 = vmatpush1.bf16.msra.mxu0 %v2234_v58  ;;  %2293 = vmatpush1.bf16.msra.mxu1 %v2236_v4 }
 0x446   : > { %4700 = vmatmul.mubr.msk.bf16.vlgmr.msra.gmra.mrb[56].mxu0 %vm2245_vm1, %v2238_v50  ;;  %4701 = vmatmul.mubr.msk.bf16.vlgmr.msra.gmra.mrb[56].mxu1 %vm2245_vm1, %v2238_v50  ;;  %v4891_v50 = vld [vmem:[%s6655_s4 + $0x84] ss:$8 sps:$4 sm:$0xff]  }
 0x447   : > { %2556 = vmatprep.mubr.f32.mxu0 %v4976_v60  ;;  %2813 = vmatprep.mubr.f32.mxu1 %v4976_v60 }
 0x519   : > { %v2283_v19 = vpop.f32.mrb[56].mxu0  ;;  %v2324_v8 = vpop.f32.mrb[56].mxu1 }
 0x51a   : > { %v2285_v31 = vpop.f32.mrb[57].mxu0  ;;  %v2326_v61 = vpop.f32.mrb[57].mxu1  ;;  %v2284_v5 = vadd.f32 %v2283_v19, %v2243_v49  ;;  %v2325_v52 = vadd.f32 %v2324_v8, %v2243_v49 }
 0x51b   : > { %v2286_v6 = vadd.f32 %v2285_v31, %v2243_v49  ;;  %v2327_v14 = vadd.f32 %v2326_v61, %v2243_v49  ;;  %v2287_v9 = vpop.f32.mrb[58].mxu0  ;;  %v2328_v25 = vpop.f32.mrb[58].mxu1 }
 0x51c   : > { %v2288_v22 = vpop.f32.mrb[59].mxu0  ;;  %v2329_v62 = vpop.f32.mrb[59].mxu1 }
 0x51d   : > { %2492 = vmatprep.subr.mxu0 %v2286_v6  ;;  %2749 = vmatprep.subr.mxu1 %v2327_v14 }
 0x51e   : > { %2493 = vmatpush1.msra.mxu0 %v2284_v5  ;;  %2750 = vmatpush1.msra.mxu1 %v2325_v52 }
 0x51f   : > { %4702 = vmatmul.mubr.msk.f32.vlgmr.msra.gmra.mrb[60].mxu0 %vm2395_vm2, %v2363_v12  ;;  %4734 = vmatmul.mubr.msk.f32.vlgmr.msra.gmra.mrb[60].mxu1 %vm2395_vm2, %v2363_v12 }
 0x520   : > { %2562 = vmatprep.mubr.f32.mxu0 %v4976_v60  ;;  %2819 = vmatprep.mubr.f32.mxu1 %v4976_v60 }
 0x523   : > { %4703 = vmatmul.mubr.msk.f32.gmra.mrb[62].mxu0 %vm2395_vm2, %v2364_v29  ;;  %4735 = vmatmul.mubr.msk.f32.gmra.mrb[62].mxu1 %vm2395_vm2, %v2364_v29 }
 0x524   : > { %2568 = vmatprep.mubr.f32.mxu0 %v4976_v60  ;;  %2825 = vmatprep.mubr.f32.mxu1 %v4976_v60 }
 0x527   : > { %4704 = vmatmul.mubr.msk.f32.gmra.mrb[64].mxu0 %vm2395_vm2, %v2365_v63  ;;  %4736 = vmatmul.mubr.msk.f32.gmra.mrb[64].mxu1 %vm2395_vm2, %v2365_v63  ;;  %v3019_v63 = vpop.permute.xlu1 %3018 }
 0x528   : > { %2574 = vmatprep.mubr.f32.mxu0 %v4976_v60  ;;  %2831 = vmatprep.mubr.f32.mxu1 %v4976_v60 }
 0x52b   : > { %4705 = vmatmul.mubr.msk.f32.gmra.mrb[66].mxu0 %vm2395_vm2, %v2366_v46  ;;  %4737 = vmatmul.mubr.msk.f32.gmra.mrb[66].mxu1 %vm2395_vm2, %v2366_v46 }
 0x52c   : > { %2580 = vmatprep.mubr.f32.mxu0 %v4976_v60  ;;  %2837 = vmatprep.mubr.f32.mxu1 %v4976_v60 }
 0x52f   : > { %4706 = vmatmul.mubr.msk.f32.gmra.mrb[68].mxu0 %vm2395_vm2, %v2367_v16  ;;  %4738 = vmatmul.mubr.msk.f32.gmra.mrb[68].mxu1 %vm2395_vm2, %v2367_v16 }
 0x530   : > { %2586 = vmatprep.mubr.f32.mxu0 %v4976_v60  ;;  %2843 = vmatprep.mubr.f32.mxu1 %v4976_v60 }
 0x533   : > { %4707 = vmatmul.mubr.msk.f32.gmra.mrb[70].mxu0 %vm2395_vm2, %v2368_v26  ;;  %4739 = vmatmul.mubr.msk.f32.gmra.mrb[70].mxu1 %vm2395_vm2, %v2368_v26  ;;  %v3024_v26 = vpop.permute.xlu0 %3023 }
 0x534   : > { %2592 = vmatprep.mubr.f32.mxu0 %v4976_v60  ;;  %2849 = vmatprep.mubr.f32.mxu1 %v4976_v60 }
 0x537   : > { %4708 = vmatmul.mubr.msk.f32.gmra.mrb[72].mxu0 %vm2395_vm2, %v2369_v40  ;;  %4740 = vmatmul.mubr.msk.f32.gmra.mrb[72].mxu1 %vm2395_vm2, %v2369_v40 }
 0x538   : > { %2598 = vmatprep.mubr.f32.mxu0 %v4976_v60  ;;  %2855 = vmatprep.mubr.f32.mxu1 %v4976_v60 }
 0x53b   : > { %4709 = vmatmul.mubr.msk.f32.gmra.mrb[74].mxu0 %vm2395_vm2, %v2370_v28  ;;  %4741 = vmatmul.mubr.msk.f32.gmra.mrb[74].mxu1 %vm2395_vm2, %v2370_v28 }
 0x53c   : > { %2604 = vmatprep.mubr.f32.mxu0 %v4976_v60  ;;  %2861 = vmatprep.mubr.f32.mxu1 %v4976_v60 }
 0x53f   : > { %4710 = vmatmul.mubr.msk.f32.gmra.mrb[76].mxu0 %vm2395_vm2, %v2371_v24  ;;  %4742 = vmatmul.mubr.msk.f32.gmra.mrb[76].mxu1 %vm2395_vm2, %v2371_v24 }
 0x540   : > { %2610 = vmatprep.mubr.f32.mxu0 %v4976_v60  ;;  %2867 = vmatprep.mubr.f32.mxu1 %v4976_v60 }
 0x543   : > { %4711 = vmatmul.mubr.msk.f32.gmra.mrb[78].mxu0 %vm2395_vm2, %v2372_v33  ;;  %4743 = vmatmul.mubr.msk.f32.gmra.mrb[78].mxu1 %vm2395_vm2, %v2372_v33 }
 0x544   : > { %2616 = vmatprep.mubr.f32.mxu0 %v4976_v60  ;;  %2873 = vmatprep.mubr.f32.mxu1 %v4976_v60 }
 0x547   : > { %4712 = vmatmul.mubr.msk.f32.gmra.mrb[80].mxu0 %vm2395_vm2, %v2373_v51  ;;  %4744 = vmatmul.mubr.msk.f32.gmra.mrb[80].mxu1 %vm2395_vm2, %v2373_v51 }
 0x548   : > { %2622 = vmatprep.mubr.f32.mxu0 %v4976_v60  ;;  %2879 = vmatprep.mubr.f32.mxu1 %v4976_v60 }
 0x54b   : > { %4713 = vmatmul.mubr.msk.f32.gmra.mrb[82].mxu0 %vm2395_vm2, %v2374_v38  ;;  %4745 = vmatmul.mubr.msk.f32.gmra.mrb[82].mxu1 %vm2395_vm2, %v2374_v38 }
 0x54c   : > { %2628 = vmatprep.mubr.f32.mxu0 %v4976_v60  ;;  %2885 = vmatprep.mubr.f32.mxu1 %v4976_v60 }
 0x54f   : > { %4714 = vmatmul.mubr.msk.f32.gmra.mrb[84].mxu0 %vm2395_vm2, %v2375_v57  ;;  %4746 = vmatmul.mubr.msk.f32.gmra.mrb[84].mxu1 %vm2395_vm2, %v2375_v57 }
 0x550   : > { %2634 = vmatprep.mubr.f32.mxu0 %v4976_v60  ;;  %2891 = vmatprep.mubr.f32.mxu1 %v4976_v60 }
 0x553   : > { %4715 = vmatmul.mubr.msk.f32.gmra.mrb[86].mxu0 %vm2395_vm2, %v2376_v56  ;;  %4747 = vmatmul.mubr.msk.f32.gmra.mrb[86].mxu1 %vm2395_vm2, %v2376_v56 }
 0x554   : > { %2640 = vmatprep.mubr.f32.mxu0 %v4976_v60  ;;  %2897 = vmatprep.mubr.f32.mxu1 %v4976_v60 }
 0x557   : > { %4716 = vmatmul.mubr.msk.f32.gmra.mrb[88].mxu0 %vm2395_vm2, %v2377_v44  ;;  %4748 = vmatmul.mubr.msk.f32.gmra.mrb[88].mxu1 %vm2395_vm2, %v2377_v44 }
 0x558   : > { %2646 = vmatprep.mubr.f32.mxu0 %v4976_v60  ;;  %2903 = vmatprep.mubr.f32.mxu1 %v4976_v60 }
 0x55b   : > { %4717 = vmatmul.mubr.msk.f32.gmra.mrb[90].mxu0 %vm2395_vm2, %v2378_v47  ;;  %4749 = vmatmul.mubr.msk.f32.gmra.mrb[90].mxu1 %vm2395_vm2, %v2378_v47 }
 0x55c   : > { %2652 = vmatprep.mubr.f32.mxu0 %v4976_v60  ;;  %2909 = vmatprep.mubr.f32.mxu1 %v4976_v60 }
 0x55f   : > { %4718 = vmatmul.mubr.msk.f32.gmra.mrb[92].mxu0 %vm2395_vm2, %v2379_v15  ;;  %4750 = vmatmul.mubr.msk.f32.gmra.mrb[92].mxu1 %vm2395_vm2, %v2379_v15 }
 0x560   : > { %2658 = vmatprep.mubr.f32.mxu0 %v4976_v60  ;;  %2915 = vmatprep.mubr.f32.mxu1 %v4976_v60 }
 0x563   : > { %4719 = vmatmul.mubr.msk.f32.gmra.mrb[94].mxu0 %vm2395_vm2, %v2380_v3  ;;  %4751 = vmatmul.mubr.msk.f32.gmra.mrb[94].mxu1 %vm2395_vm2, %v2380_v3 }
 0x564   : > { %2664 = vmatprep.mubr.f32.mxu0 %v4976_v60  ;;  %2921 = vmatprep.mubr.f32.mxu1 %v4976_v60 }
 0x567   : > { %4720 = vmatmul.mubr.msk.f32.gmra.mrb[96].mxu0 %vm2395_vm2, %v2381_v13  ;;  %4752 = vmatmul.mubr.msk.f32.gmra.mrb[96].mxu1 %vm2395_vm2, %v2381_v13 }
 0x568   : > { %2670 = vmatprep.mubr.f32.mxu0 %v4976_v60  ;;  %2927 = vmatprep.mubr.f32.mxu1 %v4976_v60 }
 0x56b   : > { %4721 = vmatmul.mubr.msk.f32.gmra.mrb[98].mxu0 %vm2395_vm2, %v2382_v55  ;;  %4753 = vmatmul.mubr.msk.f32.gmra.mrb[98].mxu1 %vm2395_vm2, %v2382_v55 }
 0x56c   : > { %2676 = vmatprep.mubr.f32.mxu0 %v4976_v60  ;;  %2933 = vmatprep.mubr.f32.mxu1 %v4976_v60 }
 0x56f   : > { %4722 = vmatmul.mubr.msk.f32.gmra.mrb[100].mxu0 %vm2395_vm2, %v2383_v53  ;;  %4754 = vmatmul.mubr.msk.f32.gmra.mrb[100].mxu1 %vm2395_vm2, %v2383_v53 }
 0x570   : > { %2682 = vmatprep.mubr.f32.mxu0 %v4976_v60  ;;  %2939 = vmatprep.mubr.f32.mxu1 %v4976_v60 }
 0x573   : > { %4723 = vmatmul.mubr.msk.f32.gmra.mrb[102].mxu0 %vm2395_vm2, %v2384_v42  ;;  %4755 = vmatmul.mubr.msk.f32.gmra.mrb[102].mxu1 %vm2395_vm2, %v2384_v42 }
 0x574   : > { %2688 = vmatprep.mubr.f32.mxu0 %v4976_v60  ;;  %2945 = vmatprep.mubr.f32.mxu1 %v4976_v60 }
 0x577   : > { %4724 = vmatmul.mubr.msk.f32.gmra.mrb[104].mxu0 %vm2395_vm2, %v2385_v59  ;;  %4756 = vmatmul.mubr.msk.f32.gmra.mrb[104].mxu1 %vm2395_vm2, %v2385_v59 }
 0x578   : > { %2694 = vmatprep.mubr.f32.mxu0 %v4976_v60  ;;  %2951 = vmatprep.mubr.f32.mxu1 %v4976_v60 }
 0x57b   : > { %4725 = vmatmul.mubr.msk.f32.gmra.mrb[106].mxu0 %vm2395_vm2, %v2386_v37  ;;  %4757 = vmatmul.mubr.msk.f32.gmra.mrb[106].mxu1 %vm2395_vm2, %v2386_v37 }
 0x57c   : > { %2700 = vmatprep.mubr.f32.mxu0 %v4976_v60  ;;  %2957 = vmatprep.mubr.f32.mxu1 %v4976_v60 }
 0x57f   : > { %4726 = vmatmul.mubr.msk.f32.gmra.mrb[108].mxu0 %vm2395_vm2, %v2387_v0  ;;  %4758 = vmatmul.mubr.msk.f32.gmra.mrb[108].mxu1 %vm2395_vm2, %v2387_v0 }
 0x580   : > { %2706 = vmatprep.mubr.f32.mxu0 %v4976_v60  ;;  %2963 = vmatprep.mubr.f32.mxu1 %v4976_v60 }
 0x583   : > { %4727 = vmatmul.mubr.msk.f32.gmra.mrb[110].mxu0 %vm2395_vm2, %v2388_v54  ;;  %4759 = vmatmul.mubr.msk.f32.gmra.mrb[110].mxu1 %vm2395_vm2, %v2388_v54 }
 0x584   : > { %2712 = vmatprep.mubr.f32.mxu0 %v4976_v60  ;;  %2969 = vmatprep.mubr.f32.mxu1 %v4976_v60 }
 0x587   : > { %4728 = vmatmul.mubr.msk.f32.gmra.mrb[112].mxu0 %vm2395_vm2, %v2389_v23  ;;  %4760 = vmatmul.mubr.msk.f32.gmra.mrb[112].mxu1 %vm2395_vm2, %v2389_v23 }
 0x588   : > { %2718 = vmatprep.mubr.f32.mxu0 %v4976_v60  ;;  %2975 = vmatprep.mubr.f32.mxu1 %v4976_v60 }
 0x58b   : > { %4729 = vmatmul.mubr.msk.f32.gmra.mrb[114].mxu0 %vm2395_vm2, %v2390_v43  ;;  %4761 = vmatmul.mubr.msk.f32.gmra.mrb[114].mxu1 %vm2395_vm2, %v2390_v43 }
 0x58c   : > { %2724 = vmatprep.mubr.f32.mxu0 %v4976_v60  ;;  %2981 = vmatprep.mubr.f32.mxu1 %v4976_v60 }
 0x58f   : > { %4730 = vmatmul.mubr.msk.f32.gmra.mrb[116].mxu0 %vm2395_vm2, %v2391_v48  ;;  %4762 = vmatmul.mubr.msk.f32.gmra.mrb[116].mxu1 %vm2395_vm2, %v2391_v48 }
 0x590   : > { %2730 = vmatprep.mubr.f32.mxu0 %v4976_v60  ;;  %2987 = vmatprep.mubr.f32.mxu1 %v4976_v60 }
 0x593   : > { %4731 = vmatmul.mubr.msk.f32.gmra.mrb[118].mxu0 %vm2395_vm2, %v2392_v17  ;;  %4763 = vmatmul.mubr.msk.f32.gmra.mrb[118].mxu1 %vm2395_vm2, %v2392_v17 }
 0x594   : > { %2736 = vmatprep.mubr.f32.mxu0 %v4976_v60  ;;  %2993 = vmatprep.mubr.f32.mxu1 %v4976_v60 }
 0x597   : > { %4732 = vmatmul.mubr.msk.f32.gmra.mrb[120].mxu0 %vm2395_vm2, %v2393_v27  ;;  %4764 = vmatmul.mubr.msk.f32.gmra.mrb[120].mxu1 %vm2395_vm2, %v2393_v27 }
 0x598   : > { %2742 = vmatprep.mubr.f32.mxu0 %v4976_v60  ;;  %2999 = vmatprep.mubr.f32.mxu1 %v4976_v60 }
 0x59b   : > { %4733 = vmatmul.mubr.msk.f32.gmra.mrb[122].mxu0 %vm2395_vm2, %v2394_v45  ;;  %4765 = vmatmul.mubr.msk.f32.gmra.mrb[122].mxu1 %vm2395_vm2, %v2394_v45 }
 0x59c   : > { %3710 = vmatprep.mubr.bf16.mxu0 %v4891_v50  ;;  %3823 = vmatprep.mubr.bf16.mxu1 %v4891_v50 }
 0x5f2   : > { %v2558_v36 = vpop.f32.mrb[60].mxu0  ;;  %v2815_v7 = vpop.f32.mrb[60].mxu1 }
 0x5f3   : > { %v2560_v11 = vpop.f32.mrb[61].mxu0  ;;  %v2817_v39 = vpop.f32.mrb[61].mxu1  ;;  %v3166_v34 = vadd.f32 %v3009_v20, %v2558_v36  ;;  %v3168_v18 = vadd.f32 %v3009_v20, %v2815_v7 }
 0x5f4   : > { %v3167_v35 = vadd.f32 %v3009_v20, %v2560_v11  ;;  %v3169_v32 = vadd.f32 %v3009_v20, %v2817_v39  ;;  %v3029_v36 = vpop.permute.xlu1 %3028  ;;  %v3034_v39 = vpop.permute.xlu0 %3033 }
 0x5f5   : > { %v3294_v19 = vmax.f32 %v3166_v34, 0.0  ;;  %v3296_v8 = vmax.f32 %v3168_v18, 0.0 }
 0x5f6   : > { %v2564_v10 = vpop.f32.mrb[62].mxu0  ;;  %v2821_v1 = vpop.f32.mrb[62].mxu1  ;;  %v3295_v6 = vmax.f32 %v3167_v35, 0.0  ;;  %v3297_v14 = vmax.f32 %v3169_v32, 0.0 }
 0x5f7   : > { %v3170_v58 = vadd.f32 %v3014_v2, %v2564_v10  ;;  %v3172_v4 = vadd.f32 %v3014_v2, %v2821_v1  ;;  %v2566_v41 = vpop.f32.mrb[63].mxu0  ;;  %v2823_v30 = vpop.f32.mrb[63].mxu1 }
 0x5f8   : > { %v3171_v60 = vadd.f32 %v3014_v2, %v2566_v41  ;;  %v3173_v49 = vadd.f32 %v3014_v2, %v2823_v30 }
 0x5f9   : > { %v3298_v31 = vmax.f32 %v3170_v58, 0.0  ;;  %v3300_v61 = vmax.f32 %v3172_v4, 0.0 }
 0x5fa   : > { %v3299_v9 = vmax.f32 %v3171_v60, 0.0  ;;  %v3301_v25 = vmax.f32 %v3173_v49, 0.0  ;;  %v2570_v5 = vpop.f32.mrb[64].mxu0  ;;  %v2827_v52 = vpop.f32.mrb[64].mxu1 }
 0x5fb   : > { %v3422_v22 = vpack.c.bf16 %v3298_v31, %v3294_v19  ;;  %v3424_v62 = vpack.c.bf16 %v3300_v61, %v3296_v8  ;;  %v2572_v12 = vpop.f32.mrb[65].mxu0  ;;  %v2829_v29 = vpop.f32.mrb[65].mxu1  ;;  %v3174_v40 = vadd.f32 %v3019_v63, %v2570_v5  ;;  %v3176_v28 = vadd.f32 %v3019_v63, %v2827_v52 }
 0x5fc   : > { %v3423_v46 = vpack.c.bf16 %v3299_v9, %v3295_v6  ;;  %v3425_v16 = vpack.c.bf16 %v3301_v25, %v3297_v14  ;;  %v3175_v24 = vadd.f32 %v3019_v63, %v2572_v12  ;;  %v3177_v33 = vadd.f32 %v3019_v63, %v2829_v29  ;;  %v3044_v63 = vpop.permute.xlu0 %3043 }
 0x5fd   : > { %v3302_v13 = vmax.f32 %v3174_v40, 0.0  ;;  %v3304_v55 = vmax.f32 %v3176_v28, 0.0 }
 0x5fe   : > { %v2576_v51 = vpop.f32.mrb[66].mxu0  ;;  %v2833_v38 = vpop.f32.mrb[66].mxu1  ;;  %3678 = vmatprep.subr.bf16.mxu0 %v3423_v46  ;;  %3791 = vmatprep.subr.bf16.mxu1 %v3425_v16  ;;  %v3303_v59 = vmax.f32 %v3175_v24, 0.0  ;;  %v3305_v37 = vmax.f32 %v3177_v33, 0.0 }
 0x5ff   : > { %v3178_v57 = vadd.f32 %v3024_v26, %v2576_v51  ;;  %v3180_v56 = vadd.f32 %v3024_v26, %v2833_v38  ;;  %v2578_v44 = vpop.f32.mrb[67].mxu0  ;;  %v2835_v47 = vpop.f32.mrb[67].mxu1  ;;  %3679 = vmatpush1.bf16.msra.mxu0 %v3422_v22  ;;  %3792 = vmatpush1.bf16.msra.mxu1 %v3424_v62 }
 0x600   : > { %v3179_v15 = vadd.f32 %v3024_v26, %v2578_v44  ;;  %v3181_v3 = vadd.f32 %v3024_v26, %v2835_v47  ;;  %v3039_v62 = vpop.permute.xlu1 %3038 }
 0x601   : > { %v3306_v53 = vmax.f32 %v3178_v57, 0.0  ;;  %v3308_v42 = vmax.f32 %v3180_v56, 0.0 }
 0x602   : > { %v3307_v0 = vmax.f32 %v3179_v15, 0.0  ;;  %v3309_v54 = vmax.f32 %v3181_v3, 0.0  ;;  %v2582_v23 = vpop.f32.mrb[68].mxu0  ;;  %v2839_v43 = vpop.f32.mrb[68].mxu1 }
 0x603   : > { %v3426_v48 = vpack.c.bf16 %v3306_v53, %v3302_v13  ;;  %v3428_v17 = vpack.c.bf16 %v3308_v42, %v3304_v55  ;;  %v2584_v27 = vpop.f32.mrb[69].mxu0  ;;  %v2841_v45 = vpop.f32.mrb[69].mxu1  ;;  %v3182_v20 = vadd.f32 %v3029_v36, %v2582_v23  ;;  %v3184_v2 = vadd.f32 %v3029_v36, %v2839_v43 }
 0x604   : > { %v3427_v7 = vpack.c.bf16 %v3307_v0, %v3303_v59  ;;  %v3429_v11 = vpack.c.bf16 %v3309_v54, %v3305_v37  ;;  %v3183_v34 = vadd.f32 %v3029_v36, %v2584_v27  ;;  %v3185_v18 = vadd.f32 %v3029_v36, %v2841_v45  ;;  %v3054_v36 = vpop.permute.xlu0 %3053 }
 0x605   : > { %v3310_v50 = vmax.f32 %v3182_v20, 0.0  ;;  %v3312_v60 = vmax.f32 %v3184_v2, 0.0 }
 0x606   : > { %v2588_v35 = vpop.f32.mrb[70].mxu0  ;;  %v2845_v32 = vpop.f32.mrb[70].mxu1  ;;  %3680 = vmatprep.subr.bf16.mxu0 %v3427_v7  ;;  %3793 = vmatprep.subr.bf16.mxu1 %v3429_v11  ;;  %v3311_v8 = vmax.f32 %v3183_v34, 0.0  ;;  %v3313_v31 = vmax.f32 %v3185_v18, 0.0 }
 0x607   : > { %v3186_v10 = vadd.f32 %v3034_v39, %v2588_v35  ;;  %v3188_v1 = vadd.f32 %v3034_v39, %v2845_v32  ;;  %v2590_v58 = vpop.f32.mrb[71].mxu0  ;;  %v2847_v4 = vpop.f32.mrb[71].mxu1  ;;  %3681 = vmatpush1.bf16.msra.mxu0 %v3426_v48  ;;  %3794 = vmatpush1.bf16.msra.mxu1 %v3428_v17 }
 0x608   : > { %v3187_v41 = vadd.f32 %v3034_v39, %v2590_v58  ;;  %v3189_v30 = vadd.f32 %v3034_v39, %v2847_v4  ;;  %v3049_v17 = vpop.permute.xlu1 %3048 }
 0x609   : > { %v3314_v49 = vmax.f32 %v3186_v10, 0.0  ;;  %v3316_v19 = vmax.f32 %v3188_v1, 0.0 }
 0x60a   : > { %v3315_v61 = vmax.f32 %v3187_v41, 0.0  ;;  %v3317_v6 = vmax.f32 %v3189_v30, 0.0  ;;  %v2594_v14 = vpop.f32.mrb[72].mxu0  ;;  %v2851_v9 = vpop.f32.mrb[72].mxu1 }
 0x60b   : > { %v3430_v25 = vpack.c.bf16 %v3314_v49, %v3310_v50  ;;  %v3432_v5 = vpack.c.bf16 %v3316_v19, %v3312_v60  ;;  %v2596_v52 = vpop.f32.mrb[73].mxu0  ;;  %v2853_v22 = vpop.f32.mrb[73].mxu1  ;;  %v3190_v46 = vadd.f32 %v3039_v62, %v2594_v14  ;;  %v3192_v16 = vadd.f32 %v3039_v62, %v2851_v9 }
 0x60c   : > { %v3431_v12 = vpack.c.bf16 %v3315_v61, %v3311_v8  ;;  %v3433_v29 = vpack.c.bf16 %v3317_v6, %v3313_v31  ;;  %v3191_v26 = vadd.f32 %v3039_v62, %v2596_v52  ;;  %v3193_v40 = vadd.f32 %v3039_v62, %v2853_v22  ;;  %v3064_v62 = vpop.permute.xlu0 %3063 }
 0x60d   : > { %v3318_v47 = vmax.f32 %v3190_v46, 0.0  ;;  %v3320_v15 = vmax.f32 %v3192_v16, 0.0 }
 0x60e   : > { %v2600_v28 = vpop.f32.mrb[74].mxu0  ;;  %v2857_v24 = vpop.f32.mrb[74].mxu1  ;;  %3682 = vmatprep.subr.bf16.mxu0 %v3431_v12  ;;  %3795 = vmatprep.subr.bf16.mxu1 %v3433_v29  ;;  %v3319_v55 = vmax.f32 %v3191_v26, 0.0  ;;  %v3321_v53 = vmax.f32 %v3193_v40, 0.0 }
 0x60f   : > { %v3194_v33 = vadd.f32 %v3044_v63, %v2600_v28  ;;  %v3196_v51 = vadd.f32 %v3044_v63, %v2857_v24  ;;  %v2602_v38 = vpop.f32.mrb[75].mxu0  ;;  %v2859_v57 = vpop.f32.mrb[75].mxu1  ;;  %3683 = vmatpush1.bf16.msra.mxu0 %v3430_v25  ;;  %3796 = vmatpush1.bf16.msra.mxu1 %v3432_v5 }
 0x610   : > { %v3195_v56 = vadd.f32 %v3044_v63, %v2602_v38  ;;  %v3197_v44 = vadd.f32 %v3044_v63, %v2859_v57  ;;  %v3059_v5 = vpop.permute.xlu1 %3058 }
 0x611   : > { %v3322_v3 = vmax.f32 %v3194_v33, 0.0  ;;  %v3324_v13 = vmax.f32 %v3196_v51, 0.0 }
 0x612   : > { %v3323_v42 = vmax.f32 %v3195_v56, 0.0  ;;  %v3325_v59 = vmax.f32 %v3197_v44, 0.0  ;;  %v2606_v37 = vpop.f32.mrb[76].mxu0  ;;  %v2863_v0 = vpop.f32.mrb[76].mxu1 }
 0x613   : > { %v3434_v54 = vpack.c.bf16 %v3322_v3, %v3318_v47  ;;  %v3436_v23 = vpack.c.bf16 %v3324_v13, %v3320_v15  ;;  %v2608_v43 = vpop.f32.mrb[77].mxu0  ;;  %v2865_v48 = vpop.f32.mrb[77].mxu1  ;;  %v3198_v7 = vadd.f32 %v3049_v17, %v2606_v37  ;;  %v3200_v11 = vadd.f32 %v3049_v17, %v2863_v0 }
 0x614   : > { %v3435_v27 = vpack.c.bf16 %v3323_v42, %v3319_v55  ;;  %v3437_v45 = vpack.c.bf16 %v3325_v59, %v3321_v53  ;;  %v3199_v39 = vadd.f32 %v3049_v17, %v2608_v43  ;;  %v3201_v20 = vadd.f32 %v3049_v17, %v2865_v48  ;;  %v3074_v17 = vpop.permute.xlu0 %3073 }
 0x615   : > { %v3326_v4 = vmax.f32 %v3198_v7, 0.0  ;;  %v3328_v41 = vmax.f32 %v3200_v11, 0.0 }
 0x616   : > { %v2612_v2 = vpop.f32.mrb[78].mxu0  ;;  %v2869_v34 = vpop.f32.mrb[78].mxu1  ;;  %3684 = vmatprep.subr.bf16.mxu0 %v3435_v27  ;;  %3797 = vmatprep.subr.bf16.mxu1 %v3437_v45  ;;  %v3327_v60 = vmax.f32 %v3199_v39, 0.0  ;;  %v3329_v49 = vmax.f32 %v3201_v20, 0.0 }
 0x617   : > { %v3202_v18 = vadd.f32 %v3054_v36, %v2612_v2  ;;  %v3204_v35 = vadd.f32 %v3054_v36, %v2869_v34  ;;  %v2614_v32 = vpop.f32.mrb[79].mxu0  ;;  %v2871_v10 = vpop.f32.mrb[79].mxu1  ;;  %3685 = vmatpush1.bf16.msra.mxu0 %v3434_v54  ;;  %3798 = vmatpush1.bf16.msra.mxu1 %v3436_v23 }
 0x618   : > { %v3203_v1 = vadd.f32 %v3054_v36, %v2614_v32  ;;  %v3205_v58 = vadd.f32 %v3054_v36, %v2871_v10  ;;  %v3069_v23 = vpop.permute.xlu1 %3068 }
 0x619   : > { %v3330_v30 = vmax.f32 %v3202_v18, 0.0  ;;  %v3332_v50 = vmax.f32 %v3204_v35, 0.0 }
 0x61a   : > { %v3331_v19 = vmax.f32 %v3203_v1, 0.0  ;;  %v3333_v8 = vmax.f32 %v3205_v58, 0.0  ;;  %v2618_v31 = vpop.f32.mrb[80].mxu0  ;;  %v2875_v61 = vpop.f32.mrb[80].mxu1 }
 0x61b   : > { %v3438_v6 = vpack.c.bf16 %v3330_v30, %v3326_v4  ;;  %v3440_v14 = vpack.c.bf16 %v3332_v50, %v3328_v41  ;;  %v2620_v9 = vpop.f32.mrb[81].mxu0  ;;  %v2877_v25 = vpop.f32.mrb[81].mxu1  ;;  %v3206_v12 = vadd.f32 %v3059_v5, %v2618_v31  ;;  %v3208_v29 = vadd.f32 %v3059_v5, %v2875_v61 }
 0x61c   : > { %v3439_v52 = vpack.c.bf16 %v3331_v19, %v3327_v60  ;;  %v3441_v22 = vpack.c.bf16 %v3333_v8, %v3329_v49  ;;  %v3207_v63 = vadd.f32 %v3059_v5, %v2620_v9  ;;  %v3209_v46 = vadd.f32 %v3059_v5, %v2877_v25  ;;  %v3084_v5 = vpop.permute.xlu0 %3083 }
 0x61d   : > { %v3334_v57 = vmax.f32 %v3206_v12, 0.0  ;;  %v3336_v56 = vmax.f32 %v3208_v29, 0.0 }
 0x61e   : > { %v2624_v16 = vpop.f32.mrb[82].mxu0  ;;  %v2881_v26 = vpop.f32.mrb[82].mxu1  ;;  %3686 = vmatprep.subr.bf16.mxu0 %v3439_v52  ;;  %3799 = vmatprep.subr.bf16.mxu1 %v3441_v22  ;;  %v3335_v15 = vmax.f32 %v3207_v63, 0.0  ;;  %v3337_v3 = vmax.f32 %v3209_v46, 0.0 }
 0x61f   : > { %v3210_v40 = vadd.f32 %v3064_v62, %v2624_v16  ;;  %v3212_v28 = vadd.f32 %v3064_v62, %v2881_v26  ;;  %v2626_v24 = vpop.f32.mrb[83].mxu0  ;;  %v2883_v33 = vpop.f32.mrb[83].mxu1  ;;  %3687 = vmatpush1.bf16.msra.mxu0 %v3438_v6  ;;  %3800 = vmatpush1.bf16.msra.mxu1 %v3440_v14 }
 0x620   : > { %v3211_v51 = vadd.f32 %v3064_v62, %v2626_v24  ;;  %v3213_v38 = vadd.f32 %v3064_v62, %v2883_v33  ;;  %v3079_v14 = vpop.permute.xlu1 %3078 }
 0x621   : > { %v3338_v44 = vmax.f32 %v3210_v40, 0.0  ;;  %v3340_v47 = vmax.f32 %v3212_v28, 0.0 }
 0x622   : > { %v3339_v13 = vmax.f32 %v3211_v51, 0.0  ;;  %v3341_v55 = vmax.f32 %v3213_v38, 0.0  ;;  %v2630_v53 = vpop.f32.mrb[84].mxu0  ;;  %v2887_v42 = vpop.f32.mrb[84].mxu1 }
 0x623   : > { %v3442_v59 = vpack.c.bf16 %v3338_v44, %v3334_v57  ;;  %v3444_v37 = vpack.c.bf16 %v3340_v47, %v3336_v56  ;;  %v2632_v0 = vpop.f32.mrb[85].mxu0  ;;  %v2889_v54 = vpop.f32.mrb[85].mxu1  ;;  %v3214_v27 = vadd.f32 %v3069_v23, %v2630_v53  ;;  %v3216_v45 = vadd.f32 %v3069_v23, %v2887_v42 }
 0x624   : > { %v3443_v43 = vpack.c.bf16 %v3339_v13, %v3335_v15  ;;  %v3445_v48 = vpack.c.bf16 %v3341_v55, %v3337_v3  ;;  %v3215_v36 = vadd.f32 %v3069_v23, %v2632_v0  ;;  %v3217_v7 = vadd.f32 %v3069_v23, %v2889_v54  ;;  %v3094_v23 = vpop.permute.xlu0 %3093 }
 0x625   : > { %v3342_v10 = vmax.f32 %v3214_v27, 0.0  ;;  %v3344_v1 = vmax.f32 %v3216_v45, 0.0 }
 0x626   : > { %v2636_v11 = vpop.f32.mrb[86].mxu0  ;;  %v2893_v39 = vpop.f32.mrb[86].mxu1  ;;  %3688 = vmatprep.subr.bf16.mxu0 %v3443_v43  ;;  %3801 = vmatprep.subr.bf16.mxu1 %v3445_v48  ;;  %v3343_v41 = vmax.f32 %v3215_v36, 0.0  ;;  %v3345_v30 = vmax.f32 %v3217_v7, 0.0 }
 0x627   : > { %v3218_v20 = vadd.f32 %v3074_v17, %v2636_v11  ;;  %v3220_v2 = vadd.f32 %v3074_v17, %v2893_v39  ;;  %v2638_v34 = vpop.f32.mrb[87].mxu0  ;;  %v2895_v18 = vpop.f32.mrb[87].mxu1  ;;  %3689 = vmatpush1.bf16.msra.mxu0 %v3442_v59  ;;  %3802 = vmatpush1.bf16.msra.mxu1 %v3444_v37 }
 0x628   : > { %v3219_v35 = vadd.f32 %v3074_v17, %v2638_v34  ;;  %v3221_v32 = vadd.f32 %v3074_v17, %v2895_v18  ;;  %v3089_v37 = vpop.permute.xlu1 %3088 }
 0x629   : > { %v3346_v58 = vmax.f32 %v3218_v20, 0.0  ;;  %v3348_v4 = vmax.f32 %v3220_v2, 0.0 }
 0x62a   : > { %v3347_v50 = vmax.f32 %v3219_v35, 0.0  ;;  %v3349_v60 = vmax.f32 %v3221_v32, 0.0  ;;  %v2642_v49 = vpop.f32.mrb[88].mxu0  ;;  %v2899_v19 = vpop.f32.mrb[88].mxu1 }
 0x62b   : > { %v3446_v8 = vpack.c.bf16 %v3346_v58, %v3342_v10  ;;  %v3448_v31 = vpack.c.bf16 %v3348_v4, %v3344_v1  ;;  %v2644_v61 = vpop.f32.mrb[89].mxu0  ;;  %v2901_v6 = vpop.f32.mrb[89].mxu1  ;;  %v3222_v52 = vadd.f32 %v3079_v14, %v2642_v49  ;;  %v3224_v22 = vadd.f32 %v3079_v14, %v2899_v19 }
 0x62c   : > { %v3447_v9 = vpack.c.bf16 %v3347_v50, %v3343_v41  ;;  %v3449_v25 = vpack.c.bf16 %v3349_v60, %v3345_v30  ;;  %v3223_v62 = vadd.f32 %v3079_v14, %v2644_v61  ;;  %v3225_v12 = vadd.f32 %v3079_v14, %v2901_v6  ;;  %v3104_v14 = vpop.permute.xlu0 %3103 }
 0x62d   : > { %v3350_v33 = vmax.f32 %v3222_v52, 0.0  ;;  %v3352_v51 = vmax.f32 %v3224_v22, 0.0 }
 0x62e   : > { %v2648_v29 = vpop.f32.mrb[90].mxu0  ;;  %v2905_v63 = vpop.f32.mrb[90].mxu1  ;;  %3690 = vmatprep.subr.bf16.mxu0 %v3447_v9  ;;  %3803 = vmatprep.subr.bf16.mxu1 %v3449_v25  ;;  %v3351_v56 = vmax.f32 %v3223_v62, 0.0  ;;  %v3353_v44 = vmax.f32 %v3225_v12, 0.0 }
 0x62f   : > { %v3226_v46 = vadd.f32 %v3084_v5, %v2648_v29  ;;  %v3228_v16 = vadd.f32 %v3084_v5, %v2905_v63  ;;  %v2650_v26 = vpop.f32.mrb[91].mxu0  ;;  %v2907_v40 = vpop.f32.mrb[91].mxu1  ;;  %3691 = vmatpush1.bf16.msra.mxu0 %v3446_v8  ;;  %3804 = vmatpush1.bf16.msra.mxu1 %v3448_v31 }
 0x630   : > { %v3227_v28 = vadd.f32 %v3084_v5, %v2650_v26  ;;  %v3229_v24 = vadd.f32 %v3084_v5, %v2907_v40  ;;  %v3099_v31 = vpop.permute.xlu1 %3098 }
 0x631   : > { %v3354_v38 = vmax.f32 %v3226_v46, 0.0  ;;  %v3356_v57 = vmax.f32 %v3228_v16, 0.0 }
 0x632   : > { %v3355_v47 = vmax.f32 %v3227_v28, 0.0  ;;  %v3357_v15 = vmax.f32 %v3229_v24, 0.0  ;;  %v2654_v3 = vpop.f32.mrb[92].mxu0  ;;  %v2911_v13 = vpop.f32.mrb[92].mxu1 }
 0x633   : > { %v3450_v55 = vpack.c.bf16 %v3354_v38, %v3350_v33  ;;  %v3452_v53 = vpack.c.bf16 %v3356_v57, %v3352_v51  ;;  %v2656_v42 = vpop.f32.mrb[93].mxu0  ;;  %v2913_v59 = vpop.f32.mrb[93].mxu1  ;;  %v3230_v43 = vadd.f32 %v3089_v37, %v2654_v3  ;;  %v3232_v48 = vadd.f32 %v3089_v37, %v2911_v13 }
 0x634   : > { %v3451_v0 = vpack.c.bf16 %v3355_v47, %v3351_v56  ;;  %v3453_v54 = vpack.c.bf16 %v3357_v15, %v3353_v44  ;;  %v3231_v17 = vadd.f32 %v3089_v37, %v2656_v42  ;;  %v3233_v27 = vadd.f32 %v3089_v37, %v2913_v59  ;;  %v3114_v37 = vpop.permute.xlu0 %3113 }
 0x635   : > { %v3358_v18 = vmax.f32 %v3230_v43, 0.0  ;;  %v3360_v35 = vmax.f32 %v3232_v48, 0.0 }
 0x636   : > { %v2660_v45 = vpop.f32.mrb[94].mxu0  ;;  %v2917_v36 = vpop.f32.mrb[94].mxu1  ;;  %3692 = vmatprep.subr.bf16.mxu0 %v3451_v0  ;;  %3805 = vmatprep.subr.bf16.mxu1 %v3453_v54  ;;  %v3359_v1 = vmax.f32 %v3231_v17, 0.0  ;;  %v3361_v58 = vmax.f32 %v3233_v27, 0.0 }
 0x637   : > { %v3234_v7 = vadd.f32 %v3094_v23, %v2660_v45  ;;  %v3236_v11 = vadd.f32 %v3094_v23, %v2917_v36  ;;  %v2662_v39 = vpop.f32.mrb[95].mxu0  ;;  %v2919_v20 = vpop.f32.mrb[95].mxu1  ;;  %3693 = vmatpush1.bf16.msra.mxu0 %v3450_v55  ;;  %3806 = vmatpush1.bf16.msra.mxu1 %v3452_v53 }
 0x638   : > { %v3235_v2 = vadd.f32 %v3094_v23, %v2662_v39  ;;  %v3237_v34 = vadd.f32 %v3094_v23, %v2919_v20  ;;  %v3109_v53 = vpop.permute.xlu1 %3108 }
 0x639   : > { %v3362_v32 = vmax.f32 %v3234_v7, 0.0  ;;  %v3364_v10 = vmax.f32 %v3236_v11, 0.0 }
 0x63a   : > { %v3363_v4 = vmax.f32 %v3235_v2, 0.0  ;;  %v3365_v41 = vmax.f32 %v3237_v34, 0.0  ;;  %v2666_v30 = vpop.f32.mrb[96].mxu0  ;;  %v2923_v50 = vpop.f32.mrb[96].mxu1 }
 0x63b   : > { %v3454_v60 = vpack.c.bf16 %v3362_v32, %v3358_v18  ;;  %v3456_v49 = vpack.c.bf16 %v3364_v10, %v3360_v35  ;;  %v2668_v19 = vpop.f32.mrb[97].mxu0  ;;  %v2925_v8 = vpop.f32.mrb[97].mxu1  ;;  %v3238_v9 = vadd.f32 %v3099_v31, %v2666_v30  ;;  %v3240_v25 = vadd.f32 %v3099_v31, %v2923_v50 }
 0x63c   : > { %v3455_v61 = vpack.c.bf16 %v3363_v4, %v3359_v1  ;;  %v3457_v6 = vpack.c.bf16 %v3365_v41, %v3361_v58  ;;  %v3239_v5 = vadd.f32 %v3099_v31, %v2668_v19  ;;  %v3241_v52 = vadd.f32 %v3099_v31, %v2925_v8  ;;  %v3124_v31 = vpop.permute.xlu0 %3123 }
 0x63d   : > { %v3366_v40 = vmax.f32 %v3238_v9, 0.0  ;;  %v3368_v28 = vmax.f32 %v3240_v25, 0.0 }
 0x63e   : > { %v2672_v22 = vpop.f32.mrb[98].mxu0  ;;  %v2929_v62 = vpop.f32.mrb[98].mxu1  ;;  %3694 = vmatprep.subr.bf16.mxu0 %v3455_v61  ;;  %3807 = vmatprep.subr.bf16.mxu1 %v3457_v6  ;;  %v3367_v51 = vmax.f32 %v3239_v5, 0.0  ;;  %v3369_v38 = vmax.f32 %v3241_v52, 0.0 }
 0x63f   : > { %v3242_v12 = vadd.f32 %v3104_v14, %v2672_v22  ;;  %v3244_v29 = vadd.f32 %v3104_v14, %v2929_v62  ;;  %v2674_v63 = vpop.f32.mrb[99].mxu0  ;;  %v2931_v46 = vpop.f32.mrb[99].mxu1  ;;  %3695 = vmatpush1.bf16.msra.mxu0 %v3454_v60  ;;  %3808 = vmatpush1.bf16.msra.mxu1 %v3456_v49 }
 0x640   : > { %v3243_v16 = vadd.f32 %v3104_v14, %v2674_v63  ;;  %v3245_v26 = vadd.f32 %v3104_v14, %v2931_v46  ;;  %v3119_v49 = vpop.permute.xlu1 %3118 }
 0x641   : > { %v3370_v24 = vmax.f32 %v3242_v12, 0.0  ;;  %v3372_v33 = vmax.f32 %v3244_v29, 0.0 }
 0x642   : > { %v3371_v57 = vmax.f32 %v3243_v16, 0.0  ;;  %v3373_v56 = vmax.f32 %v3245_v26, 0.0  ;;  %v2678_v44 = vpop.f32.mrb[100].mxu0  ;;  %v2935_v47 = vpop.f32.mrb[100].mxu1 }
 0x643   : > { %v3458_v15 = vpack.c.bf16 %v3370_v24, %v3366_v40  ;;  %v3460_v3 = vpack.c.bf16 %v3372_v33, %v3368_v28  ;;  %v2680_v13 = vpop.f32.mrb[101].mxu0  ;;  %v2937_v55 = vpop.f32.mrb[101].mxu1  ;;  %v3246_v0 = vadd.f32 %v3109_v53, %v2678_v44  ;;  %v3248_v54 = vadd.f32 %v3109_v53, %v2935_v47 }
 0x644   : > { %v3459_v42 = vpack.c.bf16 %v3371_v57, %v3367_v51  ;;  %v3461_v59 = vpack.c.bf16 %v3373_v56, %v3369_v38  ;;  %v3247_v23 = vadd.f32 %v3109_v53, %v2680_v13  ;;  %v3249_v43 = vadd.f32 %v3109_v53, %v2937_v55  ;;  %v3134_v53 = vpop.permute.xlu0 %3133 }
 0x645   : > { %v3374_v20 = vmax.f32 %v3246_v0, 0.0  ;;  %v3376_v2 = vmax.f32 %v3248_v54, 0.0 }
 0x646   : > { %v2684_v48 = vpop.f32.mrb[102].mxu0  ;;  %v2941_v17 = vpop.f32.mrb[102].mxu1  ;;  %3696 = vmatprep.subr.bf16.mxu0 %v3459_v42  ;;  %3809 = vmatprep.subr.bf16.mxu1 %v3461_v59  ;;  %v3375_v35 = vmax.f32 %v3247_v23, 0.0  ;;  %v3377_v32 = vmax.f32 %v3249_v43, 0.0 }
 0x647   : > { %v3250_v27 = vadd.f32 %v3114_v37, %v2684_v48  ;;  %v3252_v45 = vadd.f32 %v3114_v37, %v2941_v17  ;;  %v2686_v36 = vpop.f32.mrb[103].mxu0  ;;  %v2943_v7 = vpop.f32.mrb[103].mxu1  ;;  %3697 = vmatpush1.bf16.msra.mxu0 %v3458_v15  ;;  %3810 = vmatpush1.bf16.msra.mxu1 %v3460_v3 }
 0x648   : > { %v3251_v11 = vadd.f32 %v3114_v37, %v2686_v36  ;;  %v3253_v39 = vadd.f32 %v3114_v37, %v2943_v7  ;;  %v3129_v3 = vpop.permute.xlu1 %3128 }
 0x649   : > { %v3378_v34 = vmax.f32 %v3250_v27, 0.0  ;;  %v3380_v18 = vmax.f32 %v3252_v45, 0.0 }
 0x64a   : > { %v3379_v10 = vmax.f32 %v3251_v11, 0.0  ;;  %v3381_v1 = vmax.f32 %v3253_v39, 0.0  ;;  %v2690_v58 = vpop.f32.mrb[104].mxu0  ;;  %v2947_v4 = vpop.f32.mrb[104].mxu1 }
 0x64b   : > { %v3462_v41 = vpack.c.bf16 %v3378_v34, %v3374_v20  ;;  %v3464_v30 = vpack.c.bf16 %v3380_v18, %v3376_v2  ;;  %v2692_v50 = vpop.f32.mrb[105].mxu0  ;;  %v2949_v60 = vpop.f32.mrb[105].mxu1  ;;  %v3254_v61 = vadd.f32 %v3119_v49, %v2690_v58  ;;  %v3256_v6 = vadd.f32 %v3119_v49, %v2947_v4 }
 0x64c   : > { %v3463_v19 = vpack.c.bf16 %v3379_v10, %v3375_v35  ;;  %v3465_v8 = vpack.c.bf16 %v3381_v1, %v3377_v32  ;;  %v3255_v14 = vadd.f32 %v3119_v49, %v2692_v50  ;;  %v3257_v9 = vadd.f32 %v3119_v49, %v2949_v60  ;;  %v3144_v49 = vpop.permute.xlu0 %3143 }
 0x64d   : > { %v3382_v46 = vmax.f32 %v3254_v61, 0.0  ;;  %v3384_v16 = vmax.f32 %v3256_v6, 0.0 }
 0x64e   : > { %v2696_v25 = vpop.f32.mrb[106].mxu0  ;;  %v2953_v5 = vpop.f32.mrb[106].mxu1  ;;  %3698 = vmatprep.subr.bf16.mxu0 %v3463_v19  ;;  %3811 = vmatprep.subr.bf16.mxu1 %v3465_v8  ;;  %v3383_v28 = vmax.f32 %v3255_v14, 0.0  ;;  %v3385_v24 = vmax.f32 %v3257_v9, 0.0 }
 0x64f   : > { %v3258_v52 = vadd.f32 %v3124_v31, %v2696_v25  ;;  %v3260_v22 = vadd.f32 %v3124_v31, %v2953_v5  ;;  %v2698_v62 = vpop.f32.mrb[107].mxu0  ;;  %v2955_v12 = vpop.f32.mrb[107].mxu1  ;;  %3699 = vmatpush1.bf16.msra.mxu0 %v3462_v41  ;;  %3812 = vmatpush1.bf16.msra.mxu1 %v3464_v30 }
 0x650   : > { %v3259_v29 = vadd.f32 %v3124_v31, %v2698_v62  ;;  %v3261_v63 = vadd.f32 %v3124_v31, %v2955_v12  ;;  %v3139_v30 = vpop.permute.xlu1 %3138 }
 0x651   : > { %v3386_v26 = vmax.f32 %v3258_v52, 0.0  ;;  %v3388_v40 = vmax.f32 %v3260_v22, 0.0 }
 0x652   : > { %v3387_v33 = vmax.f32 %v3259_v29, 0.0  ;;  %v3389_v51 = vmax.f32 %v3261_v63, 0.0  ;;  %v2702_v38 = vpop.f32.mrb[108].mxu0  ;;  %v2959_v57 = vpop.f32.mrb[108].mxu1 }
 0x653   : > { %v3466_v56 = vpack.c.bf16 %v3386_v26, %v3382_v46  ;;  %v3468_v44 = vpack.c.bf16 %v3388_v40, %v3384_v16  ;;  %v2704_v47 = vpop.f32.mrb[109].mxu0  ;;  %v2961_v15 = vpop.f32.mrb[109].mxu1  ;;  %v3262_v42 = vadd.f32 %v3129_v3, %v2702_v38  ;;  %v3264_v59 = vadd.f32 %v3129_v3, %v2959_v57 }
 0x654   : > { %v3467_v13 = vpack.c.bf16 %v3387_v33, %v3383_v28  ;;  %v3469_v55 = vpack.c.bf16 %v3389_v51, %v3385_v24  ;;  %v3263_v37 = vadd.f32 %v3129_v3, %v2704_v47  ;;  %v3265_v0 = vadd.f32 %v3129_v3, %v2961_v15  ;;  %v3154_v3 = vpop.permute.xlu0 %3153 }
 0x655   : > { %v3390_v7 = vmax.f32 %v3262_v42, 0.0  ;;  %v3392_v11 = vmax.f32 %v3264_v59, 0.0 }
 0x656   : > { %v2708_v54 = vpop.f32.mrb[110].mxu0  ;;  %v2965_v23 = vpop.f32.mrb[110].mxu1  ;;  %3700 = vmatprep.subr.bf16.mxu0 %v3467_v13  ;;  %3813 = vmatprep.subr.bf16.mxu1 %v3469_v55  ;;  %v3391_v2 = vmax.f32 %v3263_v37, 0.0  ;;  %v3393_v34 = vmax.f32 %v3265_v0, 0.0 }
 0x657   : > { %v3266_v43 = vadd.f32 %v3134_v53, %v2708_v54  ;;  %v3268_v48 = vadd.f32 %v3134_v53, %v2965_v23  ;;  %v2710_v17 = vpop.f32.mrb[111].mxu0  ;;  %v2967_v27 = vpop.f32.mrb[111].mxu1  ;;  %3701 = vmatpush1.bf16.msra.mxu0 %v3466_v56  ;;  %3814 = vmatpush1.bf16.msra.mxu1 %v3468_v44 }
 0x658   : > { %v3267_v45 = vadd.f32 %v3134_v53, %v2710_v17  ;;  %v3269_v36 = vadd.f32 %v3134_v53, %v2967_v27  ;;  %v3149_v44 = vpop.permute.xlu1 %3148 }
 0x659   : > { %v3394_v39 = vmax.f32 %v3266_v43, 0.0  ;;  %v3396_v20 = vmax.f32 %v3268_v48, 0.0 }
 0x65a   : > { %v3395_v18 = vmax.f32 %v3267_v45, 0.0  ;;  %v3397_v35 = vmax.f32 %v3269_v36, 0.0  ;;  %v2714_v32 = vpop.f32.mrb[112].mxu0  ;;  %v2971_v10 = vpop.f32.mrb[112].mxu1 }
 0x65b   : > { %v3470_v1 = vpack.c.bf16 %v3394_v39, %v3390_v7  ;;  %v3472_v58 = vpack.c.bf16 %v3396_v20, %v3392_v11  ;;  %v2716_v4 = vpop.f32.mrb[113].mxu0  ;;  %v2973_v41 = vpop.f32.mrb[113].mxu1  ;;  %v3270_v19 = vadd.f32 %v3139_v30, %v2714_v32  ;;  %v3272_v8 = vadd.f32 %v3139_v30, %v2971_v10 }
 0x65c   : > { %v3471_v50 = vpack.c.bf16 %v3395_v18, %v3391_v2  ;;  %v3473_v60 = vpack.c.bf16 %v3397_v35, %v3393_v34  ;;  %v3271_v31 = vadd.f32 %v3139_v30, %v2716_v4  ;;  %v3273_v61 = vadd.f32 %v3139_v30, %v2973_v41  ;;  %v3164_v30 = vpop.permute.xlu0 %3163 }
 0x65d   : > { %v3398_v12 = vmax.f32 %v3270_v19, 0.0  ;;  %v3400_v29 = vmax.f32 %v3272_v8, 0.0 }
 0x65e   : > { %v2720_v6 = vpop.f32.mrb[114].mxu0  ;;  %v2977_v14 = vpop.f32.mrb[114].mxu1  ;;  %3702 = vmatprep.subr.bf16.mxu0 %v3471_v50  ;;  %3815 = vmatprep.subr.bf16.mxu1 %v3473_v60  ;;  %v3399_v16 = vmax.f32 %v3271_v31, 0.0  ;;  %v3401_v26 = vmax.f32 %v3273_v61, 0.0 }
 0x65f   : > { %v3274_v9 = vadd.f32 %v3144_v49, %v2720_v6  ;;  %v3276_v25 = vadd.f32 %v3144_v49, %v2977_v14  ;;  %v2722_v5 = vpop.f32.mrb[115].mxu0  ;;  %v2979_v52 = vpop.f32.mrb[115].mxu1  ;;  %3703 = vmatpush1.bf16.msra.mxu0 %v3470_v1  ;;  %3816 = vmatpush1.bf16.msra.mxu1 %v3472_v58 }
 0x660   : > { %v3275_v22 = vadd.f32 %v3144_v49, %v2722_v5  ;;  %v3277_v62 = vadd.f32 %v3144_v49, %v2979_v52  ;;  %v3159_v58 = vpop.permute.xlu1 %3158 }
 0x661   : > { %v3402_v63 = vmax.f32 %v3274_v9, 0.0  ;;  %v3404_v46 = vmax.f32 %v3276_v25, 0.0 }
 0x662   : > { %v3403_v40 = vmax.f32 %v3275_v22, 0.0  ;;  %v3405_v28 = vmax.f32 %v3277_v62, 0.0  ;;  %v2726_v24 = vpop.f32.mrb[116].mxu0  ;;  %v2983_v33 = vpop.f32.mrb[116].mxu1 }
 0x663   : > { %v3474_v51 = vpack.c.bf16 %v3402_v63, %v3398_v12  ;;  %v3476_v38 = vpack.c.bf16 %v3404_v46, %v3400_v29  ;;  %v2728_v57 = vpop.f32.mrb[117].mxu0  ;;  %v2985_v56 = vpop.f32.mrb[117].mxu1  ;;  %v3278_v13 = vadd.f32 %v3149_v44, %v2726_v24  ;;  %v3280_v55 = vadd.f32 %v3149_v44, %v2983_v33  ;;  %v4889_v33 = vld [vmem:[%s6655_s4 + $0x80] ss:$8 sps:$4 sm:$0xff]  }
 0x664   : > { %v3475_v47 = vpack.c.bf16 %v3403_v40, %v3399_v16  ;;  %v3477_v15 = vpack.c.bf16 %v3405_v28, %v3401_v26  ;;  %v3279_v53 = vadd.f32 %v3149_v44, %v2728_v57  ;;  %v3281_v42 = vadd.f32 %v3149_v44, %v2985_v56  ;;  %v4895_v57 = vld [vmem:[%s6655_s4 + $0xa4] ss:$8 sps:$4 sm:$0xff]   ;;  %v4897_v56 = vld [vmem:[%s6655_s4 + $0xa0] ss:$8 sps:$4 sm:$0xff]   ;;  %v4898_v44 = vld [vmem:[%s6655_s4 + $0xb4] ss:$8 sps:$4 sm:$0xff]  }
 0x665   : > { %v3406_v27 = vmax.f32 %v3278_v13, 0.0  ;;  %v3408_v45 = vmax.f32 %v3280_v55, 0.0  ;;  %v4904_v13 = vld [vmem:[%s6655_s4 + $0xd4] ss:$8 sps:$4 sm:$0xff]   ;;  %v4906_v55 = vld [vmem:[%s6655_s4 + $0xd0] ss:$8 sps:$4 sm:$0xff]  }
 0x666   : > { %v2732_v59 = vpop.f32.mrb[118].mxu0  ;;  %v2989_v37 = vpop.f32.mrb[118].mxu1  ;;  %3704 = vmatprep.subr.bf16.mxu0 %v3475_v47  ;;  %3817 = vmatprep.subr.bf16.mxu1 %v3477_v15  ;;  %v3407_v11 = vmax.f32 %v3279_v53, 0.0  ;;  %v3409_v39 = vmax.f32 %v3281_v42, 0.0  ;;  %v4900_v47 = vld [vmem:[%s6655_s4 + $0xb0] ss:$8 sps:$4 sm:$0xff]  }
 0x667   : > { %v3282_v0 = vadd.f32 %v3154_v3, %v2732_v59  ;;  %v3284_v54 = vadd.f32 %v3154_v3, %v2989_v37  ;;  %v2734_v23 = vpop.f32.mrb[119].mxu0  ;;  %v2991_v43 = vpop.f32.mrb[119].mxu1  ;;  %3705 = vmatpush1.bf16.msra.mxu0 %v3474_v51  ;;  %3818 = vmatpush1.bf16.msra.mxu1 %v3476_v38  ;;  %v4892_v51 = vld [vmem:[%s6655_s4 + $0x94] ss:$8 sps:$4 sm:$0xff]   ;;  %v4894_v38 = vld [vmem:[%s6655_s4 + $0x90] ss:$8 sps:$4 sm:$0xff]  }
 0x668   : > { %v3283_v48 = vadd.f32 %v3154_v3, %v2734_v23  ;;  %v3285_v17 = vadd.f32 %v3154_v3, %v2991_v43  ;;  %v4901_v15 = vld [vmem:[%s6655_s4 + $0xc4] ss:$8 sps:$4 sm:$0xff]   ;;  %v4903_v3 = vld [vmem:[%s6655_s4 + $0xc0] ss:$8 sps:$4 sm:$0xff]   ;;  %v4910_v59 = vld [vmem:[%s6655_s4 + $0xf4] ss:$8 sps:$4 sm:$0xff]  }
 0x669   : > { %v3410_v36 = vmax.f32 %v3282_v0, 0.0  ;;  %v3412_v7 = vmax.f32 %v3284_v54, 0.0  ;;  %v4907_v53 = vld [vmem:[%s6655_s4 + $0xe4] ss:$8 sps:$4 sm:$0xff]   ;;  %v4909_v42 = vld [vmem:[%s6655_s4 + $0xe0] ss:$8 sps:$4 sm:$0xff]   ;;  %v3521_v0 = vpop.permute.xlu1 %3520  ;;  %v3526_v54 = vpop.permute.xlu0 %3525 }
 0x66a   : > { %v3411_v20 = vmax.f32 %v3283_v48, 0.0  ;;  %v3413_v2 = vmax.f32 %v3285_v17, 0.0  ;;  %v2738_v34 = vpop.f32.mrb[120].mxu0  ;;  %v2995_v18 = vpop.f32.mrb[120].mxu1  ;;  %v4912_v37 = vld [vmem:[%s6655_s4 + $0xf0] ss:$8 sps:$4 sm:$0xff]  }
 0x66b   : > { %v3478_v35 = vpack.c.bf16 %v3410_v36, %v3406_v27  ;;  %v3480_v32 = vpack.c.bf16 %v3412_v7, %v3408_v45  ;;  %v2740_v10 = vpop.f32.mrb[121].mxu0  ;;  %v2997_v1 = vpop.f32.mrb[121].mxu1  ;;  %v3286_v50 = vadd.f32 %v3159_v58, %v2738_v34  ;;  %v3288_v60 = vadd.f32 %v3159_v58, %v2995_v18 }
 0x66c   : > { %v3479_v4 = vpack.c.bf16 %v3411_v20, %v3407_v11  ;;  %v3481_v41 = vpack.c.bf16 %v3413_v2, %v3409_v39  ;;  %v3287_v49 = vadd.f32 %v3159_v58, %v2740_v10  ;;  %v3289_v19 = vadd.f32 %v3159_v58, %v2997_v1 }
 0x66d   : > { %v3414_v52 = vmax.f32 %v3286_v50, 0.0  ;;  %v3416_v22 = vmax.f32 %v3288_v60, 0.0 }
 0x66e   : > { %v2744_v8 = vpop.f32.mrb[122].mxu0  ;;  %v3001_v31 = vpop.f32.mrb[122].mxu1  ;;  %3706 = vmatprep.subr.bf16.mxu0 %v3479_v4  ;;  %3819 = vmatprep.subr.bf16.mxu1 %v3481_v41  ;;  %v3415_v29 = vmax.f32 %v3287_v49, 0.0  ;;  %v3417_v63 = vmax.f32 %v3289_v19, 0.0 }
 0x66f   : > { %v3290_v61 = vadd.f32 %v3164_v30, %v2744_v8  ;;  %v3292_v6 = vadd.f32 %v3164_v30, %v3001_v31  ;;  %v2746_v14 = vpop.f32.mrb[123].mxu0  ;;  %v3003_v9 = vpop.f32.mrb[123].mxu1  ;;  %3707 = vmatpush1.bf16.msra.mxu0 %v3478_v35  ;;  %3820 = vmatpush1.bf16.msra.mxu1 %v3480_v32 }
 0x670   : > { %v3291_v25 = vadd.f32 %v3164_v30, %v2746_v14  ;;  %v3293_v5 = vadd.f32 %v3164_v30, %v3003_v9  ;;  %v3531_v49 = vpop.permute.xlu1 %3530  ;;  %v3536_v19 = vpop.permute.xlu0 %3535 }
 0x671   : > { %v3418_v62 = vmax.f32 %v3290_v61, 0.0  ;;  %v3420_v12 = vmax.f32 %v3292_v6, 0.0 }
 0x672   : > { %v3419_v46 = vmax.f32 %v3291_v25, 0.0  ;;  %v3421_v16 = vmax.f32 %v3293_v5, 0.0 }
 0x673   : > { %v3482_v26 = vpack.c.bf16 %v3418_v62, %v3414_v52  ;;  %v3484_v40 = vpack.c.bf16 %v3420_v12, %v3416_v22 }
 0x674   : > { %v3483_v28 = vpack.c.bf16 %v3419_v46, %v3415_v29  ;;  %v3485_v24 = vpack.c.bf16 %v3421_v16, %v3417_v63 }
 0x676   : > { %3708 = vmatprep.subr.bf16.mxu0 %v3483_v28  ;;  %3821 = vmatprep.subr.bf16.mxu1 %v3485_v24 }
 0x677   : > { %3709 = vmatpush1.bf16.msra.mxu0 %v3482_v26  ;;  %3822 = vmatpush1.bf16.msra.mxu1 %v3484_v40 }
 0x67a   : > { %3711 = vmatmul.mubr.bf16.vlgmr.msra.gmra.mrb[124].mxu0 %v4889_v33  ;;  %3824 = vmatmul.mubr.bf16.vlgmr.msra.gmra.mrb[124].mxu1 %v4889_v33 }
 0x67b   : > { %3720 = vmatprep.mubr.bf16.mxu0 %v4892_v51  ;;  %3833 = vmatprep.mubr.bf16.mxu1 %v4892_v51 }
 0x682   : > { %3721 = vmatmul.mubr.bf16.gmra.mrb[128].mxu0 %v4894_v38  ;;  %3834 = vmatmul.mubr.bf16.gmra.mrb[128].mxu1 %v4894_v38 }
 0x683   : > { %3730 = vmatprep.mubr.bf16.mxu0 %v4895_v57  ;;  %3843 = vmatprep.mubr.bf16.mxu1 %v4895_v57 }
 0x68a   : > { %3731 = vmatmul.mubr.bf16.gmra.mrb[132].mxu0 %v4897_v56  ;;  %3844 = vmatmul.mubr.bf16.gmra.mrb[132].mxu1 %v4897_v56 }
 0x68b   : > { %3740 = vmatprep.mubr.bf16.mxu0 %v4898_v44  ;;  %3853 = vmatprep.mubr.bf16.mxu1 %v4898_v44 }
 0x692   : > { %3741 = vmatmul.mubr.bf16.gmra.mrb[136].mxu0 %v4900_v47  ;;  %3854 = vmatmul.mubr.bf16.gmra.mrb[136].mxu1 %v4900_v47 }
 0x693   : > { %3750 = vmatprep.mubr.bf16.mxu0 %v4901_v15  ;;  %3863 = vmatprep.mubr.bf16.mxu1 %v4901_v15 }
 0x69a   : > { %3751 = vmatmul.mubr.bf16.gmra.mrb[140].mxu0 %v4903_v3  ;;  %3864 = vmatmul.mubr.bf16.gmra.mrb[140].mxu1 %v4903_v3  ;;  %v3541_v3 = vpop.permute.xlu1 %3540 }
 0x69b   : > { %3760 = vmatprep.mubr.bf16.mxu0 %v4904_v13  ;;  %3873 = vmatprep.mubr.bf16.mxu1 %v4904_v13  ;;  %v3546_v13 = vpop.permute.xlu0 %3545 }
 0x6a2   : > { %3761 = vmatmul.mubr.bf16.gmra.mrb[144].mxu0 %v4906_v55  ;;  %3874 = vmatmul.mubr.bf16.gmra.mrb[144].mxu1 %v4906_v55 }
 0x6a3   : > { %3770 = vmatprep.mubr.bf16.mxu0 %v4907_v53  ;;  %3883 = vmatprep.mubr.bf16.mxu1 %v4907_v53 }
 0x6aa   : > { %3771 = vmatmul.mubr.bf16.gmra.mrb[148].mxu0 %v4909_v42  ;;  %3884 = vmatmul.mubr.bf16.gmra.mrb[148].mxu1 %v4909_v42 }
 0x6ab   : > { %3780 = vmatprep.mubr.bf16.mxu0 %v4910_v59  ;;  %3893 = vmatprep.mubr.bf16.mxu1 %v4910_v59 }
 0x6b2   : > { %3781 = vmatmul.mubr.bf16.gmra.mrb[152].mxu0 %v4912_v37  ;;  %3894 = vmatmul.mubr.bf16.gmra.mrb[152].mxu1 %v4912_v37 }
 0x6b3   : > { %4112 = vmatprep.mubr.bf16.mxu0 %v6893_v21  ;;  %4185 = vmatprep.mubr.bf16.mxu1 %v6893_v21 }
 0x74d   : > { %v3712_v23 = vpop.f32.mrb[124].mxu0  ;;  %v3825_v43 = vpop.f32.mrb[124].mxu1 }
 0x74e   : > { %v3713_v48 = vadd.f32 %v3712_v23, %v3521_v0  ;;  %v3826_v17 = vadd.f32 %v3825_v43, %v3521_v0  ;;  %v3714_v27 = vpop.f32.mrb[125].mxu0  ;;  %v3827_v45 = vpop.f32.mrb[125].mxu1 }
 0x74f   : > { %v3715_v36 = vadd.f32 %v3714_v27, %v3521_v0  ;;  %v3828_v7 = vadd.f32 %v3827_v45, %v3521_v0  ;;  %v3716_v11 = vpop.f32.mrb[126].mxu0  ;;  %v3829_v39 = vpop.f32.mrb[126].mxu1 }
 0x750   : > { %v3717_v20 = vadd.f32 %v3716_v11, %v3526_v54  ;;  %v3830_v2 = vadd.f32 %v3829_v39, %v3526_v54  ;;  %v3718_v34 = vpop.f32.mrb[127].mxu0  ;;  %v3831_v18 = vpop.f32.mrb[127].mxu1  ;;  %v3904_v10 = vmax.f32 %v3713_v48, 0.0  ;;  %v3906_v1 = vmax.f32 %v3826_v17, 0.0 }
 0x751   : > { %v3719_v35 = vadd.f32 %v3718_v34, %v3526_v54  ;;  %v3832_v32 = vadd.f32 %v3831_v18, %v3526_v54  ;;  %v3905_v41 = vmax.f32 %v3715_v36, 0.0  ;;  %v3907_v30 = vmax.f32 %v3828_v7, 0.0 }
 0x752   : > { %v3908_v58 = vmax.f32 %v3717_v20, 0.0  ;;  %v3910_v4 = vmax.f32 %v3830_v2, 0.0 }
 0x753   : > { %v3909_v50 = vmax.f32 %v3719_v35, 0.0  ;;  %v3911_v60 = vmax.f32 %v3832_v32, 0.0 }
 0x754   : > { %v3968_v8 = vpack.c.bf16 %v3908_v58, %v3904_v10  ;;  %v3970_v31 = vpack.c.bf16 %v3910_v4, %v3906_v1 }
 0x755   : > { %v3969_v61 = vpack.c.bf16 %v3909_v50, %v3905_v41  ;;  %v3971_v6 = vpack.c.bf16 %v3911_v60, %v3907_v30  ;;  %v3722_v14 = vpop.f32.mrb[128].mxu0  ;;  %v3835_v9 = vpop.f32.mrb[128].mxu1 }
 0x756   : > { %v3723_v25 = vadd.f32 %v3722_v14, %v3531_v49  ;;  %v3836_v5 = vadd.f32 %v3835_v9, %v3531_v49  ;;  %v3724_v52 = vpop.f32.mrb[129].mxu0  ;;  %v3837_v22 = vpop.f32.mrb[129].mxu1 }
 0x757   : > { %v3725_v62 = vadd.f32 %v3724_v52, %v3531_v49  ;;  %v3838_v12 = vadd.f32 %v3837_v22, %v3531_v49  ;;  %v3726_v29 = vpop.f32.mrb[130].mxu0  ;;  %v3839_v63 = vpop.f32.mrb[130].mxu1  ;;  %4080 = vmatprep.subr.bf16.mxu0 %v3969_v61  ;;  %4153 = vmatprep.subr.bf16.mxu1 %v3971_v6 }
 0x758   : > { %v3727_v46 = vadd.f32 %v3726_v29, %v3536_v19  ;;  %v3840_v16 = vadd.f32 %v3839_v63, %v3536_v19  ;;  %v3728_v26 = vpop.f32.mrb[131].mxu0  ;;  %v3841_v40 = vpop.f32.mrb[131].mxu1  ;;  %4081 = vmatpush1.bf16.msra.mxu0 %v3968_v8  ;;  %4154 = vmatpush1.bf16.msra.mxu1 %v3970_v31  ;;  %v3912_v33 = vmax.f32 %v3723_v25, 0.0  ;;  %v3914_v51 = vmax.f32 %v3836_v5, 0.0 }
 0x759   : > { %v3729_v28 = vadd.f32 %v3728_v26, %v3536_v19  ;;  %v3842_v24 = vadd.f32 %v3841_v40, %v3536_v19  ;;  %v3913_v56 = vmax.f32 %v3725_v62, 0.0  ;;  %v3915_v44 = vmax.f32 %v3838_v12, 0.0  ;;  %v3551_v30 = vpop.permute.xlu1 %3550  ;;  %v3556_v50 = vpop.permute.xlu0 %3555 }
 0x75a   : > { %v3916_v38 = vmax.f32 %v3727_v46, 0.0  ;;  %v3918_v57 = vmax.f32 %v3840_v16, 0.0 }
 0x75b   : > { %v3917_v47 = vmax.f32 %v3729_v28, 0.0  ;;  %v3919_v15 = vmax.f32 %v3842_v24, 0.0 }
 0x75c   : > { %v3972_v55 = vpack.c.bf16 %v3916_v38, %v3912_v33  ;;  %v3974_v53 = vpack.c.bf16 %v3918_v57, %v3914_v51 }
 0x75d   : > { %v3973_v42 = vpack.c.bf16 %v3917_v47, %v3913_v56  ;;  %v3975_v59 = vpack.c.bf16 %v3919_v15, %v3915_v44  ;;  %v3732_v37 = vpop.f32.mrb[132].mxu0  ;;  %v3845_v0 = vpop.f32.mrb[132].mxu1 }
 0x75e   : > { %v3733_v54 = vadd.f32 %v3732_v37, %v3541_v3  ;;  %v3846_v23 = vadd.f32 %v3845_v0, %v3541_v3  ;;  %v3734_v43 = vpop.f32.mrb[133].mxu0  ;;  %v3847_v48 = vpop.f32.mrb[133].mxu1 }
 0x75f   : > { %v3735_v17 = vadd.f32 %v3734_v43, %v3541_v3  ;;  %v3848_v27 = vadd.f32 %v3847_v48, %v3541_v3  ;;  %v3736_v45 = vpop.f32.mrb[134].mxu0  ;;  %v3849_v36 = vpop.f32.mrb[134].mxu1  ;;  %4082 = vmatprep.subr.bf16.mxu0 %v3973_v42  ;;  %4155 = vmatprep.subr.bf16.mxu1 %v3975_v59 }
 0x760   : > { %v3737_v7 = vadd.f32 %v3736_v45, %v3546_v13  ;;  %v3850_v11 = vadd.f32 %v3849_v36, %v3546_v13  ;;  %v3738_v39 = vpop.f32.mrb[135].mxu0  ;;  %v3851_v20 = vpop.f32.mrb[135].mxu1  ;;  %4083 = vmatpush1.bf16.msra.mxu0 %v3972_v55  ;;  %4156 = vmatpush1.bf16.msra.mxu1 %v3974_v53  ;;  %v3920_v18 = vmax.f32 %v3733_v54, 0.0  ;;  %v3922_v35 = vmax.f32 %v3846_v23, 0.0 }
 0x761   : > { %v3739_v2 = vadd.f32 %v3738_v39, %v3546_v13  ;;  %v3852_v34 = vadd.f32 %v3851_v20, %v3546_v13  ;;  %v3921_v1 = vmax.f32 %v3735_v17, 0.0  ;;  %v3923_v58 = vmax.f32 %v3848_v27, 0.0  ;;  %v3561_v44 = vpop.permute.xlu1 %3560  ;;  %v3566_v47 = vpop.permute.xlu0 %3565 }
 0x762   : > { %v3924_v32 = vmax.f32 %v3737_v7, 0.0  ;;  %v3926_v10 = vmax.f32 %v3850_v11, 0.0 }
 0x763   : > { %v3925_v4 = vmax.f32 %v3739_v2, 0.0  ;;  %v3927_v41 = vmax.f32 %v3852_v34, 0.0 }
 0x764   : > { %v3976_v60 = vpack.c.bf16 %v3924_v32, %v3920_v18  ;;  %v3978_v49 = vpack.c.bf16 %v3926_v10, %v3922_v35 }
 0x765   : > { %v3977_v19 = vpack.c.bf16 %v3925_v4, %v3921_v1  ;;  %v3979_v8 = vpack.c.bf16 %v3927_v41, %v3923_v58  ;;  %v3742_v31 = vpop.f32.mrb[136].mxu0  ;;  %v3855_v61 = vpop.f32.mrb[136].mxu1 }
 0x766   : > { %v3743_v6 = vadd.f32 %v3742_v31, %v3551_v30  ;;  %v3856_v14 = vadd.f32 %v3855_v61, %v3551_v30  ;;  %v3744_v9 = vpop.f32.mrb[137].mxu0  ;;  %v3857_v25 = vpop.f32.mrb[137].mxu1 }
 0x767   : > { %v3745_v5 = vadd.f32 %v3744_v9, %v3551_v30  ;;  %v3858_v52 = vadd.f32 %v3857_v25, %v3551_v30  ;;  %v3746_v22 = vpop.f32.mrb[138].mxu0  ;;  %v3859_v62 = vpop.f32.mrb[138].mxu1  ;;  %4084 = vmatprep.subr.bf16.mxu0 %v3977_v19  ;;  %4157 = vmatprep.subr.bf16.mxu1 %v3979_v8 }
 0x768   : > { %v3747_v12 = vadd.f32 %v3746_v22, %v3556_v50  ;;  %v3860_v29 = vadd.f32 %v3859_v62, %v3556_v50  ;;  %v3748_v63 = vpop.f32.mrb[139].mxu0  ;;  %v3861_v46 = vpop.f32.mrb[139].mxu1  ;;  %4085 = vmatpush1.bf16.msra.mxu0 %v3976_v60  ;;  %4158 = vmatpush1.bf16.msra.mxu1 %v3978_v49  ;;  %v3928_v40 = vmax.f32 %v3743_v6, 0.0  ;;  %v3930_v28 = vmax.f32 %v3856_v14, 0.0 }
 0x769   : > { %v3749_v16 = vadd.f32 %v3748_v63, %v3556_v50  ;;  %v3862_v26 = vadd.f32 %v3861_v46, %v3556_v50  ;;  %v3929_v51 = vmax.f32 %v3745_v5, 0.0  ;;  %v3931_v38 = vmax.f32 %v3858_v52, 0.0  ;;  %v3571_v58 = vpop.permute.xlu1 %3570  ;;  %v3576_v4 = vpop.permute.xlu0 %3575 }
 0x76a   : > { %v3932_v24 = vmax.f32 %v3747_v12, 0.0  ;;  %v3934_v33 = vmax.f32 %v3860_v29, 0.0 }
 0x76b   : > { %v3933_v57 = vmax.f32 %v3749_v16, 0.0  ;;  %v3935_v56 = vmax.f32 %v3862_v26, 0.0 }
 0x76c   : > { %v3980_v15 = vpack.c.bf16 %v3932_v24, %v3928_v40  ;;  %v3982_v3 = vpack.c.bf16 %v3934_v33, %v3930_v28 }
 0x76d   : > { %v3981_v13 = vpack.c.bf16 %v3933_v57, %v3929_v51  ;;  %v3983_v55 = vpack.c.bf16 %v3935_v56, %v3931_v38  ;;  %v3752_v53 = vpop.f32.mrb[140].mxu0  ;;  %v3865_v42 = vpop.f32.mrb[140].mxu1 }
 0x76e   : > { %v3753_v59 = vadd.f32 %v3752_v53, %v3561_v44  ;;  %v3866_v37 = vadd.f32 %v3865_v42, %v3561_v44  ;;  %v3754_v0 = vpop.f32.mrb[141].mxu0  ;;  %v3867_v54 = vpop.f32.mrb[141].mxu1 }
 0x76f   : > { %v3755_v23 = vadd.f32 %v3754_v0, %v3561_v44  ;;  %v3868_v43 = vadd.f32 %v3867_v54, %v3561_v44  ;;  %v3756_v48 = vpop.f32.mrb[142].mxu0  ;;  %v3869_v17 = vpop.f32.mrb[142].mxu1  ;;  %4086 = vmatprep.subr.bf16.mxu0 %v3981_v13  ;;  %4159 = vmatprep.subr.bf16.mxu1 %v3983_v55 }
 0x770   : > { %v3757_v27 = vadd.f32 %v3756_v48, %v3566_v47  ;;  %v3870_v45 = vadd.f32 %v3869_v17, %v3566_v47  ;;  %v3758_v36 = vpop.f32.mrb[143].mxu0  ;;  %v3871_v7 = vpop.f32.mrb[143].mxu1  ;;  %4087 = vmatpush1.bf16.msra.mxu0 %v3980_v15  ;;  %4160 = vmatpush1.bf16.msra.mxu1 %v3982_v3  ;;  %v3936_v20 = vmax.f32 %v3753_v59, 0.0  ;;  %v3938_v2 = vmax.f32 %v3866_v37, 0.0 }
 0x771   : > { %v3759_v11 = vadd.f32 %v3758_v36, %v3566_v47  ;;  %v3872_v39 = vadd.f32 %v3871_v7, %v3566_v47  ;;  %v3937_v35 = vmax.f32 %v3755_v23, 0.0  ;;  %v3939_v32 = vmax.f32 %v3868_v43, 0.0  ;;  %v3581_v38 = vpop.permute.xlu1 %3580  ;;  %v3586_v57 = vpop.permute.xlu0 %3585 }
 0x772   : > { %v3940_v34 = vmax.f32 %v3757_v27, 0.0  ;;  %v3942_v18 = vmax.f32 %v3870_v45, 0.0 }
 0x773   : > { %v3941_v10 = vmax.f32 %v3759_v11, 0.0  ;;  %v3943_v1 = vmax.f32 %v3872_v39, 0.0 }
 0x774   : > { %v3984_v41 = vpack.c.bf16 %v3940_v34, %v3936_v20  ;;  %v3986_v30 = vpack.c.bf16 %v3942_v18, %v3938_v2 }
 0x775   : > { %v3985_v50 = vpack.c.bf16 %v3941_v10, %v3937_v35  ;;  %v3987_v60 = vpack.c.bf16 %v3943_v1, %v3939_v32  ;;  %v3762_v49 = vpop.f32.mrb[144].mxu0  ;;  %v3875_v19 = vpop.f32.mrb[144].mxu1 }
 0x776   : > { %v3763_v8 = vadd.f32 %v3762_v49, %v3571_v58  ;;  %v3876_v31 = vadd.f32 %v3875_v19, %v3571_v58  ;;  %v3764_v61 = vpop.f32.mrb[145].mxu0  ;;  %v3877_v6 = vpop.f32.mrb[145].mxu1 }
 0x777   : > { %v3765_v14 = vadd.f32 %v3764_v61, %v3571_v58  ;;  %v3878_v9 = vadd.f32 %v3877_v6, %v3571_v58  ;;  %v3766_v25 = vpop.f32.mrb[146].mxu0  ;;  %v3879_v5 = vpop.f32.mrb[146].mxu1  ;;  %4088 = vmatprep.subr.bf16.mxu0 %v3985_v50  ;;  %4161 = vmatprep.subr.bf16.mxu1 %v3987_v60 }
 0x778   : > { %v3767_v52 = vadd.f32 %v3766_v25, %v3576_v4  ;;  %v3880_v22 = vadd.f32 %v3879_v5, %v3576_v4  ;;  %v3768_v62 = vpop.f32.mrb[147].mxu0  ;;  %v3881_v12 = vpop.f32.mrb[147].mxu1  ;;  %4089 = vmatpush1.bf16.msra.mxu0 %v3984_v41  ;;  %4162 = vmatpush1.bf16.msra.mxu1 %v3986_v30  ;;  %v3944_v46 = vmax.f32 %v3763_v8, 0.0  ;;  %v3946_v16 = vmax.f32 %v3876_v31, 0.0 }
 0x779   : > { %v3769_v29 = vadd.f32 %v3768_v62, %v3576_v4  ;;  %v3882_v63 = vadd.f32 %v3881_v12, %v3576_v4  ;;  %v3945_v28 = vmax.f32 %v3765_v14, 0.0  ;;  %v3947_v24 = vmax.f32 %v3878_v9, 0.0  ;;  %v3591_v32 = vpop.permute.xlu1 %3590  ;;  %v3596_v10 = vpop.permute.xlu0 %3595 }
 0x77a   : > { %v3948_v26 = vmax.f32 %v3767_v52, 0.0  ;;  %v3950_v40 = vmax.f32 %v3880_v22, 0.0 }
 0x77b   : > { %v3949_v33 = vmax.f32 %v3769_v29, 0.0  ;;  %v3951_v51 = vmax.f32 %v3882_v63, 0.0 }
 0x77c   : > { %v3988_v56 = vpack.c.bf16 %v3948_v26, %v3944_v46  ;;  %v3990_v44 = vpack.c.bf16 %v3950_v40, %v3946_v16 }
 0x77d   : > { %v3989_v47 = vpack.c.bf16 %v3949_v33, %v3945_v28  ;;  %v3991_v15 = vpack.c.bf16 %v3951_v51, %v3947_v24  ;;  %v3772_v3 = vpop.f32.mrb[148].mxu0  ;;  %v3885_v13 = vpop.f32.mrb[148].mxu1 }
 0x77e   : > { %v3773_v55 = vadd.f32 %v3772_v3, %v3581_v38  ;;  %v3886_v53 = vadd.f32 %v3885_v13, %v3581_v38  ;;  %v3774_v42 = vpop.f32.mrb[149].mxu0  ;;  %v3887_v59 = vpop.f32.mrb[149].mxu1 }
 0x77f   : > { %v3775_v37 = vadd.f32 %v3774_v42, %v3581_v38  ;;  %v3888_v0 = vadd.f32 %v3887_v59, %v3581_v38  ;;  %v3776_v54 = vpop.f32.mrb[150].mxu0  ;;  %v3889_v23 = vpop.f32.mrb[150].mxu1  ;;  %4090 = vmatprep.subr.bf16.mxu0 %v3989_v47  ;;  %4163 = vmatprep.subr.bf16.mxu1 %v3991_v15  ;;  %v4916_v47 = vld [vmem:[%s6656_s5 + $0x38] sm:$0xff]  }
 0x780   : > { %v3777_v43 = vadd.f32 %v3776_v54, %v3586_v57  ;;  %v3890_v48 = vadd.f32 %v3889_v23, %v3586_v57  ;;  %v3778_v17 = vpop.f32.mrb[151].mxu0  ;;  %v3891_v27 = vpop.f32.mrb[151].mxu1  ;;  %4091 = vmatpush1.bf16.msra.mxu0 %v3988_v56  ;;  %4164 = vmatpush1.bf16.msra.mxu1 %v3990_v44  ;;  %v3952_v7 = vmax.f32 %v3773_v55, 0.0  ;;  %v3954_v11 = vmax.f32 %v3886_v53, 0.0  ;;  %v4914_v56 = vld [vmem:[%s6656_s5 + $0x28] sm:$0xff]   ;;  %v4915_v44 = vld [vmem:[%s6656_s5 + $0x30] sm:$0xff]  }
 0x781   : > { %v3779_v45 = vadd.f32 %v3778_v17, %v3586_v57  ;;  %v3892_v36 = vadd.f32 %v3891_v27, %v3586_v57  ;;  %v3953_v2 = vmax.f32 %v3775_v37, 0.0  ;;  %v3955_v34 = vmax.f32 %v3888_v0, 0.0  ;;  %v4913_v57 = vld [vmem:[%s6656_s5 + $0x20] sm:$0xff]   ;;  %v4019_v15 = vpop.permute.xlu1 %4018  ;;  %v4024_v3 = vpop.permute.xlu0 %4023 }
 0x782   : > { %v3956_v39 = vmax.f32 %v3777_v43, 0.0  ;;  %v3958_v20 = vmax.f32 %v3890_v48, 0.0 }
 0x783   : > { %v3957_v18 = vmax.f32 %v3779_v45, 0.0  ;;  %v3959_v35 = vmax.f32 %v3892_v36, 0.0 }
 0x784   : > { %v3992_v1 = vpack.c.bf16 %v3956_v39, %v3952_v7  ;;  %v3994_v58 = vpack.c.bf16 %v3958_v20, %v3954_v11 }
 0x785   : > { %v3993_v4 = vpack.c.bf16 %v3957_v18, %v3953_v2  ;;  %v3995_v41 = vpack.c.bf16 %v3959_v35, %v3955_v34  ;;  %v3782_v30 = vpop.f32.mrb[152].mxu0  ;;  %v3895_v50 = vpop.f32.mrb[152].mxu1 }
 0x786   : > { %v3783_v60 = vadd.f32 %v3782_v30, %v3591_v32  ;;  %v3896_v49 = vadd.f32 %v3895_v50, %v3591_v32  ;;  %v3784_v19 = vpop.f32.mrb[153].mxu0  ;;  %v3897_v8 = vpop.f32.mrb[153].mxu1 }
 0x787   : > { %v3785_v31 = vadd.f32 %v3784_v19, %v3591_v32  ;;  %v3898_v61 = vadd.f32 %v3897_v8, %v3591_v32  ;;  %v3786_v6 = vpop.f32.mrb[154].mxu0  ;;  %v3899_v14 = vpop.f32.mrb[154].mxu1  ;;  %4092 = vmatprep.subr.bf16.mxu0 %v3993_v4  ;;  %4165 = vmatprep.subr.bf16.mxu1 %v3995_v41 }
 0x788   : > { %v3787_v9 = vadd.f32 %v3786_v6, %v3596_v10  ;;  %v3900_v25 = vadd.f32 %v3899_v14, %v3596_v10  ;;  %v3788_v5 = vpop.f32.mrb[155].mxu0  ;;  %v3901_v52 = vpop.f32.mrb[155].mxu1  ;;  %4093 = vmatpush1.bf16.msra.mxu0 %v3992_v1  ;;  %4166 = vmatpush1.bf16.msra.mxu1 %v3994_v58  ;;  %v3960_v12 = vmax.f32 %v3783_v60, 0.0  ;;  %v3962_v29 = vmax.f32 %v3896_v49, 0.0 }
 0x789   : > { %v3789_v22 = vadd.f32 %v3788_v5, %v3596_v10  ;;  %v3902_v62 = vadd.f32 %v3901_v52, %v3596_v10  ;;  %v3961_v16 = vmax.f32 %v3785_v31, 0.0  ;;  %v3963_v26 = vmax.f32 %v3898_v61, 0.0  ;;  %v4029_v10 = vpop.permute.xlu1 %4028  ;;  %v4034_v1 = vpop.permute.xlu0 %4033 }
 0x78a   : > { %v3964_v63 = vmax.f32 %v3787_v9, 0.0  ;;  %v3966_v46 = vmax.f32 %v3900_v25, 0.0 }
 0x78b   : > { %v3965_v40 = vmax.f32 %v3789_v22, 0.0  ;;  %v3967_v28 = vmax.f32 %v3902_v62, 0.0 }
 0x78c   : > { %v3996_v24 = vpack.c.bf16 %v3964_v63, %v3960_v12  ;;  %v3998_v33 = vpack.c.bf16 %v3966_v46, %v3962_v29 }
 0x78d   : > { %v3997_v51 = vpack.c.bf16 %v3965_v40, %v3961_v16  ;;  %v3999_v38 = vpack.c.bf16 %v3967_v28, %v3963_v26 }
 0x78f   : > { %4094 = vmatprep.subr.bf16.mxu0 %v3997_v51  ;;  %4167 = vmatprep.subr.bf16.mxu1 %v3999_v38  ;;  %v4044_v51 = vpop.permute.xlu0 %4043 }
 0x790   : > { %4095 = vmatpush1.bf16.msra.mxu0 %v3996_v24  ;;  %4168 = vmatpush1.bf16.msra.mxu1 %v3998_v33  ;;  %v4039_v33 = vpop.permute.xlu1 %4038 }
 0x793   : > { %4113 = vmatmul.mubr.bf16.vlgmr.msra.gmra.mrb[156].mxu0 %v4913_v57  ;;  %4186 = vmatmul.mubr.bf16.vlgmr.msra.gmra.mrb[156].mxu1 %v4913_v57 }
 0x794   : > { %4122 = vmatprep.mubr.bf16.mxu0 %v6893_v21  ;;  %4195 = vmatprep.mubr.bf16.mxu1 %v6893_v21 }
 0x79b   : > { %4123 = vmatmul.mubr.bf16.gmra.mrb[160].mxu0 %v4914_v56  ;;  %4196 = vmatmul.mubr.bf16.gmra.mrb[160].mxu1 %v4914_v56 }
 0x79c   : > { %4132 = vmatprep.mubr.bf16.mxu0 %v6893_v21  ;;  %4205 = vmatprep.mubr.bf16.mxu1 %v6893_v21 }
 0x7a3   : > { %4133 = vmatmul.mubr.bf16.gmra.mrb[164].mxu0 %v4915_v44  ;;  %4206 = vmatmul.mubr.bf16.gmra.mrb[164].mxu1 %v4915_v44 }
 0x7a4   : > { %4142 = vmatprep.mubr.bf16.mxu0 %v6893_v21  ;;  %4215 = vmatprep.mubr.bf16.mxu1 %v6893_v21 }
 0x7ab   : > { %4143 = vmatmul.mubr.bf16.gmra.mrb[168].mxu0 %v4916_v47  ;;  %4216 = vmatmul.mubr.bf16.gmra.mrb[168].mxu1 %v4916_v47 }
 0x7ac   : > { %4350 = vmatprep.mubr.bf16.mxu0 %v6893_v21  ;;  %4403 = vmatprep.mubr.bf16.mxu1 %v6893_v21 }
 0x866   : > { %v4114_v13 = vpop.f32.mrb[156].mxu0  ;;  %v4187_v55 = vpop.f32.mrb[156].mxu1 }
 0x867   : > { %v4115_v53 = vadd.f32 %v4114_v13, %v4019_v15  ;;  %v4188_v42 = vadd.f32 %v4187_v55, %v4019_v15  ;;  %v4116_v59 = vpop.f32.mrb[157].mxu0  ;;  %v4189_v37 = vpop.f32.mrb[157].mxu1 }
 0x868   : > { %v4117_v0 = vadd.f32 %v4116_v59, %v4019_v15  ;;  %v4190_v54 = vadd.f32 %v4189_v37, %v4019_v15  ;;  %v4118_v23 = vpop.f32.mrb[158].mxu0  ;;  %v4191_v43 = vpop.f32.mrb[158].mxu1 }
 0x869   : > { %v4119_v48 = vadd.f32 %v4118_v23, %v4024_v3  ;;  %v4192_v17 = vadd.f32 %v4191_v43, %v4024_v3  ;;  %v4120_v27 = vpop.f32.mrb[159].mxu0  ;;  %v4193_v45 = vpop.f32.mrb[159].mxu1  ;;  %v4226_v11 = vmax.f32 %v4115_v53, 0.0  ;;  %v4228_v39 = vmax.f32 %v4188_v42, 0.0 }
 0x86a   : > { %v4121_v36 = vadd.f32 %v4120_v27, %v4024_v3  ;;  %v4194_v7 = vadd.f32 %v4193_v45, %v4024_v3  ;;  %v4227_v34 = vmax.f32 %v4117_v0, 0.0  ;;  %v4229_v18 = vmax.f32 %v4190_v54, 0.0 }
 0x86b   : > { %v4230_v20 = vmax.f32 %v4119_v48, 0.0  ;;  %v4232_v2 = vmax.f32 %v4192_v17, 0.0 }
 0x86c   : > { %v4231_v35 = vmax.f32 %v4121_v36, 0.0  ;;  %v4233_v32 = vmax.f32 %v4194_v7, 0.0 }
 0x86d   : > { %v4258_v58 = vpack.c.bf16 %v4230_v20, %v4226_v11  ;;  %v4260_v4 = vpack.c.bf16 %v4232_v2, %v4228_v39 }
 0x86e   : > { %v4259_v41 = vpack.c.bf16 %v4231_v35, %v4227_v34  ;;  %v4261_v30 = vpack.c.bf16 %v4233_v32, %v4229_v18  ;;  %v4124_v50 = vpop.f32.mrb[160].mxu0  ;;  %v4197_v60 = vpop.f32.mrb[160].mxu1 }
 0x86f   : > { %v4125_v49 = vadd.f32 %v4124_v50, %v4029_v10  ;;  %v4198_v19 = vadd.f32 %v4197_v60, %v4029_v10  ;;  %v4126_v8 = vpop.f32.mrb[161].mxu0  ;;  %v4199_v31 = vpop.f32.mrb[161].mxu1 }
 0x870   : > { %v4127_v61 = vadd.f32 %v4126_v8, %v4029_v10  ;;  %v4200_v6 = vadd.f32 %v4199_v31, %v4029_v10  ;;  %v4128_v14 = vpop.f32.mrb[162].mxu0  ;;  %v4201_v9 = vpop.f32.mrb[162].mxu1  ;;  %4318 = vmatprep.subr.bf16.mxu0 %v4259_v41  ;;  %4371 = vmatprep.subr.bf16.mxu1 %v4261_v30 }
 0x871   : > { %v4129_v25 = vadd.f32 %v4128_v14, %v4034_v1  ;;  %v4202_v5 = vadd.f32 %v4201_v9, %v4034_v1  ;;  %v4130_v52 = vpop.f32.mrb[163].mxu0  ;;  %v4203_v22 = vpop.f32.mrb[163].mxu1  ;;  %4319 = vmatpush1.bf16.msra.mxu0 %v4258_v58  ;;  %4372 = vmatpush1.bf16.msra.mxu1 %v4260_v4  ;;  %v4234_v29 = vmax.f32 %v4125_v49, 0.0  ;;  %v4236_v63 = vmax.f32 %v4198_v19, 0.0 }
 0x872   : > { %v4131_v62 = vadd.f32 %v4130_v52, %v4034_v1  ;;  %v4204_v12 = vadd.f32 %v4203_v22, %v4034_v1  ;;  %v4235_v26 = vmax.f32 %v4127_v61, 0.0  ;;  %v4237_v40 = vmax.f32 %v4200_v6, 0.0  ;;  %v4049_v18 = vpop.permute.xlu1 %4048  ;;  %v4054_v35 = vpop.permute.xlu0 %4053 }
 0x873   : > { %v4238_v46 = vmax.f32 %v4129_v25, 0.0  ;;  %v4240_v16 = vmax.f32 %v4202_v5, 0.0 }
 0x874   : > { %v4239_v28 = vmax.f32 %v4131_v62, 0.0  ;;  %v4241_v24 = vmax.f32 %v4204_v12, 0.0 }
 0x875   : > { %v4262_v38 = vpack.c.bf16 %v4238_v46, %v4234_v29  ;;  %v4264_v57 = vpack.c.bf16 %v4240_v16, %v4236_v63 }
 0x876   : > { %v4263_v56 = vpack.c.bf16 %v4239_v28, %v4235_v26  ;;  %v4265_v44 = vpack.c.bf16 %v4241_v24, %v4237_v40  ;;  %v4134_v47 = vpop.f32.mrb[164].mxu0  ;;  %v4207_v15 = vpop.f32.mrb[164].mxu1 }
 0x877   : > { %v4135_v3 = vadd.f32 %v4134_v47, %v4039_v33  ;;  %v4208_v13 = vadd.f32 %v4207_v15, %v4039_v33  ;;  %v4136_v55 = vpop.f32.mrb[165].mxu0  ;;  %v4209_v53 = vpop.f32.mrb[165].mxu1 }
 0x878   : > { %v4137_v42 = vadd.f32 %v4136_v55, %v4039_v33  ;;  %v4210_v59 = vadd.f32 %v4209_v53, %v4039_v33  ;;  %v4138_v37 = vpop.f32.mrb[166].mxu0  ;;  %v4211_v0 = vpop.f32.mrb[166].mxu1  ;;  %4320 = vmatprep.subr.bf16.mxu0 %v4263_v56  ;;  %4373 = vmatprep.subr.bf16.mxu1 %v4265_v44 }
 0x879   : > { %v4139_v54 = vadd.f32 %v4138_v37, %v4044_v51  ;;  %v4212_v23 = vadd.f32 %v4211_v0, %v4044_v51  ;;  %v4140_v43 = vpop.f32.mrb[167].mxu0  ;;  %v4213_v48 = vpop.f32.mrb[167].mxu1  ;;  %4321 = vmatpush1.bf16.msra.mxu0 %v4262_v38  ;;  %4374 = vmatpush1.bf16.msra.mxu1 %v4264_v57  ;;  %v4242_v45 = vmax.f32 %v4135_v3, 0.0  ;;  %v4244_v36 = vmax.f32 %v4208_v13, 0.0  ;;  %v4918_v38 = vld [vmem:[%s6657_s6 + $0x18] sm:$0xff]  }
 0x87a   : > { %v4141_v17 = vadd.f32 %v4140_v43, %v4044_v51  ;;  %v4214_v27 = vadd.f32 %v4213_v48, %v4044_v51  ;;  %v4243_v39 = vmax.f32 %v4137_v42, 0.0  ;;  %v4245_v20 = vmax.f32 %v4210_v59, 0.0  ;;  %v4917_v51 = vld [vmem:[%s6657_s6 + $0x10] sm:$0xff]   ;;  %v4285_v57 = vpop.permute.xlu1 %4284  ;;  %v4290_v56 = vpop.permute.xlu0 %4289 }
 0x87b   : > { %v4246_v7 = vmax.f32 %v4139_v54, 0.0  ;;  %v4248_v11 = vmax.f32 %v4212_v23, 0.0 }
 0x87c   : > { %v4247_v2 = vmax.f32 %v4141_v17, 0.0  ;;  %v4249_v34 = vmax.f32 %v4214_v27, 0.0 }
 0x87d   : > { %v4266_v32 = vpack.c.bf16 %v4246_v7, %v4242_v45  ;;  %v4268_v10 = vpack.c.bf16 %v4248_v11, %v4244_v36 }
 0x87e   : > { %v4267_v1 = vpack.c.bf16 %v4247_v2, %v4243_v39  ;;  %v4269_v58 = vpack.c.bf16 %v4249_v34, %v4245_v20  ;;  %v4144_v4 = vpop.f32.mrb[168].mxu0  ;;  %v4217_v41 = vpop.f32.mrb[168].mxu1 }
 0x87f   : > { %v4145_v30 = vadd.f32 %v4144_v4, %v4049_v18  ;;  %v4218_v50 = vadd.f32 %v4217_v41, %v4049_v18  ;;  %v4146_v60 = vpop.f32.mrb[169].mxu0  ;;  %v4219_v49 = vpop.f32.mrb[169].mxu1 }
 0x880   : > { %v4147_v19 = vadd.f32 %v4146_v60, %v4049_v18  ;;  %v4220_v8 = vadd.f32 %v4219_v49, %v4049_v18  ;;  %v4148_v31 = vpop.f32.mrb[170].mxu0  ;;  %v4221_v61 = vpop.f32.mrb[170].mxu1  ;;  %4322 = vmatprep.subr.bf16.mxu0 %v4267_v1  ;;  %4375 = vmatprep.subr.bf16.mxu1 %v4269_v58 }
 0x881   : > { %v4149_v6 = vadd.f32 %v4148_v31, %v4054_v35  ;;  %v4222_v14 = vadd.f32 %v4221_v61, %v4054_v35  ;;  %v4150_v9 = vpop.f32.mrb[171].mxu0  ;;  %v4223_v25 = vpop.f32.mrb[171].mxu1  ;;  %4323 = vmatpush1.bf16.msra.mxu0 %v4266_v32  ;;  %4376 = vmatpush1.bf16.msra.mxu1 %v4268_v10  ;;  %v4250_v22 = vmax.f32 %v4145_v30, 0.0  ;;  %v4252_v62 = vmax.f32 %v4218_v50, 0.0 }
 0x882   : > { %v4151_v5 = vadd.f32 %v4150_v9, %v4054_v35  ;;  %v4224_v52 = vadd.f32 %v4223_v25, %v4054_v35  ;;  %v4251_v63 = vmax.f32 %v4147_v19, 0.0  ;;  %v4253_v46 = vmax.f32 %v4220_v8, 0.0  ;;  %v4295_v2 = vpop.permute.xlu1 %4294  ;;  %v4300_v34 = vpop.permute.xlu0 %4299 }
 0x883   : > { %v4254_v12 = vmax.f32 %v4149_v6, 0.0  ;;  %v4256_v29 = vmax.f32 %v4222_v14, 0.0 }
 0x884   : > { %v4255_v16 = vmax.f32 %v4151_v5, 0.0  ;;  %v4257_v26 = vmax.f32 %v4224_v52, 0.0 }
 0x885   : > { %v4270_v40 = vpack.c.bf16 %v4254_v12, %v4250_v22  ;;  %v4272_v28 = vpack.c.bf16 %v4256_v29, %v4252_v62 }
 0x886   : > { %v4271_v24 = vpack.c.bf16 %v4255_v16, %v4251_v63  ;;  %v4273_v33 = vpack.c.bf16 %v4257_v26, %v4253_v46 }
 0x888   : > { %4324 = vmatprep.subr.bf16.mxu0 %v4271_v24  ;;  %4377 = vmatprep.subr.bf16.mxu1 %v4273_v33  ;;  %v4448_v24 = vld [vmem:[%s6659_s8] sm:$0xf]  ;;  %v4453_v33 = vpop.permute.xlu1 %4452 }
 0x889   : > { %4325 = vmatpush1.bf16.msra.mxu0 %v4270_v40  ;;  %4378 = vmatpush1.bf16.msra.mxu1 %v4272_v28 }
 0x88c   : > { %4788 = vmatmul.mubr.msk.bf16.vlgmr.msra.gmra.mrb[172].mxu0 %vm2101_vm0, %v4917_v51  ;;  %4790 = vmatmul.mubr.msk.bf16.vlgmr.msra.gmra.mrb[172].mxu1 %vm2101_vm0, %v4917_v51 }
 0x88d   : > { %4360 = vmatprep.mubr.bf16.mxu0 %v6893_v21  ;;  %4413 = vmatprep.mubr.bf16.mxu1 %v6893_v21 }
 0x894   : > { %4789 = vmatmul.mubr.msk.bf16.gmra.mrb[176].mxu0 %vm2101_vm0, %v4918_v38  ;;  %4791 = vmatmul.mubr.msk.bf16.gmra.mrb[176].mxu1 %vm2101_vm0, %v4918_v38 }
 0x895   : > { %4490 = vmatprep.mubr.bf16.mxu0 %v6893_v21  ;;  %4531 = vmatprep.mubr.bf16.mxu1 %v6893_v21 }
 0x95f   : > { %v4352_v44 = vpop.f32.mrb[172].mxu0  ;;  %v4405_v47 = vpop.f32.mrb[172].mxu1 }
 0x960   : > { %v4353_v15 = vadd.f32 %v4352_v44, %v4285_v57  ;;  %v4406_v3 = vadd.f32 %v4405_v47, %v4285_v57  ;;  %v4354_v13 = vpop.f32.mrb[173].mxu0  ;;  %v4407_v55 = vpop.f32.mrb[173].mxu1 }
 0x961   : > { %v4355_v53 = vadd.f32 %v4354_v13, %v4285_v57  ;;  %v4408_v42 = vadd.f32 %v4407_v55, %v4285_v57  ;;  %v4356_v59 = vpop.f32.mrb[174].mxu0  ;;  %v4409_v37 = vpop.f32.mrb[174].mxu1 }
 0x962   : > { %v4357_v0 = vadd.f32 %v4356_v59, %v4290_v56  ;;  %v4410_v54 = vadd.f32 %v4409_v37, %v4290_v56  ;;  %v4358_v23 = vpop.f32.mrb[175].mxu0  ;;  %v4411_v43 = vpop.f32.mrb[175].mxu1  ;;  %v4424_v27 = vmax.f32 %v4353_v15, 0.0  ;;  %v4426_v21 = vmax.f32 %v4406_v3, 0.0 }
 0x963   : > { %v4359_v48 = vadd.f32 %v4358_v23, %v4290_v56  ;;  %v4412_v17 = vadd.f32 %v4411_v43, %v4290_v56  ;;  %v4425_v7 = vmax.f32 %v4355_v53, 0.0  ;;  %v4427_v11 = vmax.f32 %v4408_v42, 0.0 }
 0x964   : > { %v4428_v45 = vmax.f32 %v4357_v0, 0.0  ;;  %v4430_v36 = vmax.f32 %v4410_v54, 0.0 }
 0x965   : > { %v4429_v39 = vmax.f32 %v4359_v48, 0.0  ;;  %v4431_v20 = vmax.f32 %v4412_v17, 0.0 }
 0x966   : > { %v4440_v18 = vpack.c.bf16 %v4428_v45, %v4424_v27  ;;  %v4442_v35 = vpack.c.bf16 %v4430_v36, %v4426_v21 }
 0x967   : > { %v4441_v32 = vpack.c.bf16 %v4429_v39, %v4425_v7  ;;  %v4443_v10 = vpack.c.bf16 %v4431_v20, %v4427_v11  ;;  %v4362_v1 = vpop.f32.mrb[176].mxu0  ;;  %v4415_v58 = vpop.f32.mrb[176].mxu1 }
 0x968   : > { %v4363_v4 = vadd.f32 %v4362_v1, %v4295_v2  ;;  %v4416_v41 = vadd.f32 %v4415_v58, %v4295_v2  ;;  %v4364_v30 = vpop.f32.mrb[177].mxu0  ;;  %v4417_v50 = vpop.f32.mrb[177].mxu1 }
 0x969   : > { %v4365_v60 = vadd.f32 %v4364_v30, %v4295_v2  ;;  %v4418_v49 = vadd.f32 %v4417_v50, %v4295_v2  ;;  %v4366_v19 = vpop.f32.mrb[178].mxu0  ;;  %v4419_v8 = vpop.f32.mrb[178].mxu1  ;;  %4458 = vmatprep.subr.bf16.mxu0 %v4441_v32  ;;  %4499 = vmatprep.subr.bf16.mxu1 %v4443_v10 }
 0x96a   : > { %v4367_v31 = vadd.f32 %v4366_v19, %v4300_v34  ;;  %v4420_v61 = vadd.f32 %v4419_v8, %v4300_v34  ;;  %v4368_v6 = vpop.f32.mrb[179].mxu0  ;;  %v4421_v14 = vpop.f32.mrb[179].mxu1  ;;  %4459 = vmatpush1.bf16.msra.mxu0 %v4440_v18  ;;  %4500 = vmatpush1.bf16.msra.mxu1 %v4442_v35  ;;  %v4432_v5 = vmax.f32 %v4363_v4, 0.0  ;;  %v4434_v52 = vmax.f32 %v4416_v41, 0.0 }
 0x96b   : > { %v4369_v9 = vadd.f32 %v4368_v6, %v4300_v34  ;;  %v4422_v25 = vadd.f32 %v4421_v14, %v4300_v34  ;;  %v4433_v12 = vmax.f32 %v4365_v60, 0.0  ;;  %v4435_v29 = vmax.f32 %v4418_v49, 0.0 }
 0x96c   : > { %v4436_v22 = vmax.f32 %v4367_v31, 0.0  ;;  %v4438_v62 = vmax.f32 %v4420_v61, 0.0 }
 0x96d   : > { %v4437_v63 = vmax.f32 %v4369_v9, 0.0  ;;  %v4439_v46 = vmax.f32 %v4422_v25, 0.0 }
 0x96e   : > { %v4444_v16 = vpack.c.bf16 %v4436_v22, %v4432_v5  ;;  %v4446_v26 = vpack.c.bf16 %v4438_v62, %v4434_v52 }
 0x96f   : > { %v4445_v40 = vpack.c.bf16 %v4437_v63, %v4433_v12  ;;  %v4447_v28 = vpack.c.bf16 %v4439_v46, %v4435_v29 }
 0x971   : > { %4460 = vmatprep.subr.bf16.mxu0 %v4445_v40  ;;  %4501 = vmatprep.subr.bf16.mxu1 %v4447_v28 }
 0x972   : > { %4461 = vmatpush1.bf16.msra.mxu0 %v4444_v16  ;;  %4502 = vmatpush1.bf16.msra.mxu1 %v4446_v26 }
 0x975   : > { %4792 = vmatmul.mubr.msk.bf16.vlgmr.msra.gmra.mrb[180].mxu0 %vm2245_vm1, %v4448_v24  ;;  %4793 = vmatmul.mubr.msk.bf16.vlgmr.msra.gmra.mrb[180].mxu1 %vm2245_vm1, %v4448_v24 }
 0xa48   : > { %v4492_v51 = vpop.f32.mrb[180].mxu0  ;;  %v4533_v38 = vpop.f32.mrb[180].mxu1 }
 0xa49   : > { %v4493_v57 = vadd.f32 %v4492_v51, %v4453_v33  ;;  %v4534_v56 = vadd.f32 %v4533_v38, %v4453_v33  ;;  %v4494_v44 = vpop.f32.mrb[181].mxu0  ;;  %v4535_v47 = vpop.f32.mrb[181].mxu1 }
 0xa4a   : > { %v4495_v15 = vadd.f32 %v4494_v44, %v4453_v33  ;;  %v4536_v3 = vadd.f32 %v4535_v47, %v4453_v33  ;;  %v4496_v13 = vpop.f32.mrb[182].mxu0  ;;  %v4537_v55 = vpop.f32.mrb[182].mxu1 }
 0xa4b   : > { %4540 = vst [vmem:[%s568_s22] sm:$0xff] %v4493_v57  ;;  %4542 = vst [vmem:[%s568_s22 + $0x10] sm:$0xff] %v4534_v56  ;;  %v4497_v53 = vpop.f32.mrb[183].mxu0  ;;  %v4538_v42 = vpop.f32.mrb[183].mxu1 }
 0xa4c   : > { %4541 = vst [vmem:[%s568_s22 + $0x8] sm:$0xff] %v4495_v15  ;;  %4543 = vst [vmem:[%s568_s22 + $0x18] sm:$0xff] %v4536_v3 }
 0xa4d PF: > { %s20_s19 = sadd.s32 1, %s4973_s19   ;;  %s6894_s13 = smov %s4953_s14 }
 0xa4e   : > { %p17_p12 = scmp.ge.s32.totalorder %s20_s19, 6   ;;  %s6895_s14 = smov %s5081_s24 }
 0xa4f   : > { %s6896_s15 = smov %s4965_s17  ;;  %s6897_s16 = smov %s4969_s18 }
 0xa50   : > { %s6898_s17 = smov %s6901_s20  ;;  %s6899_s18 = smov %s6905_s21 }
 0xa51   :  { %19 = sbr.rel (!%p17_p12) target bundleno = 7 (0x7), region = 124 }

</bundles_post_ra>
